<compile_context>
chip_gen: v7x
topology: tpu7x:2x2x1
jax: 0.10.0
libtpu: 0.0.40
codegen_flags: <defaults>
</compile_context>

<pallas_src>
import functools
import math

import jax
import jax.numpy as jnp
from jax import lax
from jax.experimental import pallas as pl
from jax.experimental.pallas import tpu as pltpu

# --------------------------------------------------------------------------
# Model hyper-parameters (nnominals divisible by 3, nnominals//3 divisible by 5)
# --------------------------------------------------------------------------
NNOMINALS = 15
NDEFECTS = 10
DEFECT_DIM = 32          # defect embedding dim
NOMINAL_DIM = 64
MID_DIM = 128            # mid_dim of relMultiheadLinear
HIDDEN = 128             # hidden_dim / d_model
FFN_DIM = 256            # dim_feedforward
ATTN_HEADS = 4
HEAD_DIM = HIDDEN // ATTN_HEADS
NUM_LAYERS = 2
NHEADS1 = NNOMINALS // 3   # 5
NHEADS2 = NHEADS1 // 5     # 1
IN_DIM = NNOMINALS * DEFECT_DIM   # 480
LN_EPS = 1e-5
MASK_NEG = -1e30


# --------------------------------------------------------------------------
# In-kernel helpers
# --------------------------------------------------------------------------
def _bf16(a):
    return a.astype(jnp.bfloat16)


def _layer_norm(x, gamma, beta):
    # single pass: sum(x) and sum(x*x) are independent reductions (no
    # mean -> variance dependency chain on the serial path between matmuls).
    n = jnp.float32(x.shape[-1])
    s1 = jnp.sum(x, axis=-1, keepdims=True)
    s2 = jnp.sum(x * x, axis=-1, keepdims=True)
    mu = s1 / n
    var = s2 / n - mu * mu
    return (x - mu) * lax.rsqrt(var + LN_EPS) * gamma + beta


# --------------------------------------------------------------------------
# Fused forward kernel (one grid step = TB batch elements)
# --------------------------------------------------------------------------
def fused_forward_kernel(x_ref, bias_ref,
                         wA_ref, bA_ref, wB_ref, bB_ref, wC_ref, bC_ref,
                         wqkv_ref, bqkv_ref, wo_ref, bo_ref,
                         wf1_ref, bf1_ref, wf2_ref, bf2_ref, ln_ref,
                         o_ref, *, tb, seq_len, num_heads, num_layers):
    d = HIDDEN
    hd = d // num_heads
    rows = tb * seq_len

    def mm(a_bf16, w_bf16, b_f32):
        return jnp.dot(a_bf16, w_bf16, preferred_element_type=jnp.float32) + b_f32

    x = x_ref[...].reshape(rows, IN_DIM)          # (rows, 480) f32
    bias = bias_ref[...]                          # (tb, 1, L)  f32, -1e30 at masked keys

    # --- embedding MLP chain (folded linears, see init_params) --------------
    # TODO(synk): wA keeps nominal_emb_1's block-diagonal (80% zero) structure;
    # the dense per-group form only pays off at much larger row tiles.
    h = jnp.maximum(mm(_bf16(x), wA_ref[...], bA_ref[...]), 0.0)   # (rows, 640)
    h = jnp.maximum(mm(_bf16(h), wB_ref[...], bB_ref[...]), 0.0)   # (rows, 128)
    x = mm(_bf16(h), wC_ref[...], bC_ref[...])                     # (rows, 128)

    # per-head lane masks (built once, reused by every layer/head)
    lane = lax.broadcasted_iota(jnp.int32, (1, d), 1)
    m_b = [((lane >= i * hd) & (lane < (i + 1) * hd)).astype(jnp.bfloat16)
           for i in range(num_heads)]
    m_f = [((lane >= i * hd) & (lane < (i + 1) * hd)).astype(jnp.float32)
           for i in range(num_heads)]

    # --- transformer encoder (unrolled, weights VMEM-resident) --------------
    for li in range(num_layers):
        last = li == num_layers - 1
        lq = 1 if last else seq_len

        ln_l = ln_ref[li]                         # (4, 128) f32
        g1, be1 = ln_l[0:1, :], ln_l[1:2, :]
        g2, be2 = ln_l[2:3, :], ln_l[3:4, :]

        # fused QKV projection; 1/sqrt(head_dim) is folded into the Q columns
        qkv = mm(_bf16(x), wqkv_ref[li], bqkv_ref[li])             # (rows, 384)
        k3 = _bf16(qkv[:, d:2 * d]).reshape(tb, seq_len, d)
        v3 = _bf16(qkv[:, 2 * d:3 * d]).reshape(tb, seq_len, d)
        q_f = qkv[:, 0:d].reshape(tb, seq_len, d)
        if last:
            # only the pooled row (seq position 0) is ever read out:
            # restrict queries / residual / FFN / LayerNorms to it.
            q_f = q_f[:, 0:1, :]
            x_res = x.reshape(tb, seq_len, d)[:, 0:1, :].reshape(tb, d)
        else:
            x_res = x
        q3 = _bf16(q_f)                                            # (tb, lq, 128)

        # multi-head attention with no sub-128-lane slices: zero the other
        # heads' lanes of Q (VPU mask), run full-lane contractions, mask the
        # P@V result into a lane-dense (rows, 128) context.
        ctx = jnp.zeros((tb, lq, d), jnp.float32)
        for hi in range(num_heads):
            s = jnp.einsum('bqd,bkd->bqk', q3 * m_b[hi], k3,
                           preferred_element_type=jnp.float32)     # (tb, lq, L)
            s = s + bias
            s = s - jnp.max(s, axis=-1, keepdims=True)
            p = jnp.exp(s)
            p = p / jnp.sum(p, axis=-1, keepdims=True)             # exact recip
            pv = jnp.einsum('bqk,bkd->bqd', _bf16(p), v3,
                            preferred_element_type=jnp.float32)    # (tb, lq, 128)
            ctx = ctx + pv * m_f[hi]
        attn = mm(_bf16(ctx.reshape(tb * lq, d)), wo_ref[li], bo_ref[li])

        h1 = _layer_norm(x_res + attn, g1, be1)
        f = jnp.maximum(mm(_bf16(h1), wf1_ref[li], bf1_ref[li]), 0.0)
        f = mm(_bf16(f), wf2_ref[li], bf2_ref[li])
        x = _layer_norm(h1 + f, g2, be2)                           # (tb*lq, 128)

    # pooling: index_select(dim=1, index=0) -> only TB rows go back to HBM
    o_ref[...] = x.reshape(tb, 1, d).astype(o_ref.dtype)


# --------------------------------------------------------------------------
# Deterministic parameter init (synthetic, not a checkpoint load).
# Matmul weights are stored in bf16 (MXU operand dtype); biases / LayerNorm
# affine params stay f32.
# --------------------------------------------------------------------------
def _lin_init(key, din, dout):
    k1, k2 = jax.random.split(key)
    bound = 1.0 / math.sqrt(din)
    w = jax.random.uniform(k1, (din, dout), jnp.float32, -bound, bound)
    b = jax.random.uniform(k2, (1, dout), jnp.float32, -bound, bound)
    return w, b


def init_params(key):
    keys = jax.random.split(key, 8 + NUM_LAYERS)
    p = {}

    # defect embedding: padding_idx=0 (row 0 zero), max_norm=1.0 applied at init
    # TODO(synk): PyTorch re-clips accessed rows per forward (max_norm); applied
    # once at init here, which is equivalent for frozen inference weights.
    emb = jax.random.normal(keys[0], (NDEFECTS, DEFECT_DIM), jnp.float32)
    norms = jnp.linalg.norm(emb, axis=-1, keepdims=True)
    emb = emb * jnp.minimum(1.0, 1.0 / jnp.maximum(norms, 1e-12))
    emb = emb.at[0].set(0.0)
    p['emb'] = emb

    # nominal_emb_1 (5 heads, shared fc) -> lane-aligned block-diagonal matmul;
    # the zero-nonlinearity chains  ne1.fc2 -> ne2.fc1  and  ne2.fc2 -> peak_emb
    # (dropout = identity in eval) are folded at init:
    #   wA = blockdiag(ne1.w1)              : (480, 640)
    #   wB = blockdiag(ne1.w2) @ ne2.w1     : (640, 128)  dense
    #   wC = ne2.w2 @ peak.w                : (128, 128)  dense
    d1 = IN_DIM // NHEADS1                               # 96
    w1a, b1a = _lin_init(keys[1], d1, MID_DIM)
    w2a, b2a = _lin_init(keys[2], MID_DIM, NOMINAL_DIM)
    d2 = (NOMINAL_DIM * NHEADS1) // NHEADS2              # 320
    w1b, b1b = _lin_init(keys[3], d2, MID_DIM)
    w2b, b2b = _lin_init(keys[4], MID_DIM, NOMINAL_DIM)
    wp, bp = _lin_init(keys[5], NOMINAL_DIM * NHEADS2, HIDDEN)

    eye1 = jnp.eye(NHEADS1, dtype=jnp.float32)
    wA = jnp.kron(eye1, w1a)                             # (480, 640)
    bA = jnp.tile(b1a, (1, NHEADS1))                     # (1, 640)
    w2bd = jnp.kron(eye1, w2a)                           # (640, 320)
    b2t = jnp.tile(b2a, (1, NHEADS1))                    # (1, 320)
    wB = w2bd @ w1b                                      # (640, 128)
    bB = b2t @ w1b + b1b                                 # (1, 128)
    wC = w2b @ wp                                        # (128, 128)
    bC = b2b @ wp + bp                                   # (1, 128)

    p['wA'] = wA.astype(jnp.bfloat16); p['bA'] = bA
    p['wB'] = wB.astype(jnp.bfloat16); p['bB'] = bB
    p['wC'] = wC.astype(jnp.bfloat16); p['bC'] = bC

    # encoder layers: fused QKV (scale folded into Q), stacked on a leading axis
    scale = 1.0 / math.sqrt(HEAD_DIM)
    wqkv, bqkv, wo, bo, wf1, bf1, wf2, bf2, ln = ([] for _ in range(9))
    for li in range(NUM_LAYERS):
        lk = jax.random.split(keys[6 + li], 6)
        wq, bq = _lin_init(lk[0], HIDDEN, HIDDEN)
        wk, bk = _lin_init(lk[1], HIDDEN, HIDDEN)
        wv, bv = _lin_init(lk[2], HIDDEN, HIDDEN)
        wo_l, bo_l = _lin_init(lk[3], HIDDEN, HIDDEN)
        wf1_l, bf1_l = _lin_init(lk[4], HIDDEN, FFN_DIM)
        wf2_l, bf2_l = _lin_init(lk[5], FFN_DIM, HIDDEN)
        wqkv.append(jnp.concatenate([wq * scale, wk, wv], 1).astype(jnp.bfloat16))
        bqkv.append(jnp.concatenate([bq * scale, bk, bv], 1))
        wo.append(wo_l.astype(jnp.bfloat16)); bo.append(bo_l)
        wf1.append(wf1_l.astype(jnp.bfloat16)); bf1.append(bf1_l)
        wf2.append(wf2_l.astype(jnp.bfloat16)); bf2.append(bf2_l)
        ln.append(jnp.stack([jnp.ones((HIDDEN,), jnp.float32),
                             jnp.zeros((HIDDEN,), jnp.float32),
                             jnp.ones((HIDDEN,), jnp.float32),
                             jnp.zeros((HIDDEN,), jnp.float32)], axis=0))
    p['wqkv'] = jnp.stack(wqkv); p['bqkv'] = jnp.stack(bqkv)
    p['wo'] = jnp.stack(wo); p['bo'] = jnp.stack(bo)
    p['wf1'] = jnp.stack(wf1); p['bf1'] = jnp.stack(bf1)
    p['wf2'] = jnp.stack(wf2); p['bf2'] = jnp.stack(bf2)
    p['ln'] = jnp.stack(ln)
    return p


# --------------------------------------------------------------------------
# Forward wrapper: one pallas_call for the whole model
# --------------------------------------------------------------------------
def _pick_row_tile(batch, seq_len, *, target_rows=512, min_steps=2):
    """Largest TB dividing batch with TB*seq_len <= target_rows while keeping at
    least `min_steps` grid steps (so both v7x TensorCores get work)."""
    best = 1
    for tb in range(1, batch + 1):
        if batch % tb:
            continue
        if tb * seq_len > target_rows:
            continue
        if batch // tb < min(min_steps, batch):
            continue
        best = tb
    return best


def _bcast_spec(shape):
    n = len(shape)
    return pl.BlockSpec(shape, lambda *_: (0,) * n)


def forward(params, x_idx, mask, *, target_rows=512):
    B, L, NN = x_idx.shape
    assert NN == NNOMINALS

    # defect embedding gather + flatten(start_dim=2): JAX glue (not a hot path)
    x = params['emb'][x_idx].reshape(B, L, NN * DEFECT_DIM)        # (B, L, 480)
    # additive key-padding bias precomputed once (True = masked key)
    bias = (mask.astype(jnp.float32) * jnp.float32(MASK_NEG)).reshape(B, 1, L)

    tb = _pick_row_tile(B, L, target_rows=target_rows)
    grid = (B // tb,)

    weights = (params['wA'], params['bA'], params['wB'], params['bB'],
               params['wC'], params['bC'],
               params['wqkv'], params['bqkv'], params['wo'], params['bo'],
               params['wf1'], params['bf1'], params['wf2'], params['bf2'],
               params['ln'])
    w_specs = [_bcast_spec(w.shape) for w in weights]

    kernel = functools.partial(fused_forward_kernel, tb=tb, seq_len=L,
                               num_heads=ATTN_HEADS, num_layers=NUM_LAYERS)
    return pl.pallas_call(
        kernel,
        out_shape=jax.ShapeDtypeStruct((B, 1, HIDDEN), jnp.float32),
        grid=grid,
        in_specs=[pl.BlockSpec((tb, L, NN * DEFECT_DIM), lambda b: (b, 0, 0)),
                  pl.BlockSpec((tb, 1, L), lambda b: (b, 0, 0))] + w_specs,
        out_specs=pl.BlockSpec((tb, 1, HIDDEN), lambda b: (b, 0, 0)),
        compiler_params=pltpu.CompilerParams(
            dimension_semantics=("parallel",)),
    )(x, bias, *weights)


# --------------------------------------------------------------------------
if __name__ == "__main__":
    key = jax.random.PRNGKey(0)
    kp, kx = jax.random.split(key)
    params = init_params(kp)

    B, L = 2, 8
    x_idx = jax.random.randint(kx, (B, L, NNOMINALS), 0, NDEFECTS, dtype=jnp.int32)
    # key padding mask: mask last two positions of batch 1
    mask = jnp.zeros((B, L), dtype=bool).at[1, L - 2:].set(True)

    out = forward(params, x_idx, mask)
    out = jax.block_until_ready(out)

    assert out.shape == (B, 1, HIDDEN), out.shape
    assert bool(jnp.all(jnp.isfinite(out)))
    print("KERNEL_OK")
</pallas_src>

<mosaic_0001>
module attributes {stable_mosaic.version = 11 : i64} {
  func.func @fused_forward_kernel(%arg0: i32, %arg1: memref<1x8x480xf32, #tpu.memory_space<vmem>>, %arg2: memref<1x1x8xf32, #tpu.memory_space<vmem>>, %arg3: memref<480x640xbf16, #tpu.memory_space<vmem>>, %arg4: memref<1x640xf32, #tpu.memory_space<vmem>>, %arg5: memref<640x128xbf16, #tpu.memory_space<vmem>>, %arg6: memref<1x128xf32, #tpu.memory_space<vmem>>, %arg7: memref<128x128xbf16, #tpu.memory_space<vmem>>, %arg8: memref<1x128xf32, #tpu.memory_space<vmem>>, %arg9: memref<2x128x384xbf16, #tpu.memory_space<vmem>>, %arg10: memref<2x1x384xf32, #tpu.memory_space<vmem>>, %arg11: memref<2x128x128xbf16, #tpu.memory_space<vmem>>, %arg12: memref<2x1x128xf32, #tpu.memory_space<vmem>>, %arg13: memref<2x128x256xbf16, #tpu.memory_space<vmem>>, %arg14: memref<2x1x256xf32, #tpu.memory_space<vmem>>, %arg15: memref<2x256x128xbf16, #tpu.memory_space<vmem>>, %arg16: memref<2x1x128xf32, #tpu.memory_space<vmem>>, %arg17: memref<2x4x128xf32, #tpu.memory_space<vmem>>, %arg18: memref<1x1x128xf32, #tpu.memory_space<vmem>>) attributes {dimension_semantics = [#tpu.dimension_semantics<parallel>], iteration_bounds = array<i64: 2>, scalar_prefetch = 0 : i64, scratch_operands = 0 : i64, tpu.core_type = #tpu.core_type<tc>, window_params = [{transform_indices = @transform_0, window_bounds = array<i64: 1, 8, 480>}, {transform_indices = @transform_1, window_bounds = array<i64: 1, 1, 8>}, {pipeline_mode = #tpu.pipeline_mode<synchronous>, transform_indices = @transform_2, window_bounds = array<i64: 480, 640>}, {pipeline_mode = #tpu.pipeline_mode<synchronous>, transform_indices = @transform_3, window_bounds = array<i64: 1, 640>}, {pipeline_mode = #tpu.pipeline_mode<synchronous>, transform_indices = @transform_4, window_bounds = array<i64: 640, 128>}, {pipeline_mode = #tpu.pipeline_mode<synchronous>, transform_indices = @transform_5, window_bounds = array<i64: 1, 128>}, {pipeline_mode = #tpu.pipeline_mode<synchronous>, transform_indices = @transform_6, window_bounds = array<i64: 128, 128>}, {pipeline_mode = #tpu.pipeline_mode<synchronous>, transform_indices = @transform_7, window_bounds = array<i64: 1, 128>}, {pipeline_mode = #tpu.pipeline_mode<synchronous>, transform_indices = @transform_8, window_bounds = array<i64: 2, 128, 384>}, {pipeline_mode = #tpu.pipeline_mode<synchronous>, transform_indices = @transform_9, window_bounds = array<i64: 2, 1, 384>}, {pipeline_mode = #tpu.pipeline_mode<synchronous>, transform_indices = @transform_10, window_bounds = array<i64: 2, 128, 128>}, {pipeline_mode = #tpu.pipeline_mode<synchronous>, transform_indices = @transform_11, window_bounds = array<i64: 2, 1, 128>}, {pipeline_mode = #tpu.pipeline_mode<synchronous>, transform_indices = @transform_12, window_bounds = array<i64: 2, 128, 256>}, {pipeline_mode = #tpu.pipeline_mode<synchronous>, transform_indices = @transform_13, window_bounds = array<i64: 2, 1, 256>}, {pipeline_mode = #tpu.pipeline_mode<synchronous>, transform_indices = @transform_14, window_bounds = array<i64: 2, 256, 128>}, {pipeline_mode = #tpu.pipeline_mode<synchronous>, transform_indices = @transform_15, window_bounds = array<i64: 2, 1, 128>}, {pipeline_mode = #tpu.pipeline_mode<synchronous>, transform_indices = @transform_16, window_bounds = array<i64: 2, 4, 128>}, {transform_indices = @transform_17, window_bounds = array<i64: 1, 1, 128>}]} {
    %c0 = arith.constant 0 : index
    %c0_0 = arith.constant 0 : index
    %c0_1 = arith.constant 0 : index
    %0 = vector.load %arg1[%c0, %c0_0, %c0_1] : memref<1x8x480xf32, #tpu.memory_space<vmem>>, vector<1x8x480xf32>
    %1 = vector.shape_cast %0 : vector<1x8x480xf32> to vector<8x480xf32>
    %c0_2 = arith.constant 0 : index
    %c0_3 = arith.constant 0 : index
    %c0_4 = arith.constant 0 : index
    %2 = vector.load %arg2[%c0_2, %c0_3, %c0_4] : memref<1x1x8xf32, #tpu.memory_space<vmem>>, vector<1x1x8xf32>
    %3 = arith.truncf %1 : vector<8x480xf32> to vector<8x480xbf16>
    %c0_5 = arith.constant 0 : index
    %c0_6 = arith.constant 0 : index
    %4 = vector.load %arg3[%c0_5, %c0_6] : memref<480x640xbf16, #tpu.memory_space<vmem>>, vector<480x640xbf16>
    %c0_7 = arith.constant 0 : index
    %c0_8 = arith.constant 0 : index
    %5 = vector.load %arg4[%c0_7, %c0_8] : memref<1x640xf32, #tpu.memory_space<vmem>>, vector<1x640xf32>
    %cst = arith.constant dense<0.000000e+00> : vector<8x640xf32>
    %6 = tpu.matmul %3, %4, %cst {dimension_numbers = #tpu.dot_dimension_numbers<[1], [0], [0], [1], [0, 0, 1, 1], [], []>} : vector<8x480xbf16>, vector<480x640xbf16>, vector<8x640xf32> -> vector<8x640xf32>
    %7 = vector.broadcast %5 : vector<1x640xf32> to vector<8x640xf32>
    %8 = arith.addf %6, %7 : vector<8x640xf32>
    %cst_9 = arith.constant 0.000000e+00 : f32
    %9 = vector.broadcast %cst_9 : f32 to vector<8x640xf32>
    %10 = arith.maximumf %8, %9 : vector<8x640xf32>
    %11 = arith.truncf %10 : vector<8x640xf32> to vector<8x640xbf16>
    %c0_10 = arith.constant 0 : index
    %c0_11 = arith.constant 0 : index
    %12 = vector.load %arg5[%c0_10, %c0_11] : memref<640x128xbf16, #tpu.memory_space<vmem>>, vector<640x128xbf16>
    %c0_12 = arith.constant 0 : index
    %c0_13 = arith.constant 0 : index
    %13 = vector.load %arg6[%c0_12, %c0_13] : memref<1x128xf32, #tpu.memory_space<vmem>>, vector<1x128xf32>
    %cst_14 = arith.constant dense<0.000000e+00> : vector<8x128xf32>
    %14 = tpu.matmul %11, %12, %cst_14 {dimension_numbers = #tpu.dot_dimension_numbers<[1], [0], [0], [1], [0, 0, 1, 1], [], []>} : vector<8x640xbf16>, vector<640x128xbf16>, vector<8x128xf32> -> vector<8x128xf32>
    %15 = vector.broadcast %13 : vector<1x128xf32> to vector<8x128xf32>
    %16 = arith.addf %14, %15 : vector<8x128xf32>
    %cst_15 = arith.constant 0.000000e+00 : f32
    %17 = vector.broadcast %cst_15 : f32 to vector<8x128xf32>
    %18 = arith.maximumf %16, %17 : vector<8x128xf32>
    %19 = arith.truncf %18 : vector<8x128xf32> to vector<8x128xbf16>
    %c0_16 = arith.constant 0 : index
    %c0_17 = arith.constant 0 : index
    %20 = vector.load %arg7[%c0_16, %c0_17] : memref<128x128xbf16, #tpu.memory_space<vmem>>, vector<128x128xbf16>
    %c0_18 = arith.constant 0 : index
    %c0_19 = arith.constant 0 : index
    %21 = vector.load %arg8[%c0_18, %c0_19] : memref<1x128xf32, #tpu.memory_space<vmem>>, vector<1x128xf32>
    %cst_20 = arith.constant dense<0.000000e+00> : vector<8x128xf32>
    %22 = tpu.matmul %19, %20, %cst_20 {dimension_numbers = #tpu.dot_dimension_numbers<[1], [0], [0], [1], [0, 0, 1, 1], [], []>} : vector<8x128xbf16>, vector<128x128xbf16>, vector<8x128xf32> -> vector<8x128xf32>
    %23 = vector.broadcast %21 : vector<1x128xf32> to vector<8x128xf32>
    %24 = arith.addf %22, %23 : vector<8x128xf32>
    %25 = tpu.iota {dimensions = array<i32: 1>} : vector<1x128xi32>
    %c0_i32 = arith.constant 0 : i32
    %26 = vector.broadcast %c0_i32 : i32 to vector<1x128xi32>
    %27 = arith.cmpi sge, %25, %26 : vector<1x128xi32>
    %c32_i32 = arith.constant 32 : i32
    %28 = vector.broadcast %c32_i32 : i32 to vector<1x128xi32>
    %29 = arith.cmpi slt, %25, %28 : vector<1x128xi32>
    %30 = arith.andi %27, %29 : vector<1x128xi1>
    %31 = arith.extui %30 : vector<1x128xi1> to vector<1x128xi32>
    %32 = arith.sitofp %31 : vector<1x128xi32> to vector<1x128xf32>
    %33 = arith.truncf %32 : vector<1x128xf32> to vector<1x128xbf16>
    %c32_i32_21 = arith.constant 32 : i32
    %34 = vector.broadcast %c32_i32_21 : i32 to vector<1x128xi32>
    %35 = arith.cmpi sge, %25, %34 : vector<1x128xi32>
    %c64_i32 = arith.constant 64 : i32
    %36 = vector.broadcast %c64_i32 : i32 to vector<1x128xi32>
    %37 = arith.cmpi slt, %25, %36 : vector<1x128xi32>
    %38 = arith.andi %35, %37 : vector<1x128xi1>
    %39 = arith.extui %38 : vector<1x128xi1> to vector<1x128xi32>
    %40 = arith.sitofp %39 : vector<1x128xi32> to vector<1x128xf32>
    %41 = arith.truncf %40 : vector<1x128xf32> to vector<1x128xbf16>
    %c64_i32_22 = arith.constant 64 : i32
    %42 = vector.broadcast %c64_i32_22 : i32 to vector<1x128xi32>
    %43 = arith.cmpi sge, %25, %42 : vector<1x128xi32>
    %c96_i32 = arith.constant 96 : i32
    %44 = vector.broadcast %c96_i32 : i32 to vector<1x128xi32>
    %45 = arith.cmpi slt, %25, %44 : vector<1x128xi32>
    %46 = arith.andi %43, %45 : vector<1x128xi1>
    %47 = arith.extui %46 : vector<1x128xi1> to vector<1x128xi32>
    %48 = arith.sitofp %47 : vector<1x128xi32> to vector<1x128xf32>
    %49 = arith.truncf %48 : vector<1x128xf32> to vector<1x128xbf16>
    %c96_i32_23 = arith.constant 96 : i32
    %50 = vector.broadcast %c96_i32_23 : i32 to vector<1x128xi32>
    %51 = arith.cmpi sge, %25, %50 : vector<1x128xi32>
    %c128_i32 = arith.constant 128 : i32
    %52 = vector.broadcast %c128_i32 : i32 to vector<1x128xi32>
    %53 = arith.cmpi slt, %25, %52 : vector<1x128xi32>
    %54 = arith.andi %51, %53 : vector<1x128xi1>
    %55 = arith.extui %54 : vector<1x128xi1> to vector<1x128xi32>
    %56 = arith.sitofp %55 : vector<1x128xi32> to vector<1x128xf32>
    %57 = arith.truncf %56 : vector<1x128xf32> to vector<1x128xbf16>
    %c0_i32_24 = arith.constant 0 : i32
    %58 = vector.broadcast %c0_i32_24 : i32 to vector<1x128xi32>
    %59 = arith.cmpi sge, %25, %58 : vector<1x128xi32>
    %c32_i32_25 = arith.constant 32 : i32
    %60 = vector.broadcast %c32_i32_25 : i32 to vector<1x128xi32>
    %61 = arith.cmpi slt, %25, %60 : vector<1x128xi32>
    %62 = arith.andi %59, %61 : vector<1x128xi1>
    %63 = arith.extui %62 : vector<1x128xi1> to vector<1x128xi32>
    %64 = arith.sitofp %63 : vector<1x128xi32> to vector<1x128xf32>
    %c32_i32_26 = arith.constant 32 : i32
    %65 = vector.broadcast %c32_i32_26 : i32 to vector<1x128xi32>
    %66 = arith.cmpi sge, %25, %65 : vector<1x128xi32>
    %c64_i32_27 = arith.constant 64 : i32
    %67 = vector.broadcast %c64_i32_27 : i32 to vector<1x128xi32>
    %68 = arith.cmpi slt, %25, %67 : vector<1x128xi32>
    %69 = arith.andi %66, %68 : vector<1x128xi1>
    %70 = arith.extui %69 : vector<1x128xi1> to vector<1x128xi32>
    %71 = arith.sitofp %70 : vector<1x128xi32> to vector<1x128xf32>
    %c64_i32_28 = arith.constant 64 : i32
    %72 = vector.broadcast %c64_i32_28 : i32 to vector<1x128xi32>
    %73 = arith.cmpi sge, %25, %72 : vector<1x128xi32>
    %c96_i32_29 = arith.constant 96 : i32
    %74 = vector.broadcast %c96_i32_29 : i32 to vector<1x128xi32>
    %75 = arith.cmpi slt, %25, %74 : vector<1x128xi32>
    %76 = arith.andi %73, %75 : vector<1x128xi1>
    %77 = arith.extui %76 : vector<1x128xi1> to vector<1x128xi32>
    %78 = arith.sitofp %77 : vector<1x128xi32> to vector<1x128xf32>
    %c96_i32_30 = arith.constant 96 : i32
    %79 = vector.broadcast %c96_i32_30 : i32 to vector<1x128xi32>
    %80 = arith.cmpi sge, %25, %79 : vector<1x128xi32>
    %c128_i32_31 = arith.constant 128 : i32
    %81 = vector.broadcast %c128_i32_31 : i32 to vector<1x128xi32>
    %82 = arith.cmpi slt, %25, %81 : vector<1x128xi32>
    %83 = arith.andi %80, %82 : vector<1x128xi1>
    %84 = arith.extui %83 : vector<1x128xi1> to vector<1x128xi32>
    %85 = arith.sitofp %84 : vector<1x128xi32> to vector<1x128xf32>
    %c0_32 = arith.constant 0 : index
    %c0_33 = arith.constant 0 : index
    %c0_34 = arith.constant 0 : index
    %86 = vector.load %arg17[%c0_32, %c0_33, %c0_34] : memref<2x4x128xf32, #tpu.memory_space<vmem>>, vector<1x4x128xf32>
    %87 = vector.shape_cast %86 : vector<1x4x128xf32> to vector<4x128xf32>
    %88 = vector.extract_strided_slice %87 {offsets = [0, 0], sizes = [1, 128], strides = [1, 1]} : vector<4x128xf32> to vector<1x128xf32>
    %89 = vector.extract_strided_slice %87 {offsets = [1, 0], sizes = [1, 128], strides = [1, 1]} : vector<4x128xf32> to vector<1x128xf32>
    %90 = vector.extract_strided_slice %87 {offsets = [2, 0], sizes = [1, 128], strides = [1, 1]} : vector<4x128xf32> to vector<1x128xf32>
    %91 = vector.extract_strided_slice %87 {offsets = [3, 0], sizes = [1, 128], strides = [1, 1]} : vector<4x128xf32> to vector<1x128xf32>
    %92 = arith.truncf %24 : vector<8x128xf32> to vector<8x128xbf16>
    %c0_35 = arith.constant 0 : index
    %c0_36 = arith.constant 0 : index
    %c0_37 = arith.constant 0 : index
    %93 = vector.load %arg9[%c0_35, %c0_36, %c0_37] : memref<2x128x384xbf16, #tpu.memory_space<vmem>>, vector<1x128x384xbf16>
    %94 = vector.shape_cast %93 : vector<1x128x384xbf16> to vector<128x384xbf16>
    %c0_38 = arith.constant 0 : index
    %c0_39 = arith.constant 0 : index
    %c0_40 = arith.constant 0 : index
    %95 = vector.load %arg10[%c0_38, %c0_39, %c0_40] : memref<2x1x384xf32, #tpu.memory_space<vmem>>, vector<1x1x384xf32>
    %96 = vector.shape_cast %95 : vector<1x1x384xf32> to vector<1x384xf32>
    %cst_41 = arith.constant dense<0.000000e+00> : vector<8x384xf32>
    %97 = tpu.matmul %92, %94, %cst_41 {dimension_numbers = #tpu.dot_dimension_numbers<[1], [0], [0], [1], [0, 0, 1, 1], [], []>} : vector<8x128xbf16>, vector<128x384xbf16>, vector<8x384xf32> -> vector<8x384xf32>
    %98 = vector.broadcast %96 : vector<1x384xf32> to vector<8x384xf32>
    %99 = arith.addf %97, %98 : vector<8x384xf32>
    %100 = vector.extract_strided_slice %99 {offsets = [0, 128], sizes = [8, 128], strides = [1, 1]} : vector<8x384xf32> to vector<8x128xf32>
    %101 = arith.truncf %100 : vector<8x128xf32> to vector<8x128xbf16>
    %102 = vector.shape_cast %101 : vector<8x128xbf16> to vector<1x8x128xbf16>
    %103 = vector.extract_strided_slice %99 {offsets = [0, 256], sizes = [8, 128], strides = [1, 1]} : vector<8x384xf32> to vector<8x128xf32>
    %104 = arith.truncf %103 : vector<8x128xf32> to vector<8x128xbf16>
    %105 = vector.shape_cast %104 : vector<8x128xbf16> to vector<1x8x128xbf16>
    %106 = vector.extract_strided_slice %99 {offsets = [0, 0], sizes = [8, 128], strides = [1, 1]} : vector<8x384xf32> to vector<8x128xf32>
    %107 = vector.shape_cast %106 : vector<8x128xf32> to vector<1x8x128xf32>
    %108 = arith.truncf %107 : vector<1x8x128xf32> to vector<1x8x128xbf16>
    %cst_42 = arith.constant 0.000000e+00 : f32
    %109 = vector.broadcast %cst_42 : f32 to vector<1x8x128xf32>
    %110 = vector.shape_cast %33 : vector<1x128xbf16> to vector<1x1x128xbf16>
    %111 = vector.broadcast %110 : vector<1x1x128xbf16> to vector<1x8x128xbf16>
    %112 = arith.mulf %108, %111 : vector<1x8x128xbf16>
    "tpu.trace_start"() <{level = 10 : i32, message = "bqd,bkd->bqk"}> : () -> ()
    %cst_43 = arith.constant dense<0.000000e+00> : vector<1x8x8xf32>
    %113 = tpu.matmul %112, %102, %cst_43 {dimension_numbers = #tpu.dot_dimension_numbers<[2], [2], [1], [1], [0, 0, 0, 1, 1, 1], [0], [0]>} : vector<1x8x128xbf16>, vector<1x8x128xbf16>, vector<1x8x8xf32> -> vector<1x8x8xf32>
    "tpu.trace_stop"() : () -> ()
    %114 = vector.broadcast %2 : vector<1x1x8xf32> to vector<1x8x8xf32>
    %115 = arith.addf %113, %114 : vector<1x8x8xf32>
    %cst_44 = arith.constant dense<0xFF800000> : vector<1x8xf32>
    %116 = vector.multi_reduction <maximumf>, %115, %cst_44 [2] : vector<1x8x8xf32> to vector<1x8xf32>
    %117 = vector.shape_cast %116 : vector<1x8xf32> to vector<1x8x1xf32>
    %118 = vector.broadcast %117 : vector<1x8x1xf32> to vector<1x8x8xf32>
    %119 = arith.subf %115, %118 : vector<1x8x8xf32>
    %120 = math.exp %119 : vector<1x8x8xf32>
    %cst_45 = arith.constant dense<0.000000e+00> : vector<1x8xf32>
    %121 = vector.multi_reduction <add>, %120, %cst_45 [2] : vector<1x8x8xf32> to vector<1x8xf32>
    %122 = vector.shape_cast %121 : vector<1x8xf32> to vector<1x8x1xf32>
    %123 = vector.broadcast %122 : vector<1x8x1xf32> to vector<1x8x8xf32>
    %124 = arith.divf %120, %123 : vector<1x8x8xf32>
    %125 = arith.truncf %124 : vector<1x8x8xf32> to vector<1x8x8xbf16>
    "tpu.trace_start"() <{level = 10 : i32, message = "bqk,bkd->bqd"}> : () -> ()
    %cst_46 = arith.constant dense<0.000000e+00> : vector<1x8x128xf32>
    %126 = tpu.matmul %125, %105, %cst_46 {dimension_numbers = #tpu.dot_dimension_numbers<[2], [1], [1], [2], [0, 0, 0, 1, 1, 2], [0], [0]>} : vector<1x8x8xbf16>, vector<1x8x128xbf16>, vector<1x8x128xf32> -> vector<1x8x128xf32>
    "tpu.trace_stop"() : () -> ()
    %127 = vector.shape_cast %64 : vector<1x128xf32> to vector<1x1x128xf32>
    %128 = vector.broadcast %127 : vector<1x1x128xf32> to vector<1x8x128xf32>
    %129 = arith.mulf %126, %128 : vector<1x8x128xf32>
    %130 = arith.addf %109, %129 : vector<1x8x128xf32>
    %131 = vector.shape_cast %41 : vector<1x128xbf16> to vector<1x1x128xbf16>
    %132 = vector.broadcast %131 : vector<1x1x128xbf16> to vector<1x8x128xbf16>
    %133 = arith.mulf %108, %132 : vector<1x8x128xbf16>
    "tpu.trace_start"() <{level = 10 : i32, message = "bqd,bkd->bqk"}> : () -> ()
    %cst_47 = arith.constant dense<0.000000e+00> : vector<1x8x8xf32>
    %134 = tpu.matmul %133, %102, %cst_47 {dimension_numbers = #tpu.dot_dimension_numbers<[2], [2], [1], [1], [0, 0, 0, 1, 1, 1], [0], [0]>} : vector<1x8x128xbf16>, vector<1x8x128xbf16>, vector<1x8x8xf32> -> vector<1x8x8xf32>
    "tpu.trace_stop"() : () -> ()
    %135 = vector.broadcast %2 : vector<1x1x8xf32> to vector<1x8x8xf32>
    %136 = arith.addf %134, %135 : vector<1x8x8xf32>
    %cst_48 = arith.constant dense<0xFF800000> : vector<1x8xf32>
    %137 = vector.multi_reduction <maximumf>, %136, %cst_48 [2] : vector<1x8x8xf32> to vector<1x8xf32>
    %138 = vector.shape_cast %137 : vector<1x8xf32> to vector<1x8x1xf32>
    %139 = vector.broadcast %138 : vector<1x8x1xf32> to vector<1x8x8xf32>
    %140 = arith.subf %136, %139 : vector<1x8x8xf32>
    %141 = math.exp %140 : vector<1x8x8xf32>
    %cst_49 = arith.constant dense<0.000000e+00> : vector<1x8xf32>
    %142 = vector.multi_reduction <add>, %141, %cst_49 [2] : vector<1x8x8xf32> to vector<1x8xf32>
    %143 = vector.shape_cast %142 : vector<1x8xf32> to vector<1x8x1xf32>
    %144 = vector.broadcast %143 : vector<1x8x1xf32> to vector<1x8x8xf32>
    %145 = arith.divf %141, %144 : vector<1x8x8xf32>
    %146 = arith.truncf %145 : vector<1x8x8xf32> to vector<1x8x8xbf16>
    "tpu.trace_start"() <{level = 10 : i32, message = "bqk,bkd->bqd"}> : () -> ()
    %cst_50 = arith.constant dense<0.000000e+00> : vector<1x8x128xf32>
    %147 = tpu.matmul %146, %105, %cst_50 {dimension_numbers = #tpu.dot_dimension_numbers<[2], [1], [1], [2], [0, 0, 0, 1, 1, 2], [0], [0]>} : vector<1x8x8xbf16>, vector<1x8x128xbf16>, vector<1x8x128xf32> -> vector<1x8x128xf32>
    "tpu.trace_stop"() : () -> ()
    %148 = vector.shape_cast %71 : vector<1x128xf32> to vector<1x1x128xf32>
    %149 = vector.broadcast %148 : vector<1x1x128xf32> to vector<1x8x128xf32>
    %150 = arith.mulf %147, %149 : vector<1x8x128xf32>
    %151 = arith.addf %130, %150 : vector<1x8x128xf32>
    %152 = vector.shape_cast %49 : vector<1x128xbf16> to vector<1x1x128xbf16>
    %153 = vector.broadcast %152 : vector<1x1x128xbf16> to vector<1x8x128xbf16>
    %154 = arith.mulf %108, %153 : vector<1x8x128xbf16>
    "tpu.trace_start"() <{level = 10 : i32, message = "bqd,bkd->bqk"}> : () -> ()
    %cst_51 = arith.constant dense<0.000000e+00> : vector<1x8x8xf32>
    %155 = tpu.matmul %154, %102, %cst_51 {dimension_numbers = #tpu.dot_dimension_numbers<[2], [2], [1], [1], [0, 0, 0, 1, 1, 1], [0], [0]>} : vector<1x8x128xbf16>, vector<1x8x128xbf16>, vector<1x8x8xf32> -> vector<1x8x8xf32>
    "tpu.trace_stop"() : () -> ()
    %156 = vector.broadcast %2 : vector<1x1x8xf32> to vector<1x8x8xf32>
    %157 = arith.addf %155, %156 : vector<1x8x8xf32>
    %cst_52 = arith.constant dense<0xFF800000> : vector<1x8xf32>
    %158 = vector.multi_reduction <maximumf>, %157, %cst_52 [2] : vector<1x8x8xf32> to vector<1x8xf32>
    %159 = vector.shape_cast %158 : vector<1x8xf32> to vector<1x8x1xf32>
    %160 = vector.broadcast %159 : vector<1x8x1xf32> to vector<1x8x8xf32>
    %161 = arith.subf %157, %160 : vector<1x8x8xf32>
    %162 = math.exp %161 : vector<1x8x8xf32>
    %cst_53 = arith.constant dense<0.000000e+00> : vector<1x8xf32>
    %163 = vector.multi_reduction <add>, %162, %cst_53 [2] : vector<1x8x8xf32> to vector<1x8xf32>
    %164 = vector.shape_cast %163 : vector<1x8xf32> to vector<1x8x1xf32>
    %165 = vector.broadcast %164 : vector<1x8x1xf32> to vector<1x8x8xf32>
    %166 = arith.divf %162, %165 : vector<1x8x8xf32>
    %167 = arith.truncf %166 : vector<1x8x8xf32> to vector<1x8x8xbf16>
    "tpu.trace_start"() <{level = 10 : i32, message = "bqk,bkd->bqd"}> : () -> ()
    %cst_54 = arith.constant dense<0.000000e+00> : vector<1x8x128xf32>
    %168 = tpu.matmul %167, %105, %cst_54 {dimension_numbers = #tpu.dot_dimension_numbers<[2], [1], [1], [2], [0, 0, 0, 1, 1, 2], [0], [0]>} : vector<1x8x8xbf16>, vector<1x8x128xbf16>, vector<1x8x128xf32> -> vector<1x8x128xf32>
    "tpu.trace_stop"() : () -> ()
    %169 = vector.shape_cast %78 : vector<1x128xf32> to vector<1x1x128xf32>
    %170 = vector.broadcast %169 : vector<1x1x128xf32> to vector<1x8x128xf32>
    %171 = arith.mulf %168, %170 : vector<1x8x128xf32>
    %172 = arith.addf %151, %171 : vector<1x8x128xf32>
    %173 = vector.shape_cast %57 : vector<1x128xbf16> to vector<1x1x128xbf16>
    %174 = vector.broadcast %173 : vector<1x1x128xbf16> to vector<1x8x128xbf16>
    %175 = arith.mulf %108, %174 : vector<1x8x128xbf16>
    "tpu.trace_start"() <{level = 10 : i32, message = "bqd,bkd->bqk"}> : () -> ()
    %cst_55 = arith.constant dense<0.000000e+00> : vector<1x8x8xf32>
    %176 = tpu.matmul %175, %102, %cst_55 {dimension_numbers = #tpu.dot_dimension_numbers<[2], [2], [1], [1], [0, 0, 0, 1, 1, 1], [0], [0]>} : vector<1x8x128xbf16>, vector<1x8x128xbf16>, vector<1x8x8xf32> -> vector<1x8x8xf32>
    "tpu.trace_stop"() : () -> ()
    %177 = vector.broadcast %2 : vector<1x1x8xf32> to vector<1x8x8xf32>
    %178 = arith.addf %176, %177 : vector<1x8x8xf32>
    %cst_56 = arith.constant dense<0xFF800000> : vector<1x8xf32>
    %179 = vector.multi_reduction <maximumf>, %178, %cst_56 [2] : vector<1x8x8xf32> to vector<1x8xf32>
    %180 = vector.shape_cast %179 : vector<1x8xf32> to vector<1x8x1xf32>
    %181 = vector.broadcast %180 : vector<1x8x1xf32> to vector<1x8x8xf32>
    %182 = arith.subf %178, %181 : vector<1x8x8xf32>
    %183 = math.exp %182 : vector<1x8x8xf32>
    %cst_57 = arith.constant dense<0.000000e+00> : vector<1x8xf32>
    %184 = vector.multi_reduction <add>, %183, %cst_57 [2] : vector<1x8x8xf32> to vector<1x8xf32>
    %185 = vector.shape_cast %184 : vector<1x8xf32> to vector<1x8x1xf32>
    %186 = vector.broadcast %185 : vector<1x8x1xf32> to vector<1x8x8xf32>
    %187 = arith.divf %183, %186 : vector<1x8x8xf32>
    %188 = arith.truncf %187 : vector<1x8x8xf32> to vector<1x8x8xbf16>
    "tpu.trace_start"() <{level = 10 : i32, message = "bqk,bkd->bqd"}> : () -> ()
    %cst_58 = arith.constant dense<0.000000e+00> : vector<1x8x128xf32>
    %189 = tpu.matmul %188, %105, %cst_58 {dimension_numbers = #tpu.dot_dimension_numbers<[2], [1], [1], [2], [0, 0, 0, 1, 1, 2], [0], [0]>} : vector<1x8x8xbf16>, vector<1x8x128xbf16>, vector<1x8x128xf32> -> vector<1x8x128xf32>
    "tpu.trace_stop"() : () -> ()
    %190 = vector.shape_cast %85 : vector<1x128xf32> to vector<1x1x128xf32>
    %191 = vector.broadcast %190 : vector<1x1x128xf32> to vector<1x8x128xf32>
    %192 = arith.mulf %189, %191 : vector<1x8x128xf32>
    %193 = arith.addf %172, %192 : vector<1x8x128xf32>
    %194 = vector.shape_cast %193 : vector<1x8x128xf32> to vector<8x128xf32>
    %195 = arith.truncf %194 : vector<8x128xf32> to vector<8x128xbf16>
    %c0_59 = arith.constant 0 : index
    %c0_60 = arith.constant 0 : index
    %c0_61 = arith.constant 0 : index
    %196 = vector.load %arg11[%c0_59, %c0_60, %c0_61] : memref<2x128x128xbf16, #tpu.memory_space<vmem>>, vector<1x128x128xbf16>
    %197 = vector.shape_cast %196 : vector<1x128x128xbf16> to vector<128x128xbf16>
    %c0_62 = arith.constant 0 : index
    %c0_63 = arith.constant 0 : index
    %c0_64 = arith.constant 0 : index
    %198 = vector.load %arg12[%c0_62, %c0_63, %c0_64] : memref<2x1x128xf32, #tpu.memory_space<vmem>>, vector<1x1x128xf32>
    %199 = vector.shape_cast %198 : vector<1x1x128xf32> to vector<1x128xf32>
    %cst_65 = arith.constant dense<0.000000e+00> : vector<8x128xf32>
    %200 = tpu.matmul %195, %197, %cst_65 {dimension_numbers = #tpu.dot_dimension_numbers<[1], [0], [0], [1], [0, 0, 1, 1], [], []>} : vector<8x128xbf16>, vector<128x128xbf16>, vector<8x128xf32> -> vector<8x128xf32>
    %201 = vector.broadcast %199 : vector<1x128xf32> to vector<8x128xf32>
    %202 = arith.addf %200, %201 : vector<8x128xf32>
    %203 = arith.addf %24, %202 : vector<8x128xf32>
    %cst_66 = arith.constant dense<0.000000e+00> : vector<8xf32>
    %204 = vector.multi_reduction <add>, %203, %cst_66 [1] : vector<8x128xf32> to vector<8xf32>
    %205 = vector.shape_cast %204 : vector<8xf32> to vector<8x1xf32>
    %206 = arith.mulf %203, %203 : vector<8x128xf32>
    %cst_67 = arith.constant dense<0.000000e+00> : vector<8xf32>
    %207 = vector.multi_reduction <add>, %206, %cst_67 [1] : vector<8x128xf32> to vector<8xf32>
    %208 = vector.shape_cast %207 : vector<8xf32> to vector<8x1xf32>
    %cst_68 = arith.constant 1.280000e+02 : f32
    %209 = vector.broadcast %cst_68 : f32 to vector<8x1xf32>
    %210 = arith.divf %205, %209 : vector<8x1xf32>
    %cst_69 = arith.constant 1.280000e+02 : f32
    %211 = vector.broadcast %cst_69 : f32 to vector<8x1xf32>
    %212 = arith.divf %208, %211 : vector<8x1xf32>
    %213 = arith.mulf %210, %210 : vector<8x1xf32>
    %214 = arith.subf %212, %213 : vector<8x1xf32>
    %215 = vector.broadcast %210 : vector<8x1xf32> to vector<8x128xf32>
    %216 = arith.subf %203, %215 : vector<8x128xf32>
    %cst_70 = arith.constant 9.99999974E-6 : f32
    %217 = vector.broadcast %cst_70 : f32 to vector<8x1xf32>
    %218 = arith.addf %214, %217 : vector<8x1xf32>
    %219 = math.rsqrt %218 : vector<8x1xf32>
    %220 = vector.broadcast %219 : vector<8x1xf32> to vector<8x128xf32>
    %221 = arith.mulf %216, %220 : vector<8x128xf32>
    %222 = vector.broadcast %88 : vector<1x128xf32> to vector<8x128xf32>
    %223 = arith.mulf %221, %222 : vector<8x128xf32>
    %224 = vector.broadcast %89 : vector<1x128xf32> to vector<8x128xf32>
    %225 = arith.addf %223, %224 : vector<8x128xf32>
    %226 = arith.truncf %225 : vector<8x128xf32> to vector<8x128xbf16>
    %c0_71 = arith.constant 0 : index
    %c0_72 = arith.constant 0 : index
    %c0_73 = arith.constant 0 : index
    %227 = vector.load %arg13[%c0_71, %c0_72, %c0_73] : memref<2x128x256xbf16, #tpu.memory_space<vmem>>, vector<1x128x256xbf16>
    %228 = vector.shape_cast %227 : vector<1x128x256xbf16> to vector<128x256xbf16>
    %c0_74 = arith.constant 0 : index
    %c0_75 = arith.constant 0 : index
    %c0_76 = arith.constant 0 : index
    %229 = vector.load %arg14[%c0_74, %c0_75, %c0_76] : memref<2x1x256xf32, #tpu.memory_space<vmem>>, vector<1x1x256xf32>
    %230 = vector.shape_cast %229 : vector<1x1x256xf32> to vector<1x256xf32>
    %cst_77 = arith.constant dense<0.000000e+00> : vector<8x256xf32>
    %231 = tpu.matmul %226, %228, %cst_77 {dimension_numbers = #tpu.dot_dimension_numbers<[1], [0], [0], [1], [0, 0, 1, 1], [], []>} : vector<8x128xbf16>, vector<128x256xbf16>, vector<8x256xf32> -> vector<8x256xf32>
    %232 = vector.broadcast %230 : vector<1x256xf32> to vector<8x256xf32>
    %233 = arith.addf %231, %232 : vector<8x256xf32>
    %cst_78 = arith.constant 0.000000e+00 : f32
    %234 = vector.broadcast %cst_78 : f32 to vector<8x256xf32>
    %235 = arith.maximumf %233, %234 : vector<8x256xf32>
    %236 = arith.truncf %235 : vector<8x256xf32> to vector<8x256xbf16>
    %c0_79 = arith.constant 0 : index
    %c0_80 = arith.constant 0 : index
    %c0_81 = arith.constant 0 : index
    %237 = vector.load %arg15[%c0_79, %c0_80, %c0_81] : memref<2x256x128xbf16, #tpu.memory_space<vmem>>, vector<1x256x128xbf16>
    %238 = vector.shape_cast %237 : vector<1x256x128xbf16> to vector<256x128xbf16>
    %c0_82 = arith.constant 0 : index
    %c0_83 = arith.constant 0 : index
    %c0_84 = arith.constant 0 : index
    %239 = vector.load %arg16[%c0_82, %c0_83, %c0_84] : memref<2x1x128xf32, #tpu.memory_space<vmem>>, vector<1x1x128xf32>
    %240 = vector.shape_cast %239 : vector<1x1x128xf32> to vector<1x128xf32>
    %cst_85 = arith.constant dense<0.000000e+00> : vector<8x128xf32>
    %241 = tpu.matmul %236, %238, %cst_85 {dimension_numbers = #tpu.dot_dimension_numbers<[1], [0], [0], [1], [0, 0, 1, 1], [], []>} : vector<8x256xbf16>, vector<256x128xbf16>, vector<8x128xf32> -> vector<8x128xf32>
    %242 = vector.broadcast %240 : vector<1x128xf32> to vector<8x128xf32>
    %243 = arith.addf %241, %242 : vector<8x128xf32>
    %244 = arith.addf %225, %243 : vector<8x128xf32>
    %cst_86 = arith.constant dense<0.000000e+00> : vector<8xf32>
    %245 = vector.multi_reduction <add>, %244, %cst_86 [1] : vector<8x128xf32> to vector<8xf32>
    %246 = vector.shape_cast %245 : vector<8xf32> to vector<8x1xf32>
    %247 = arith.mulf %244, %244 : vector<8x128xf32>
    %cst_87 = arith.constant dense<0.000000e+00> : vector<8xf32>
    %248 = vector.multi_reduction <add>, %247, %cst_87 [1] : vector<8x128xf32> to vector<8xf32>
    %249 = vector.shape_cast %248 : vector<8xf32> to vector<8x1xf32>
    %cst_88 = arith.constant 1.280000e+02 : f32
    %250 = vector.broadcast %cst_88 : f32 to vector<8x1xf32>
    %251 = arith.divf %246, %250 : vector<8x1xf32>
    %cst_89 = arith.constant 1.280000e+02 : f32
    %252 = vector.broadcast %cst_89 : f32 to vector<8x1xf32>
    %253 = arith.divf %249, %252 : vector<8x1xf32>
    %254 = arith.mulf %251, %251 : vector<8x1xf32>
    %255 = arith.subf %253, %254 : vector<8x1xf32>
    %256 = vector.broadcast %251 : vector<8x1xf32> to vector<8x128xf32>
    %257 = arith.subf %244, %256 : vector<8x128xf32>
    %cst_90 = arith.constant 9.99999974E-6 : f32
    %258 = vector.broadcast %cst_90 : f32 to vector<8x1xf32>
    %259 = arith.addf %255, %258 : vector<8x1xf32>
    %260 = math.rsqrt %259 : vector<8x1xf32>
    %261 = vector.broadcast %260 : vector<8x1xf32> to vector<8x128xf32>
    %262 = arith.mulf %257, %261 : vector<8x128xf32>
    %263 = vector.broadcast %90 : vector<1x128xf32> to vector<8x128xf32>
    %264 = arith.mulf %262, %263 : vector<8x128xf32>
    %265 = vector.broadcast %91 : vector<1x128xf32> to vector<8x128xf32>
    %266 = arith.addf %264, %265 : vector<8x128xf32>
    %c1 = arith.constant 1 : index
    %c0_91 = arith.constant 0 : index
    %c0_92 = arith.constant 0 : index
    %267 = vector.load %arg17[%c1, %c0_91, %c0_92] : memref<2x4x128xf32, #tpu.memory_space<vmem>>, vector<1x4x128xf32>
    %268 = vector.shape_cast %267 : vector<1x4x128xf32> to vector<4x128xf32>
    %269 = vector.extract_strided_slice %268 {offsets = [0, 0], sizes = [1, 128], strides = [1, 1]} : vector<4x128xf32> to vector<1x128xf32>
    %270 = vector.extract_strided_slice %268 {offsets = [1, 0], sizes = [1, 128], strides = [1, 1]} : vector<4x128xf32> to vector<1x128xf32>
    %271 = vector.extract_strided_slice %268 {offsets = [2, 0], sizes = [1, 128], strides = [1, 1]} : vector<4x128xf32> to vector<1x128xf32>
    %272 = vector.extract_strided_slice %268 {offsets = [3, 0], sizes = [1, 128], strides = [1, 1]} : vector<4x128xf32> to vector<1x128xf32>
    %273 = arith.truncf %266 : vector<8x128xf32> to vector<8x128xbf16>
    %c1_93 = arith.constant 1 : index
    %c0_94 = arith.constant 0 : index
    %c0_95 = arith.constant 0 : index
    %274 = vector.load %arg9[%c1_93, %c0_94, %c0_95] : memref<2x128x384xbf16, #tpu.memory_space<vmem>>, vector<1x128x384xbf16>
    %275 = vector.shape_cast %274 : vector<1x128x384xbf16> to vector<128x384xbf16>
    %c1_96 = arith.constant 1 : index
    %c0_97 = arith.constant 0 : index
    %c0_98 = arith.constant 0 : index
    %276 = vector.load %arg10[%c1_96, %c0_97, %c0_98] : memref<2x1x384xf32, #tpu.memory_space<vmem>>, vector<1x1x384xf32>
    %277 = vector.shape_cast %276 : vector<1x1x384xf32> to vector<1x384xf32>
    %cst_99 = arith.constant dense<0.000000e+00> : vector<8x384xf32>
    %278 = tpu.matmul %273, %275, %cst_99 {dimension_numbers = #tpu.dot_dimension_numbers<[1], [0], [0], [1], [0, 0, 1, 1], [], []>} : vector<8x128xbf16>, vector<128x384xbf16>, vector<8x384xf32> -> vector<8x384xf32>
    %279 = vector.broadcast %277 : vector<1x384xf32> to vector<8x384xf32>
    %280 = arith.addf %278, %279 : vector<8x384xf32>
    %281 = vector.extract_strided_slice %280 {offsets = [0, 128], sizes = [8, 128], strides = [1, 1]} : vector<8x384xf32> to vector<8x128xf32>
    %282 = arith.truncf %281 : vector<8x128xf32> to vector<8x128xbf16>
    %283 = vector.shape_cast %282 : vector<8x128xbf16> to vector<1x8x128xbf16>
    %284 = vector.extract_strided_slice %280 {offsets = [0, 256], sizes = [8, 128], strides = [1, 1]} : vector<8x384xf32> to vector<8x128xf32>
    %285 = arith.truncf %284 : vector<8x128xf32> to vector<8x128xbf16>
    %286 = vector.shape_cast %285 : vector<8x128xbf16> to vector<1x8x128xbf16>
    %287 = vector.extract_strided_slice %280 {offsets = [0, 0], sizes = [8, 128], strides = [1, 1]} : vector<8x384xf32> to vector<8x128xf32>
    %288 = vector.shape_cast %287 : vector<8x128xf32> to vector<1x8x128xf32>
    %289 = vector.extract_strided_slice %288 {offsets = [0, 0, 0], sizes = [1, 1, 128], strides = [1, 1, 1]} : vector<1x8x128xf32> to vector<1x1x128xf32>
    %290 = vector.shape_cast %266 : vector<8x128xf32> to vector<1x8x128xf32>
    %291 = vector.extract_strided_slice %290 {offsets = [0, 0, 0], sizes = [1, 1, 128], strides = [1, 1, 1]} : vector<1x8x128xf32> to vector<1x1x128xf32>
    %292 = vector.shape_cast %291 : vector<1x1x128xf32> to vector<1x128xf32>
    %293 = arith.truncf %289 : vector<1x1x128xf32> to vector<1x1x128xbf16>
    %cst_100 = arith.constant 0.000000e+00 : f32
    %294 = vector.broadcast %cst_100 : f32 to vector<1x1x128xf32>
    %295 = vector.shape_cast %33 : vector<1x128xbf16> to vector<1x1x128xbf16>
    %296 = arith.mulf %293, %295 : vector<1x1x128xbf16>
    "tpu.trace_start"() <{level = 10 : i32, message = "bqd,bkd->bqk"}> : () -> ()
    %cst_101 = arith.constant dense<0.000000e+00> : vector<1x1x8xf32>
    %297 = tpu.matmul %296, %283, %cst_101 {dimension_numbers = #tpu.dot_dimension_numbers<[2], [2], [1], [1], [0, 0, 0, 1, 1, 1], [0], [0]>} : vector<1x1x128xbf16>, vector<1x8x128xbf16>, vector<1x1x8xf32> -> vector<1x1x8xf32>
    "tpu.trace_stop"() : () -> ()
    %298 = arith.addf %297, %2 : vector<1x1x8xf32>
    %cst_102 = arith.constant dense<0xFF800000> : vector<1x1xf32>
    %299 = vector.multi_reduction <maximumf>, %298, %cst_102 [2] : vector<1x1x8xf32> to vector<1x1xf32>
    %300 = vector.shape_cast %299 : vector<1x1xf32> to vector<1x1x1xf32>
    %301 = vector.broadcast %300 : vector<1x1x1xf32> to vector<1x1x8xf32>
    %302 = arith.subf %298, %301 : vector<1x1x8xf32>
    %303 = math.exp %302 : vector<1x1x8xf32>
    %cst_103 = arith.constant dense<0.000000e+00> : vector<1x1xf32>
    %304 = vector.multi_reduction <add>, %303, %cst_103 [2] : vector<1x1x8xf32> to vector<1x1xf32>
    %305 = vector.shape_cast %304 : vector<1x1xf32> to vector<1x1x1xf32>
    %306 = vector.broadcast %305 : vector<1x1x1xf32> to vector<1x1x8xf32>
    %307 = arith.divf %303, %306 : vector<1x1x8xf32>
    %308 = arith.truncf %307 : vector<1x1x8xf32> to vector<1x1x8xbf16>
    "tpu.trace_start"() <{level = 10 : i32, message = "bqk,bkd->bqd"}> : () -> ()
    %cst_104 = arith.constant dense<0.000000e+00> : vector<1x1x128xf32>
    %309 = tpu.matmul %308, %286, %cst_104 {dimension_numbers = #tpu.dot_dimension_numbers<[2], [1], [1], [2], [0, 0, 0, 1, 1, 2], [0], [0]>} : vector<1x1x8xbf16>, vector<1x8x128xbf16>, vector<1x1x128xf32> -> vector<1x1x128xf32>
    "tpu.trace_stop"() : () -> ()
    %310 = vector.shape_cast %64 : vector<1x128xf32> to vector<1x1x128xf32>
    %311 = arith.mulf %309, %310 : vector<1x1x128xf32>
    %312 = arith.addf %294, %311 : vector<1x1x128xf32>
    %313 = vector.shape_cast %41 : vector<1x128xbf16> to vector<1x1x128xbf16>
    %314 = arith.mulf %293, %313 : vector<1x1x128xbf16>
    "tpu.trace_start"() <{level = 10 : i32, message = "bqd,bkd->bqk"}> : () -> ()
    %cst_105 = arith.constant dense<0.000000e+00> : vector<1x1x8xf32>
    %315 = tpu.matmul %314, %283, %cst_105 {dimension_numbers = #tpu.dot_dimension_numbers<[2], [2], [1], [1], [0, 0, 0, 1, 1, 1], [0], [0]>} : vector<1x1x128xbf16>, vector<1x8x128xbf16>, vector<1x1x8xf32> -> vector<1x1x8xf32>
    "tpu.trace_stop"() : () -> ()
    %316 = arith.addf %315, %2 : vector<1x1x8xf32>
    %cst_106 = arith.constant dense<0xFF800000> : vector<1x1xf32>
    %317 = vector.multi_reduction <maximumf>, %316, %cst_106 [2] : vector<1x1x8xf32> to vector<1x1xf32>
    %318 = vector.shape_cast %317 : vector<1x1xf32> to vector<1x1x1xf32>
    %319 = vector.broadcast %318 : vector<1x1x1xf32> to vector<1x1x8xf32>
    %320 = arith.subf %316, %319 : vector<1x1x8xf32>
    %321 = math.exp %320 : vector<1x1x8xf32>
    %cst_107 = arith.constant dense<0.000000e+00> : vector<1x1xf32>
    %322 = vector.multi_reduction <add>, %321, %cst_107 [2] : vector<1x1x8xf32> to vector<1x1xf32>
    %323 = vector.shape_cast %322 : vector<1x1xf32> to vector<1x1x1xf32>
    %324 = vector.broadcast %323 : vector<1x1x1xf32> to vector<1x1x8xf32>
    %325 = arith.divf %321, %324 : vector<1x1x8xf32>
    %326 = arith.truncf %325 : vector<1x1x8xf32> to vector<1x1x8xbf16>
    "tpu.trace_start"() <{level = 10 : i32, message = "bqk,bkd->bqd"}> : () -> ()
    %cst_108 = arith.constant dense<0.000000e+00> : vector<1x1x128xf32>
    %327 = tpu.matmul %326, %286, %cst_108 {dimension_numbers = #tpu.dot_dimension_numbers<[2], [1], [1], [2], [0, 0, 0, 1, 1, 2], [0], [0]>} : vector<1x1x8xbf16>, vector<1x8x128xbf16>, vector<1x1x128xf32> -> vector<1x1x128xf32>
    "tpu.trace_stop"() : () -> ()
    %328 = vector.shape_cast %71 : vector<1x128xf32> to vector<1x1x128xf32>
    %329 = arith.mulf %327, %328 : vector<1x1x128xf32>
    %330 = arith.addf %312, %329 : vector<1x1x128xf32>
    %331 = vector.shape_cast %49 : vector<1x128xbf16> to vector<1x1x128xbf16>
    %332 = arith.mulf %293, %331 : vector<1x1x128xbf16>
    "tpu.trace_start"() <{level = 10 : i32, message = "bqd,bkd->bqk"}> : () -> ()
    %cst_109 = arith.constant dense<0.000000e+00> : vector<1x1x8xf32>
    %333 = tpu.matmul %332, %283, %cst_109 {dimension_numbers = #tpu.dot_dimension_numbers<[2], [2], [1], [1], [0, 0, 0, 1, 1, 1], [0], [0]>} : vector<1x1x128xbf16>, vector<1x8x128xbf16>, vector<1x1x8xf32> -> vector<1x1x8xf32>
    "tpu.trace_stop"() : () -> ()
    %334 = arith.addf %333, %2 : vector<1x1x8xf32>
    %cst_110 = arith.constant dense<0xFF800000> : vector<1x1xf32>
    %335 = vector.multi_reduction <maximumf>, %334, %cst_110 [2] : vector<1x1x8xf32> to vector<1x1xf32>
    %336 = vector.shape_cast %335 : vector<1x1xf32> to vector<1x1x1xf32>
    %337 = vector.broadcast %336 : vector<1x1x1xf32> to vector<1x1x8xf32>
    %338 = arith.subf %334, %337 : vector<1x1x8xf32>
    %339 = math.exp %338 : vector<1x1x8xf32>
    %cst_111 = arith.constant dense<0.000000e+00> : vector<1x1xf32>
    %340 = vector.multi_reduction <add>, %339, %cst_111 [2] : vector<1x1x8xf32> to vector<1x1xf32>
    %341 = vector.shape_cast %340 : vector<1x1xf32> to vector<1x1x1xf32>
    %342 = vector.broadcast %341 : vector<1x1x1xf32> to vector<1x1x8xf32>
    %343 = arith.divf %339, %342 : vector<1x1x8xf32>
    %344 = arith.truncf %343 : vector<1x1x8xf32> to vector<1x1x8xbf16>
    "tpu.trace_start"() <{level = 10 : i32, message = "bqk,bkd->bqd"}> : () -> ()
    %cst_112 = arith.constant dense<0.000000e+00> : vector<1x1x128xf32>
    %345 = tpu.matmul %344, %286, %cst_112 {dimension_numbers = #tpu.dot_dimension_numbers<[2], [1], [1], [2], [0, 0, 0, 1, 1, 2], [0], [0]>} : vector<1x1x8xbf16>, vector<1x8x128xbf16>, vector<1x1x128xf32> -> vector<1x1x128xf32>
    "tpu.trace_stop"() : () -> ()
    %346 = vector.shape_cast %78 : vector<1x128xf32> to vector<1x1x128xf32>
    %347 = arith.mulf %345, %346 : vector<1x1x128xf32>
    %348 = arith.addf %330, %347 : vector<1x1x128xf32>
    %349 = vector.shape_cast %57 : vector<1x128xbf16> to vector<1x1x128xbf16>
    %350 = arith.mulf %293, %349 : vector<1x1x128xbf16>
    "tpu.trace_start"() <{level = 10 : i32, message = "bqd,bkd->bqk"}> : () -> ()
    %cst_113 = arith.constant dense<0.000000e+00> : vector<1x1x8xf32>
    %351 = tpu.matmul %350, %283, %cst_113 {dimension_numbers = #tpu.dot_dimension_numbers<[2], [2], [1], [1], [0, 0, 0, 1, 1, 1], [0], [0]>} : vector<1x1x128xbf16>, vector<1x8x128xbf16>, vector<1x1x8xf32> -> vector<1x1x8xf32>
    "tpu.trace_stop"() : () -> ()
    %352 = arith.addf %351, %2 : vector<1x1x8xf32>
    %cst_114 = arith.constant dense<0xFF800000> : vector<1x1xf32>
    %353 = vector.multi_reduction <maximumf>, %352, %cst_114 [2] : vector<1x1x8xf32> to vector<1x1xf32>
    %354 = vector.shape_cast %353 : vector<1x1xf32> to vector<1x1x1xf32>
    %355 = vector.broadcast %354 : vector<1x1x1xf32> to vector<1x1x8xf32>
    %356 = arith.subf %352, %355 : vector<1x1x8xf32>
    %357 = math.exp %356 : vector<1x1x8xf32>
    %cst_115 = arith.constant dense<0.000000e+00> : vector<1x1xf32>
    %358 = vector.multi_reduction <add>, %357, %cst_115 [2] : vector<1x1x8xf32> to vector<1x1xf32>
    %359 = vector.shape_cast %358 : vector<1x1xf32> to vector<1x1x1xf32>
    %360 = vector.broadcast %359 : vector<1x1x1xf32> to vector<1x1x8xf32>
    %361 = arith.divf %357, %360 : vector<1x1x8xf32>
    %362 = arith.truncf %361 : vector<1x1x8xf32> to vector<1x1x8xbf16>
    "tpu.trace_start"() <{level = 10 : i32, message = "bqk,bkd->bqd"}> : () -> ()
    %cst_116 = arith.constant dense<0.000000e+00> : vector<1x1x128xf32>
    %363 = tpu.matmul %362, %286, %cst_116 {dimension_numbers = #tpu.dot_dimension_numbers<[2], [1], [1], [2], [0, 0, 0, 1, 1, 2], [0], [0]>} : vector<1x1x8xbf16>, vector<1x8x128xbf16>, vector<1x1x128xf32> -> vector<1x1x128xf32>
    "tpu.trace_stop"() : () -> ()
    %364 = vector.shape_cast %85 : vector<1x128xf32> to vector<1x1x128xf32>
    %365 = arith.mulf %363, %364 : vector<1x1x128xf32>
    %366 = arith.addf %348, %365 : vector<1x1x128xf32>
    %367 = vector.shape_cast %366 : vector<1x1x128xf32> to vector<1x128xf32>
    %368 = arith.truncf %367 : vector<1x128xf32> to vector<1x128xbf16>
    %c1_117 = arith.constant 1 : index
    %c0_118 = arith.constant 0 : index
    %c0_119 = arith.constant 0 : index
    %369 = vector.load %arg11[%c1_117, %c0_118, %c0_119] : memref<2x128x128xbf16, #tpu.memory_space<vmem>>, vector<1x128x128xbf16>
    %370 = vector.shape_cast %369 : vector<1x128x128xbf16> to vector<128x128xbf16>
    %c1_120 = arith.constant 1 : index
    %c0_121 = arith.constant 0 : index
    %c0_122 = arith.constant 0 : index
    %371 = vector.load %arg12[%c1_120, %c0_121, %c0_122] : memref<2x1x128xf32, #tpu.memory_space<vmem>>, vector<1x1x128xf32>
    %372 = vector.shape_cast %371 : vector<1x1x128xf32> to vector<1x128xf32>
    %cst_123 = arith.constant dense<0.000000e+00> : vector<1x128xf32>
    %373 = tpu.matmul %368, %370, %cst_123 {dimension_numbers = #tpu.dot_dimension_numbers<[1], [0], [0], [1], [0, 0, 1, 1], [], []>} : vector<1x128xbf16>, vector<128x128xbf16>, vector<1x128xf32> -> vector<1x128xf32>
    %374 = arith.addf %373, %372 : vector<1x128xf32>
    %375 = arith.addf %292, %374 : vector<1x128xf32>
    %cst_124 = arith.constant dense<0.000000e+00> : vector<1xf32>
    %376 = vector.multi_reduction <add>, %375, %cst_124 [1] : vector<1x128xf32> to vector<1xf32>
    %377 = vector.shape_cast %376 : vector<1xf32> to vector<1x1xf32>
    %378 = arith.mulf %375, %375 : vector<1x128xf32>
    %cst_125 = arith.constant dense<0.000000e+00> : vector<1xf32>
    %379 = vector.multi_reduction <add>, %378, %cst_125 [1] : vector<1x128xf32> to vector<1xf32>
    %380 = vector.shape_cast %379 : vector<1xf32> to vector<1x1xf32>
    %cst_126 = arith.constant 1.280000e+02 : f32
    %381 = vector.broadcast %cst_126 : f32 to vector<1x1xf32>
    %382 = arith.divf %377, %381 : vector<1x1xf32>
    %cst_127 = arith.constant 1.280000e+02 : f32
    %383 = vector.broadcast %cst_127 : f32 to vector<1x1xf32>
    %384 = arith.divf %380, %383 : vector<1x1xf32>
    %385 = arith.mulf %382, %382 : vector<1x1xf32>
    %386 = arith.subf %384, %385 : vector<1x1xf32>
    %387 = vector.broadcast %382 : vector<1x1xf32> to vector<1x128xf32>
    %388 = arith.subf %375, %387 : vector<1x128xf32>
    %cst_128 = arith.constant 9.99999974E-6 : f32
    %389 = vector.broadcast %cst_128 : f32 to vector<1x1xf32>
    %390 = arith.addf %386, %389 : vector<1x1xf32>
    %391 = math.rsqrt %390 : vector<1x1xf32>
    %392 = vector.broadcast %391 : vector<1x1xf32> to vector<1x128xf32>
    %393 = arith.mulf %388, %392 : vector<1x128xf32>
    %394 = arith.mulf %393, %269 : vector<1x128xf32>
    %395 = arith.addf %394, %270 : vector<1x128xf32>
    %396 = arith.truncf %395 : vector<1x128xf32> to vector<1x128xbf16>
    %c1_129 = arith.constant 1 : index
    %c0_130 = arith.constant 0 : index
    %c0_131 = arith.constant 0 : index
    %397 = vector.load %arg13[%c1_129, %c0_130, %c0_131] : memref<2x128x256xbf16, #tpu.memory_space<vmem>>, vector<1x128x256xbf16>
    %398 = vector.shape_cast %397 : vector<1x128x256xbf16> to vector<128x256xbf16>
    %c1_132 = arith.constant 1 : index
    %c0_133 = arith.constant 0 : index
    %c0_134 = arith.constant 0 : index
    %399 = vector.load %arg14[%c1_132, %c0_133, %c0_134] : memref<2x1x256xf32, #tpu.memory_space<vmem>>, vector<1x1x256xf32>
    %400 = vector.shape_cast %399 : vector<1x1x256xf32> to vector<1x256xf32>
    %cst_135 = arith.constant dense<0.000000e+00> : vector<1x256xf32>
    %401 = tpu.matmul %396, %398, %cst_135 {dimension_numbers = #tpu.dot_dimension_numbers<[1], [0], [0], [1], [0, 0, 1, 1], [], []>} : vector<1x128xbf16>, vector<128x256xbf16>, vector<1x256xf32> -> vector<1x256xf32>
    %402 = arith.addf %401, %400 : vector<1x256xf32>
    %cst_136 = arith.constant 0.000000e+00 : f32
    %403 = vector.broadcast %cst_136 : f32 to vector<1x256xf32>
    %404 = arith.maximumf %402, %403 : vector<1x256xf32>
    %405 = arith.truncf %404 : vector<1x256xf32> to vector<1x256xbf16>
    %c1_137 = arith.constant 1 : index
    %c0_138 = arith.constant 0 : index
    %c0_139 = arith.constant 0 : index
    %406 = vector.load %arg15[%c1_137, %c0_138, %c0_139] : memref<2x256x128xbf16, #tpu.memory_space<vmem>>, vector<1x256x128xbf16>
    %407 = vector.shape_cast %406 : vector<1x256x128xbf16> to vector<256x128xbf16>
    %c1_140 = arith.constant 1 : index
    %c0_141 = arith.constant 0 : index
    %c0_142 = arith.constant 0 : index
    %408 = vector.load %arg16[%c1_140, %c0_141, %c0_142] : memref<2x1x128xf32, #tpu.memory_space<vmem>>, vector<1x1x128xf32>
    %409 = vector.shape_cast %408 : vector<1x1x128xf32> to vector<1x128xf32>
    %cst_143 = arith.constant dense<0.000000e+00> : vector<1x128xf32>
    %410 = tpu.matmul %405, %407, %cst_143 {dimension_numbers = #tpu.dot_dimension_numbers<[1], [0], [0], [1], [0, 0, 1, 1], [], []>} : vector<1x256xbf16>, vector<256x128xbf16>, vector<1x128xf32> -> vector<1x128xf32>
    %411 = arith.addf %410, %409 : vector<1x128xf32>
    %412 = arith.addf %395, %411 : vector<1x128xf32>
    %cst_144 = arith.constant dense<0.000000e+00> : vector<1xf32>
    %413 = vector.multi_reduction <add>, %412, %cst_144 [1] : vector<1x128xf32> to vector<1xf32>
    %414 = vector.shape_cast %413 : vector<1xf32> to vector<1x1xf32>
    %415 = arith.mulf %412, %412 : vector<1x128xf32>
    %cst_145 = arith.constant dense<0.000000e+00> : vector<1xf32>
    %416 = vector.multi_reduction <add>, %415, %cst_145 [1] : vector<1x128xf32> to vector<1xf32>
    %417 = vector.shape_cast %416 : vector<1xf32> to vector<1x1xf32>
    %cst_146 = arith.constant 1.280000e+02 : f32
    %418 = vector.broadcast %cst_146 : f32 to vector<1x1xf32>
    %419 = arith.divf %414, %418 : vector<1x1xf32>
    %cst_147 = arith.constant 1.280000e+02 : f32
    %420 = vector.broadcast %cst_147 : f32 to vector<1x1xf32>
    %421 = arith.divf %417, %420 : vector<1x1xf32>
    %422 = arith.mulf %419, %419 : vector<1x1xf32>
    %423 = arith.subf %421, %422 : vector<1x1xf32>
    %424 = vector.broadcast %419 : vector<1x1xf32> to vector<1x128xf32>
    %425 = arith.subf %412, %424 : vector<1x128xf32>
    %cst_148 = arith.constant 9.99999974E-6 : f32
    %426 = vector.broadcast %cst_148 : f32 to vector<1x1xf32>
    %427 = arith.addf %423, %426 : vector<1x1xf32>
    %428 = math.rsqrt %427 : vector<1x1xf32>
    %429 = vector.broadcast %428 : vector<1x1xf32> to vector<1x128xf32>
    %430 = arith.mulf %425, %429 : vector<1x128xf32>
    %431 = arith.mulf %430, %271 : vector<1x128xf32>
    %432 = arith.addf %431, %272 : vector<1x128xf32>
    %433 = vector.shape_cast %432 : vector<1x128xf32> to vector<1x1x128xf32>
    %c0_149 = arith.constant 0 : index
    %c0_150 = arith.constant 0 : index
    %c0_151 = arith.constant 0 : index
    %434 = vector.load %arg18[%c0_149, %c0_150, %c0_151] : memref<1x1x128xf32, #tpu.memory_space<vmem>>, vector<1x1x128xf32>
    tpu.vector_store %arg18[%c0_149, %c0_150, %c0_151], %433 {strides = array<i32>} : memref<1x1x128xf32, #tpu.memory_space<vmem>>, vector<1x1x128xf32>,
    return
  }
  func.func @transform_0(%arg0: i32) -> (i32, i32, i32) {
    %c0_i32 = arith.constant 0 : i32
    %c0_i32_0 = arith.constant 0 : i32
    %c0_i32_1 = arith.constant 0 : i32
    return %arg0, %c0_i32, %c0_i32_0 : i32, i32, i32
  }
  func.func @transform_1(%arg0: i32) -> (i32, i32, i32) {
    %c0_i32 = arith.constant 0 : i32
    %c0_i32_0 = arith.constant 0 : i32
    %c0_i32_1 = arith.constant 0 : i32
    return %arg0, %c0_i32, %c0_i32_0 : i32, i32, i32
  }
  func.func @transform_2(%arg0: i32) -> (i32, i32) {
    %c0_i32 = arith.constant 0 : i32
    %c0_i32_0 = arith.constant 0 : i32
    %c0_i32_1 = arith.constant 0 : i32
    return %c0_i32, %c0_i32_0 : i32, i32
  }
  func.func @transform_3(%arg0: i32) -> (i32, i32) {
    %c0_i32 = arith.constant 0 : i32
    %c0_i32_0 = arith.constant 0 : i32
    %c0_i32_1 = arith.constant 0 : i32
    return %c0_i32, %c0_i32_0 : i32, i32
  }
  func.func @transform_4(%arg0: i32) -> (i32, i32) {
    %c0_i32 = arith.constant 0 : i32
    %c0_i32_0 = arith.constant 0 : i32
    %c0_i32_1 = arith.constant 0 : i32
    return %c0_i32, %c0_i32_0 : i32, i32
  }
  func.func @transform_5(%arg0: i32) -> (i32, i32) {
    %c0_i32 = arith.constant 0 : i32
    %c0_i32_0 = arith.constant 0 : i32
    %c0_i32_1 = arith.constant 0 : i32
    return %c0_i32, %c0_i32_0 : i32, i32
  }
  func.func @transform_6(%arg0: i32) -> (i32, i32) {
    %c0_i32 = arith.constant 0 : i32
    %c0_i32_0 = arith.constant 0 : i32
    %c0_i32_1 = arith.constant 0 : i32
    return %c0_i32, %c0_i32_0 : i32, i32
  }
  func.func @transform_7(%arg0: i32) -> (i32, i32) {
    %c0_i32 = arith.constant 0 : i32
    %c0_i32_0 = arith.constant 0 : i32
    %c0_i32_1 = arith.constant 0 : i32
    return %c0_i32, %c0_i32_0 : i32, i32
  }
  func.func @transform_8(%arg0: i32) -> (i32, i32, i32) {
    %c0_i32 = arith.constant 0 : i32
    %c0_i32_0 = arith.constant 0 : i32
    %c0_i32_1 = arith.constant 0 : i32
    %c0_i32_2 = arith.constant 0 : i32
    return %c0_i32, %c0_i32_0, %c0_i32_1 : i32, i32, i32
  }
  func.func @transform_9(%arg0: i32) -> (i32, i32, i32) {
    %c0_i32 = arith.constant 0 : i32
    %c0_i32_0 = arith.constant 0 : i32
    %c0_i32_1 = arith.constant 0 : i32
    %c0_i32_2 = arith.constant 0 : i32
    return %c0_i32, %c0_i32_0, %c0_i32_1 : i32, i32, i32
  }
  func.func @transform_10(%arg0: i32) -> (i32, i32, i32) {
    %c0_i32 = arith.constant 0 : i32
    %c0_i32_0 = arith.constant 0 : i32
    %c0_i32_1 = arith.constant 0 : i32
    %c0_i32_2 = arith.constant 0 : i32
    return %c0_i32, %c0_i32_0, %c0_i32_1 : i32, i32, i32
  }
  func.func @transform_11(%arg0: i32) -> (i32, i32, i32) {
    %c0_i32 = arith.constant 0 : i32
    %c0_i32_0 = arith.constant 0 : i32
    %c0_i32_1 = arith.constant 0 : i32
    %c0_i32_2 = arith.constant 0 : i32
    return %c0_i32, %c0_i32_0, %c0_i32_1 : i32, i32, i32
  }
  func.func @transform_12(%arg0: i32) -> (i32, i32, i32) {
    %c0_i32 = arith.constant 0 : i32
    %c0_i32_0 = arith.constant 0 : i32
    %c0_i32_1 = arith.constant 0 : i32
    %c0_i32_2 = arith.constant 0 : i32
    return %c0_i32, %c0_i32_0, %c0_i32_1 : i32, i32, i32
  }
  func.func @transform_13(%arg0: i32) -> (i32, i32, i32) {
    %c0_i32 = arith.constant 0 : i32
    %c0_i32_0 = arith.constant 0 : i32
    %c0_i32_1 = arith.constant 0 : i32
    %c0_i32_2 = arith.constant 0 : i32
    return %c0_i32, %c0_i32_0, %c0_i32_1 : i32, i32, i32
  }
  func.func @transform_14(%arg0: i32) -> (i32, i32, i32) {
    %c0_i32 = arith.constant 0 : i32
    %c0_i32_0 = arith.constant 0 : i32
    %c0_i32_1 = arith.constant 0 : i32
    %c0_i32_2 = arith.constant 0 : i32
    return %c0_i32, %c0_i32_0, %c0_i32_1 : i32, i32, i32
  }
  func.func @transform_15(%arg0: i32) -> (i32, i32, i32) {
    %c0_i32 = arith.constant 0 : i32
    %c0_i32_0 = arith.constant 0 : i32
    %c0_i32_1 = arith.constant 0 : i32
    %c0_i32_2 = arith.constant 0 : i32
    return %c0_i32, %c0_i32_0, %c0_i32_1 : i32, i32, i32
  }
  func.func @transform_16(%arg0: i32) -> (i32, i32, i32) {
    %c0_i32 = arith.constant 0 : i32
    %c0_i32_0 = arith.constant 0 : i32
    %c0_i32_1 = arith.constant 0 : i32
    %c0_i32_2 = arith.constant 0 : i32
    return %c0_i32, %c0_i32_0, %c0_i32_1 : i32, i32, i32
  }
  func.func @transform_17(%arg0: i32) -> (i32, i32, i32) {
    %c0_i32 = arith.constant 0 : i32
    %c0_i32_0 = arith.constant 0 : i32
    %c0_i32_1 = arith.constant 0 : i32
    return %arg0, %c0_i32, %c0_i32_0 : i32, i32, i32
  }
}

</mosaic_0001>

<bundles_post_ra>
// kernel: tpu_custom_call.1
= control target key start
LH: loop header
LB: loop body
LE: loop exit
PB: predicated region body
PF: predicated region fallthrough
CT: control target
= control target key end

     0   :  { %s7812_s0 = inlined_call_operand.hbm [shape: f32[2,8,480], index: 0, kind: input, shape index: {}]   ;;  %s7813_s1 = inlined_call_operand.hbm [shape: f32[2,1,8], index: 1, kind: input, shape index: {}]   ;;  %s7814_s2 = inlined_call_operand.hbm [shape: bf16[480,640], index: 2, kind: input, shape index: {}]   ;;  %s7815_s3 = inlined_call_operand.hbm [shape: f32[1,640], index: 3, kind: input, shape index: {}]   ;;  %s7816_s4 = inlined_call_operand.hbm [shape: bf16[640,128], index: 4, kind: input, shape index: {}]   ;;  %s7817_s5 = inlined_call_operand.hbm [shape: f32[1,128], index: 5, kind: input, shape index: {}]   ;;  %s7818_s6 = inlined_call_operand.hbm [shape: bf16[128,128], index: 6, kind: input, shape index: {}]   ;;  %s7819_s7 = inlined_call_operand.vmem [shape: f32[1,128], index: 7, kind: input, shape index: {}]   ;;  %s7820_s8 = inlined_call_operand.hbm [shape: bf16[2,128,384], index: 8, kind: input, shape index: {}]   ;;  %s7821_s9 = inlined_call_operand.vmem [shape: f32[2,1,384], index: 9, kind: input, shape index: {}]   ;;  %s7822_s10 = inlined_call_operand.hbm [shape: bf16[2,128,128], index: 10, kind: input, shape index: {}]   ;;  %s7823_s11 = inlined_call_operand.vmem [shape: f32[2,1,128], index: 11, kind: input, shape index: {}]   ;;  %s7824_s12 = inlined_call_operand.hbm [shape: bf16[2,128,256], index: 12, kind: input, shape index: {}]   ;;  %s7825_s13 = inlined_call_operand.vmem [shape: f32[2,1,256], index: 13, kind: input, shape index: {}]   ;;  %s7826_s14 = inlined_call_operand.hbm [shape: bf16[2,256,128], index: 14, kind: input, shape index: {}]   ;;  %s7827_s15 = inlined_call_operand.vmem [shape: f32[2,1,128], index: 15, kind: input, shape index: {}]   ;;  %s7828_s16 = inlined_call_operand.vmem [shape: f32[2,4,128], index: 16, kind: input, shape index: {}]   ;;  %s7829_s17 = inlined_call_operand.hbm [shape: f32[2,1,128], index: 17, kind: output, shape index: {}]  }
   0x1   :  { %7843 = sst [smem:[#allocation29_spill]] %s7812_s0 }
   0x2   :  { %7844 = sst [smem:[#allocation30_spill]] %s7813_s1 }
   0x3   :  { %7845 = sst [smem:[#allocation31_spill]] %s7814_s2 }
   0x4   :  { %7846 = sst [smem:[#allocation32_spill]] %s7815_s3 }
   0x5   :  { %7847 = sst [smem:[#allocation33_spill]] %s7816_s4 }
   0x6   :  { %7848 = sst [smem:[#allocation34_spill]] %s7817_s5 }
   0x7   :  { %7849 = sst [smem:[#allocation35_spill]] %s7818_s6 }
   0x8   :  { %7850 = sst [smem:[#allocation36_spill]] %s7819_s7 }
   0x9   :  { %7851 = sst [smem:[#allocation37_spill]] %s7821_s9 }
   0xa   :  { %7852 = sst [smem:[#allocation38_spill]] %s7823_s11 }
   0xb   :  { %7853 = sst [smem:[#allocation39_spill]] %s7825_s13 }
   0xc   :  { %7854 = sst [smem:[#allocation40_spill]] %s7827_s15 }
   0xd   :  { %7855 = sst [smem:[#allocation41_spill]] %s7828_s16 }
   0xe   :  { %7856 = sst [smem:[#allocation42_spill]] %s7829_s17 }
   0xf   :  { %22 = vsyncpa [#allocation3], 0 }
  0x10   :  { %24 = vsyncpa [#allocation3 + $0x1], 0 }
  0x11   :  { %25 = vsyncpa [#allocation6], 0 }
  0x12   :  { %27 = vsyncpa [#allocation6 + $0x1], 0 }
  0x13   :  { %28 = vsyncpa [#allocation9], 0 }
  0x14   :  { %29 = vsyncpa [#allocation12], 0 }
  0x15   :  { %30 = vsyncpa [#allocation15], 0 }
  0x16   :  { %31 = vsyncpa [#allocation18], 0 }
  0x17   :  { %32 = vsyncpa [#allocation4], 0 }
  0x18   :  { %34 = vsyncpa [#allocation4 + $0x1], 0  ;;  %s6980_s24 = smov 0   ;;  %s6982_s25 = smov 0  }
  0x19   :  { %s6984_s26 = smov 0   ;;  %s6986_s27 = smov 0  }
  0x1a LB: > { %s6867_s28 = smov [#allocation7]   ;;  %s7001_s0 = sadd.s32 4294967295, %s6865_s27   ;;  %s6865_s27 = sphi %s6986_s27, %s7898_s27   ;;  %s6861_s26 = sphi %s6984_s26, %s7897_s26   ;;  %s6857_s25 = sphi %s6982_s25, %s7896_s25   ;;  %s6853_s24 = sphi %s6980_s24, %s7895_s24  }
  0x1b   : > { %s450_s29 = sshll.u32 %s6867_s28, 4  ;;  %p5048_p0 = scmp.ge.s32.totalorder %s6865_s27, 1  ;;  %s7006_s29 = int_to_ptr.vmem [resolvable:$true] %s450_s29 }
  0x1c   : > { %p7838_p1 = scmp.eq.s32.totalorder %s7001_s0, 0  ;;  %p438_p2 = scmp.lt.s32.totalorder %s6865_s27, 3 }
  0x1d   : > { %s6868_s18 = smov [#allocation8]   ;;  %s6869_s20 = smov [#allocation11]  }
  0x1e   : > { %p7008_p3 = pnand %p5048_p0, %p438_p2  ;;  %s464_s19 = sshll.u32 %s6868_s18, 4  ;;  %s7021_s19 = int_to_ptr.vmem [resolvable:$true] %s464_s19 }
  0x1f   : > { %s488_s21 = sshll.u32 %s6869_s20, 4  ;;  %s7859_s2 = sld [smem:[#allocation31_spill]]  ;;  %s7023_s21 = int_to_ptr.vmem [resolvable:$true] %s488_s21 }
  0x20   : > { %s7857_s30 = scalar_select %p7008_p3, 1, 0 }
  0x21   : > { %p5894_p5 = pneg %p7008_p3 }
  0x23   : > { %p7017_p6 = pnand %p5894_p5, %p7838_p1 }
  0x25   : > { %s6463_s28 = scalar_lea.hbm %s7859_s2, 19200  ;;  %p7033_p8 = pneg %p7017_p6 }
  0x26   : > { %p6464_p7 = scmp.ne.s32.totalorder %s7859_s2, %s6463_s28  ;;  %p6470_p11 = scmp.lt.u32.totalorder %s6463_s28, %s7859_s2 }
  0x28   : > { %p6466_p9 = pnand %p7033_p8, %p6464_p7 }
  0x2a   : > { %p6467_p10 = pneg %p6466_p9 }
  0x2c   : > { %p6472_p12 = pnand %p6470_p11, %p6467_p10 }
  0x2e   : > { %6475 = shalt.err (!%p6472_p12)
}
  0x2f   : > { %s6476_s15 = scalar_lea.vmem %s7006_s29, 19200  ;;  %p6484_p5 = scmp.lt.s32.totalorder %s7006_s29, %s7006_s29 }
  0x30   : > { %p6477_p13 = scmp.ne.s32.totalorder %s7006_s29, %s6476_s15  ;;  %p6485_p4 = scmp.lt.s32.totalorder %s6476_s15, %s6476_s15 }
  0x32   : > { %p6479_p0 = pnand %p6477_p13, %p7033_p8  ;;  %p6486_p7 = por %p6485_p4, %p6484_p5 }
  0x34   : > { %p6480_p2 = pneg %p6479_p0 }
  0x36   : > { %p6487_p9 = pnand %p6486_p7, %p6480_p2 }
  0x38   : > { %6490 = shalt.err (!%p6487_p9)
}
  0x39   : > { %s6870_s17 = smov 320   ;;  %s6871_s13 = smov 20  }
  0x3a   : > { %5897 = dma.hbm_to_vmem [thread:$0]  (!%p7017_p6), %s7859_s2, 19200, %s7006_s29, [#allocation6], %s6870_s17, %s6870_s17, %s6871_s13  }
  0x3b   : > { %s7861_s3 = sld [smem:[#allocation32_spill]] }
  0x41   : > { %s6491_s16 = scalar_lea.hbm %s7861_s3, 80 }
  0x42   : > { %p6492_p4 = scmp.ne.s32.totalorder %s7861_s3, %s6491_s16  ;;  %p6498_p12 = scmp.lt.u32.totalorder %s6491_s16, %s7861_s3 }
  0x44   : > { %p6494_p10 = pnand %p6492_p4, %p7033_p8 }
  0x46   : > { %p6495_p11 = pneg %p6494_p10 }
  0x48   : > { %p6500_p13 = pnand %p6498_p12, %p6495_p11 }
  0x4a   : > { %6503 = shalt.err (!%p6500_p13)
}
  0x4b   : > { %s6504_s29 = scalar_lea.vmem %s7021_s19, 80  ;;  %s6511_s9 = scalar_lea.vmem %s7021_s19, 96 }
  0x4c   : > { %p6505_p0 = scmp.ne.s32.totalorder %s7021_s19, %s6504_s29  ;;  %p6512_p7 = scmp.lt.s32.totalorder %s7021_s19, %s7021_s19 }
  0x4d   : > { %p6513_p9 = scmp.lt.s32.totalorder %s6511_s9, %s6504_s29 }
  0x4e   : > { %p6507_p2 = pnand %p6505_p0, %p7033_p8 }
  0x4f   : > { %p6514_p4 = por %p6513_p9, %p6512_p7 }
  0x50   : > { %p6508_p5 = pneg %p6507_p2 }
  0x52   : > { %p6515_p10 = pnand %p6514_p4, %p6508_p5 }
  0x54   : > { %6518 = shalt.err (!%p6515_p10)
}
  0x55   : > { %5900 = dma.hbm_to_vmem [thread:$0]  (!%p7017_p6), %s7861_s3, 80, %s7021_s19, [#allocation9]  }
  0x56   : > { %s7862_s5 = sld [smem:[#allocation34_spill]] }
  0x5c   : > { %s6519_s13 = scalar_lea.hbm %s7862_s5, 16 }
  0x5d   : > { %p6520_p11 = scmp.ne.s32.totalorder %s7862_s5, %s6519_s13  ;;  %p6526_p0 = scmp.lt.u32.totalorder %s6519_s13, %s7862_s5 }
  0x5f   : > { %p6522_p12 = pnand %p6520_p11, %p7033_p8 }
  0x61   : > { %p6523_p13 = pneg %p6522_p12 }
  0x63   : > { %p6528_p2 = pnand %p6526_p0, %p6523_p13 }
  0x65   : > { %6531 = shalt.err (!%p6528_p2)
}
  0x66   : > { %s6532_s19 = scalar_lea.vmem %s7023_s21, 16  ;;  %s6539_s15 = scalar_lea.vmem %s7023_s21, 32 }
  0x67   : > { %p6533_p5 = scmp.ne.s32.totalorder %s7023_s21, %s6532_s19  ;;  %p6540_p4 = scmp.lt.s32.totalorder %s7023_s21, %s7023_s21 }
  0x68   : > { %p6541_p10 = scmp.lt.s32.totalorder %s6539_s15, %s6532_s19 }
  0x69   : > { %p6535_p7 = pnand %p6533_p5, %p7033_p8 }
  0x6a   : > { %p6542_p11 = por %p6541_p10, %p6540_p4 }
  0x6b   : > { %p6536_p9 = pneg %p6535_p7 }
  0x6d   : > { %p6543_p12 = pnand %p6542_p11, %p6536_p9 }
  0x6f   : > { %6546 = shalt.err (!%p6543_p12)
}
  0x70   : > { %5906 = dma.hbm_to_vmem [thread:$0]  (!%p7017_p6), %s7862_s5, 16, %s7023_s21, [#allocation12]  }
  0x71   : > { %s6872_s7 = smov [#allocation14]   ;;  %s6547_s13 = scalar_lea.hbm %s7820_s8, 6144 }
  0x72   : > { %s514_s11 = sshll.u32 %s6872_s7, 4  ;;  %p6548_p13 = scmp.ne.s32.totalorder %s7820_s8, %s6547_s13  ;;  %s515_s11 = int_to_ptr.vmem [resolvable:$true] %s514_s11 }
  0x73   : > { %p6554_p5 = scmp.lt.u32.totalorder %s6547_s13, %s7820_s8 }
  0x74   : > { %p6550_p0 = pnand %p6548_p13, %p7033_p8 }
  0x76   : > { %p6551_p2 = pneg %p6550_p0 }
  0x78   : > { %p6556_p7 = pnand %p6554_p5, %p6551_p2 }
  0x7a   : > { %6559 = shalt.err (!%p6556_p7)
}
  0x7b   : > { %s6560_s21 = scalar_lea.vmem %s515_s11, 6144  ;;  %p6568_p11 = scmp.lt.s32.totalorder %s515_s11, %s515_s11 }
  0x7c   : > { %p6561_p9 = scmp.ne.s32.totalorder %s515_s11, %s6560_s21  ;;  %p6569_p12 = scmp.lt.s32.totalorder %s6560_s21, %s6560_s21 }
  0x7e   : > { %p6563_p4 = pnand %p6561_p9, %p7033_p8  ;;  %p6570_p1 = por %p6569_p12, %p6568_p11 }
  0x80   : > { %p6564_p10 = pneg %p6563_p4 }
  0x82   : > { %p6571_p3 = pnand %p6570_p1, %p6564_p10 }
  0x84   : > { %6574 = shalt.err (!%p6571_p3)
}
  0x85   : > { %s6873_s19 = smov 192   ;;  %s6874_s15 = smov 12  }
  0x86   : > { %5912 = dma.hbm_to_vmem [thread:$0]  (!%p7017_p6), %s7820_s8, 6144, %s515_s11, [#allocation15], %s6873_s19, %s6873_s19, %s6874_s15  }
  0x87   : > { %s6875_s7 = smov [#allocation17]   ;;  %s6575_s22 = scalar_lea.hbm %s7824_s12, 4096 }
  0x88   : > { %s546_s16 = sshll.u32 %s6875_s7, 4  ;;  %p6576_p1 = scmp.ne.s32.totalorder %s7824_s12, %s6575_s22  ;;  %s547_s16 = int_to_ptr.vmem [resolvable:$true] %s546_s16 }
  0x89   : > { %p6582_p0 = scmp.lt.u32.totalorder %s6575_s22, %s7824_s12 }
  0x8a   : > { %p6578_p3 = pnand %p6576_p1, %p7033_p8 }
  0x8c   : > { %p6579_p13 = pneg %p6578_p3 }
  0x8e   : > { %p6584_p2 = pnand %p6582_p0, %p6579_p13 }
  0x90   : > { %6587 = shalt.err (!%p6584_p2)
}
  0x91   : > { %s6588_s11 = scalar_lea.vmem %s547_s16, 4096  ;;  %p6596_p4 = scmp.lt.s32.totalorder %s547_s16, %s547_s16 }
  0x92   : > { %p6589_p5 = scmp.ne.s32.totalorder %s547_s16, %s6588_s11  ;;  %p6597_p10 = scmp.lt.s32.totalorder %s6588_s11, %s6588_s11 }
  0x94   : > { %p6591_p7 = pnand %p6589_p5, %p7033_p8  ;;  %p6598_p11 = por %p6597_p10, %p6596_p4 }
  0x96   : > { %p6592_p9 = pneg %p6591_p7 }
  0x98   : > { %p6599_p12 = pnand %p6598_p11, %p6592_p9 }
  0x9a   : > { %6602 = shalt.err (!%p6599_p12)
}
  0x9b   : > { %s6876_s19 = smov 128   ;;  %s6877_s15 = smov 8  }
  0x9c   : > { %5918 = dma.hbm_to_vmem [thread:$0]  (!%p7017_p6), %s7824_s12, 4096, %s547_s16, [#allocation18], %s6876_s19, %s6876_s19, %s6877_s15  }
  0x9d   : > { %s6878_s7 = smov [#allocation10]   ;;  %s7863_s4 = sld [smem:[#allocation33_spill]] }
  0x9e   : > { %s474_s17 = sshll.u32 %s6878_s7, 4  ;;  %s475_s17 = int_to_ptr.vmem [resolvable:$true] %s474_s17 }
  0xa3   : > { %s6603_s23 = scalar_lea.hbm %s7863_s4, 5120 }
  0xa4   : > { %p6604_p1 = scmp.ne.s32.totalorder %s7863_s4, %s6603_s23  ;;  %p6610_p0 = scmp.lt.u32.totalorder %s6603_s23, %s7863_s4 }
  0xa6   : > { %p6606_p3 = pnand %p6604_p1, %p7033_p8 }
  0xa8   : > { %p6607_p13 = pneg %p6606_p3 }
  0xaa   : > { %p6612_p2 = pnand %p6610_p0, %p6607_p13 }
  0xac   : > { %6615 = shalt.err (!%p6612_p2)
}
  0xad   : > { %s6616_s16 = scalar_lea.vmem %s475_s17, 5120  ;;  %p6624_p4 = scmp.lt.s32.totalorder %s475_s17, %s475_s17 }
  0xae   : > { %p6617_p5 = scmp.ne.s32.totalorder %s475_s17, %s6616_s16  ;;  %p6625_p10 = scmp.lt.s32.totalorder %s6616_s16, %s6616_s16 }
  0xb0   : > { %p6619_p7 = pnand %p6617_p5, %p7033_p8  ;;  %p6626_p11 = por %p6625_p10, %p6624_p4 }
  0xb2   : > { %p6620_p9 = pneg %p6619_p7 }
  0xb4   : > { %p6627_p12 = pnand %p6626_p11, %p6620_p9 }
  0xb6   : > { %6630 = shalt.err (!%p6627_p12)
}
  0xb7   : > { %s6879_s19 = smov 64   ;;  %s6880_s15 = smov 4  }
  0xb8   : > { %5903 = dma.hbm_to_vmem [thread:$0]  (!%p7017_p6), %s7863_s4, 5120, %s475_s17, [#allocation9], %s6879_s19, %s6879_s19, %s6880_s15  }
  0xb9   : > { %s6881_s7 = smov [#allocation13]   ;;  %s6882_s22 = smov [#allocation16]  }
  0xba   : > { %s498_s13 = sshll.u32 %s6881_s7, 4  ;;  %s530_s23 = sshll.u32 %s6882_s22, 4  ;;  %s499_s13 = int_to_ptr.vmem [resolvable:$true] %s498_s13  ;;  %s7159_s23 = int_to_ptr.vmem [resolvable:$true] %s530_s23 }
  0xbb   : > { %s7864_s6 = sld [smem:[#allocation35_spill]] }
  0xc1   : > { %s6631_s21 = scalar_lea.hbm %s7864_s6, 1024 }
  0xc2   : > { %p6632_p1 = scmp.ne.s32.totalorder %s7864_s6, %s6631_s21  ;;  %p6638_p0 = scmp.lt.u32.totalorder %s6631_s21, %s7864_s6 }
  0xc4   : > { %p6634_p3 = pnand %p6632_p1, %p7033_p8 }
  0xc6   : > { %p6635_p13 = pneg %p6634_p3 }
  0xc8   : > { %p6640_p2 = pnand %p6638_p0, %p6635_p13 }
  0xca   : > { %6643 = shalt.err (!%p6640_p2)
}
  0xcb   : > { %s6644_s9 = scalar_lea.vmem %s499_s13, 1024  ;;  %p6652_p4 = scmp.lt.s32.totalorder %s499_s13, %s499_s13 }
  0xcc   : > { %p6645_p5 = scmp.ne.s32.totalorder %s499_s13, %s6644_s9  ;;  %p6653_p10 = scmp.lt.s32.totalorder %s6644_s9, %s6644_s9 }
  0xce   : > { %p6647_p7 = pnand %p6645_p5, %p7033_p8  ;;  %p6654_p11 = por %p6653_p10, %p6652_p4 }
  0xd0   : > { %p6648_p9 = pneg %p6647_p7 }
  0xd2   : > { %p6655_p12 = pnand %p6654_p11, %p6648_p9 }
  0xd4   : > { %6658 = shalt.err (!%p6655_p12)
}
  0xd5   : > { %5909 = dma.hbm_to_vmem [thread:$0]  (!%p7017_p6), %s7864_s6, 1024, %s499_s13, [#allocation12], %s6879_s19, %s6879_s19, %s6880_s15  }
  0xd6   : > { %s6659_s21 = scalar_lea.hbm %s7822_s10, 2048 }
  0xd7   : > { %p6660_p1 = scmp.ne.s32.totalorder %s7822_s10, %s6659_s21  ;;  %p6666_p0 = scmp.lt.u32.totalorder %s6659_s21, %s7822_s10 }
  0xd9   : > { %p6662_p3 = pnand %p6660_p1, %p7033_p8 }
  0xdb   : > { %p6663_p13 = pneg %p6662_p3 }
  0xdd   : > { %p6668_p2 = pnand %p6666_p0, %p6663_p13 }
  0xdf   : > { %6671 = shalt.err (!%p6668_p2)
}
  0xe0   : > { %s6672_s13 = scalar_lea.vmem %s7159_s23, 2048  ;;  %p6680_p4 = scmp.lt.s32.totalorder %s7159_s23, %s7159_s23 }
  0xe1   : > { %p6673_p5 = scmp.ne.s32.totalorder %s7159_s23, %s6672_s13  ;;  %p6681_p10 = scmp.lt.s32.totalorder %s6672_s13, %s6672_s13 }
  0xe3   : > { %p6675_p7 = pnand %p6673_p5, %p7033_p8  ;;  %p6682_p11 = por %p6681_p10, %p6680_p4 }
  0xe5   : > { %p6676_p9 = pneg %p6675_p7 }
  0xe7   : > { %p6683_p12 = pnand %p6682_p11, %p6676_p9 }
  0xe9   : > { %6686 = shalt.err (!%p6683_p12)
}
  0xea   : > { %5915 = dma.hbm_to_vmem [thread:$0]  (!%p7017_p6), %s7822_s10, 2048, %s7159_s23, [#allocation15], %s6879_s19, %s6879_s19, %s6880_s15  }
  0xeb   : > { %s6883_s22 = smov [#allocation19]   ;;  %s6687_s11 = scalar_lea.hbm %s7826_s14, 4096 }
  0xec   : > { %s562_s28 = sshll.u32 %s6883_s22, 4  ;;  %p6688_p1 = scmp.ne.s32.totalorder %s7826_s14, %s6687_s11  ;;  %s563_s28 = int_to_ptr.vmem [resolvable:$true] %s562_s28 }
  0xed   : > { %p6694_p0 = scmp.lt.u32.totalorder %s6687_s11, %s7826_s14 }
  0xee   : > { %p6690_p3 = pnand %p6688_p1, %p7033_p8 }
  0xf0   : > { %p6691_p13 = pneg %p6690_p3 }
  0xf2   : > { %p6696_p2 = pnand %p6694_p0, %p6691_p13 }
  0xf4   : > { %6699 = shalt.err (!%p6696_p2)
}
  0xf5   : > { %s6700_s23 = scalar_lea.vmem %s563_s28, 4096  ;;  %p6708_p4 = scmp.lt.s32.totalorder %s563_s28, %s563_s28 }
  0xf6   : > { %p6701_p5 = scmp.ne.s32.totalorder %s563_s28, %s6700_s23  ;;  %p6709_p10 = scmp.lt.s32.totalorder %s6700_s23, %s6700_s23 }
  0xf8   : > { %p6703_p7 = pnand %p6701_p5, %p7033_p8  ;;  %p6710_p11 = por %p6709_p10, %p6708_p4 }
  0xfa   : > { %p6704_p9 = pneg %p6703_p7 }
  0xfc   : > { %p6711_p12 = pnand %p6710_p11, %p6704_p9 }
  0xfe   : > { %6714 = shalt.err (!%p6711_p12)
}
  0xff   : > { %5921 = dma.hbm_to_vmem [thread:$0]  (!%p7017_p6), %s7826_s14, 4096, %s563_s28, [#allocation18], %s6879_s19, %s6879_s19, %s6880_s15  }
 0x100   : > { %s5047_s1 = sadd.s32 4294967294, %s6865_s27   ;;  %s7231_s18 = sadd.s32 1, %s6865_s27  }
 0x101   : > { %s47_s22 = sadd.s32 1, %s6861_s26  ;;  %s44_s20 = ssub.s32 %s6865_s27, %s7231_s18 }
 0x102   : > { %p54_p8 = scmp.ne.s32.totalorder %s6861_s26, %s6857_s25  ;;  %p45_p1 = scmp.eq.s32.totalorder %s44_s20, 0 }
 0x103   : > { %p55_p3 = scmp.eq.s32.totalorder %s6865_s27, 0  ;;  %p60_p13 = scmp.ne.s32.totalorder %s6857_s25, %s6853_s24 }
 0x104   : > { %p425_p0 = scmp.eq.s32.totalorder %s7001_s0, 1  ;;  %p7865_p5 = scmp.eq.s32.totalorder %s7001_s0, 0 }
 0x105   : > { %s7243_s21 = scalar_select %p45_p1, %s6861_s26, %s47_s22  }
 0x106   : > { %p56_p2 = por %p55_p3, %p54_p8  ;;  %p7247_p7 = por %p7865_p5, %p60_p13 }
 0x107   : > { %p7251_p6 = por %p425_p0, %p54_p8  ;;  %p431_p9 = scmp.eq.s32.totalorder %s5047_s1, 1 }
 0x108   : > { %s7866_s19 = scalar_select %p7247_p7, 1, 0 }
 0x109   : > { %s7867_s15 = scalar_select %p7251_p6, 1, 0 }
 0x10a   : > { %p5942_p4 = scmp.lt.s32.totalorder %s6865_s27, 2  ;;  %s7257_s28 = sand.u32 1, %s6861_s26  }
 0x10b   : > { %p7259_p10 = por %p431_p9, %p60_p13  ;;  %s5059_s16 = sshll.u32 %s7257_s28, 5 }
 0x10c   : > { %s5427_s29 = sshll.u32 %s6865_s27, 9  ;;  %s7869_s23 = sld [smem:[#allocation29_spill]] }
 0x10d   : > { %s7868_s11 = scalar_select %p7259_p10, 1, 0 }
 0x10e   : > { %s586_s7 = scalar_lea.vmem [#allocation2], %s5059_s16  ;;  %p7270_p11 = pnand %p5942_p4, %p56_p2 }
 0x10f   : > { %s594_s1 = sshll.u32 %s586_s7, 4  ;;  %s583_s2 = scalar_lea.sflag [#allocation3], %s7257_s28  ;;  %s7274_s1 = int_to_ptr.vmem [resolvable:$true] %s594_s1 }
 0x110   : > { %p6717_p8 = pneg %p7270_p11 }
 0x112   : > { %s7268_s9 = scalar_lea.hbm %s7869_s23, %s5427_s29  ;;  %s6720_s17 = scalar_lea.hbm %s7869_s23, 1024 }
 0x113   : > { %s6715_s3 = scalar_lea.hbm %s7268_s9, 512  ;;  %p6721_p13 = scmp.lt.u32.totalorder %s7268_s9, %s7869_s23 }
 0x114   : > { %p6716_p12 = scmp.ne.s32.totalorder %s7268_s9, %s6715_s3  ;;  %p6722_p0 = scmp.lt.u32.totalorder %s6720_s17, %s6715_s3 }
 0x115   : > { %p6724_p5 = scmp.lt.u32.totalorder %s6715_s3, %s7268_s9 }
 0x116   : > { %p6718_p1 = pnand %p6717_p8, %p6716_p12  ;;  %p6723_p2 = por %p6722_p0, %p6721_p13 }
 0x118   : > { %p6719_p3 = pneg %p6718_p1  ;;  %p6725_p9 = por %p6724_p5, %p6723_p2 }
 0x11a   : > { %p6726_p4 = pnand %p6725_p9, %p6719_p3 }
 0x11c   : > { %6729 = shalt.err (!%p6726_p4)
}
 0x11d   : > { %s6730_s20 = scalar_lea.vmem %s7274_s1, 512  ;;  %s6884_s16 = smov [#allocation2]  }
 0x11e   : > { %p6731_p12 = scmp.ne.s32.totalorder %s7274_s1, %s6730_s20  ;;  %s6735_s29 = sshll.u32 %s6884_s16, 4  ;;  %s6736_s29 = int_to_ptr.vmem [resolvable:$false] %s6735_s29 }
 0x11f   : > { %s6737_s13 = scalar_lea.vmem %s6736_s29, 1024  ;;  %p6738_p6 = scmp.lt.s32.totalorder %s7274_s1, %s6736_s29 }
 0x120   : > { %p6733_p1 = pnand %p6731_p12, %p6717_p8  ;;  %p6739_p13 = scmp.lt.s32.totalorder %s6737_s13, %s6730_s20 }
 0x122   : > { %p6734_p10 = pneg %p6733_p1  ;;  %p6740_p0 = por %p6739_p13, %p6738_p6 }
 0x124   : > { %p6741_p2 = pnand %p6740_p0, %p6734_p10 }
 0x126   : > { %6744 = shalt.err (!%p6741_p2)
}
 0x127   : > { %5925 = dma.hbm_to_vmem [thread:$0]  (!%p7270_p11), %s7268_s9, 512, %s7274_s1, %s583_s2  }
 0x128   : > { %s5062_s3 = sshll.u32 %s6865_s27, 4  ;;  %s7871_s16 = sld [smem:[#allocation30_spill]] }
 0x129   : > { %s604_s20 = scalar_lea.vmem [#allocation5], %s7257_s28  ;;  %s7872_s13 = sand.u32 1, %s6865_s27  }
 0x12a   : > { %s611_s29 = sshll.u32 %s604_s20, 4  ;;  %s602_s5 = scalar_lea.sflag [#allocation6], %s7872_s13  ;;  %s612_s29 = int_to_ptr.vmem [resolvable:$true] %s611_s29 }
 0x12e   : > { %s7307_s4 = scalar_lea.hbm %s7871_s16, %s5062_s3  ;;  %s6750_s1 = scalar_lea.hbm %s7871_s16, 32 }
 0x12f   : > { %s6745_s6 = scalar_lea.hbm %s7307_s4, 16  ;;  %p6751_p5 = scmp.lt.u32.totalorder %s7307_s4, %s7871_s16 }
 0x130   : > { %p6746_p6 = scmp.ne.s32.totalorder %s7307_s4, %s6745_s6  ;;  %p6752_p9 = scmp.lt.u32.totalorder %s6750_s1, %s6745_s6 }
 0x131   : > { %p6754_p12 = scmp.lt.u32.totalorder %s6745_s6, %s7307_s4 }
 0x132   : > { %p6748_p10 = pnand %p6746_p6, %p6717_p8  ;;  %p6753_p4 = por %p6752_p9, %p6751_p5 }
 0x134   : > { %p6749_p3 = pneg %p6748_p10  ;;  %p6755_p1 = por %p6754_p12, %p6753_p4 }
 0x136   : > { %p6756_p13 = pnand %p6755_p1, %p6749_p3 }
 0x138   : > { %6759 = shalt.err (!%p6756_p13)
}
 0x139   : > { %s6760_s28 = scalar_lea.vmem %s612_s29, 16  ;;  %s6885_s7 = smov [#allocation5]  }
 0x13a   : > { %p6761_p0 = scmp.ne.s32.totalorder %s612_s29, %s6760_s28  ;;  %s6765_s20 = sshll.u32 %s6885_s7, 4  ;;  %s6766_s20 = int_to_ptr.vmem [resolvable:$false] %s6765_s20 }
 0x13b   : > { %s6767_s13 = scalar_lea.vmem %s6766_s20, 32  ;;  %p6768_p10 = scmp.lt.s32.totalorder %s612_s29, %s6766_s20 }
 0x13c   : > { %p6763_p2 = pnand %p6761_p0, %p6717_p8  ;;  %p6769_p7 = scmp.lt.s32.totalorder %s6767_s13, %s6760_s28 }
 0x13e   : > { %p6764_p6 = pneg %p6763_p2  ;;  %p6770_p5 = por %p6769_p7, %p6768_p10 }
 0x140   : > { %p6771_p9 = pnand %p6770_p5, %p6764_p6 }
 0x142   : > { %6774 = shalt.err (!%p6771_p9)
}
 0x143   : > { %5928 = dma.hbm_to_vmem [thread:$0]  (!%p7270_p11), %s7307_s4, 16, %s612_s29, %s602_s5  }
 0x144   : > { %p7873_p3 = scmp.ne.s32.totalorder %s7857_s30, 0 }
 0x145   : > { %s7334_s6 = sand.u32 (!%p7873_p3), 1, %s6857_s25   ;;  %p7874_p7 = scmp.ne.s32.totalorder (!%p7873_p3), %s7866_s19, 0 }
 0x146   : > { %620 = sbr.rel (%p7873_p3) target bundleno = 6764 (0x1a6c), region = 88  ;;  %s5064_s2 = sshll.u32 (!%p7873_p3), %s7334_s6, 5 }
 0x147   : > { %s623_s9 = scalar_lea.sflag (!%p7873_p3), [#allocation3], %s7334_s6  ;;  %s7338_s1 = scalar_lea.vmem (!%p7873_p3), [#allocation2], %s5064_s2 }
 0x14d   : > { %6820 = dma.done.wait (%p7874_p7), %s623_s9, 512  }
 0x14e   : > { %6822 = vsyncadd (%p7874_p7), %s623_s9, 4294966784  ;;  %s631_s4 = sand.u32 1, %s7001_s0   ;;  %s634_s30 = scalar_lea.vmem [#allocation5], %s7334_s6 }
 0x14f   : > { %s632_s5 = scalar_lea.sflag [#allocation6], %s631_s4 }
 0x150   : > { %6824 = dma.done.wait (%p7874_p7), %s632_s5, 16  }
 0x151   : > { %6826 = vsyncadd (%p7874_p7), %s632_s5, 4294967280  ;;  %p7875_p11 = scmp.eq.s32.totalorder %s7001_s0, 0 }
 0x153   : > { %6828 = dma.done.wait (%p7875_p11), [#allocation6], 19200   ;;  %p7876_p8 = pmov %p7875_p11 }
 0x155   : > { %6830 = vsyncadd (%p7876_p8), [#allocation6], 4294948096  ;;  %p7877_p4 = pmov %p7876_p8 }
 0x157   : > { %6832 = dma.done.wait (%p7877_p4), [#allocation9], 5200   ;;  %p7878_p12 = pmov %p7877_p4 }
 0x158   : > { %p7879_p1 = pmov %p7877_p4 }
 0x159   : > { %6834 = vsyncadd (%p7878_p12), [#allocation9], 4294962096 }
 0x15a   : > { %6836 = dma.done.wait (%p7879_p1), [#allocation12], 1040   ;;  %p7880_p13 = pmov %p7879_p1 }
 0x15b   : > { %p7881_p0 = pmov %p7879_p1 }
 0x15c   : > { %6838 = vsyncadd (%p7880_p13), [#allocation12], 4294966256 }
 0x15d   : > { %6840 = dma.done.wait (%p7881_p0), [#allocation15], 8192   ;;  %p7882_p2 = pmov %p7881_p0 }
 0x15e   : > { %p7883_p6 = pmov %p7881_p0 }
 0x15f   : > { %6842 = vsyncadd (%p7882_p2), [#allocation15], 4294959104 }
 0x160   : > { %6844 = dma.done.wait (%p7883_p6), [#allocation18], 8192   ;;  %p7884_p10 = pmov %p7881_p0 }
 0x161   : > { %v6005_v0 = vld [vmem:[#allocation7 + $0x4] ss:$20 sps:$4 sm:$0xff]   ;;  %v6007_v1 = vld [vmem:[#allocation7 + $0xc] ss:$20 sps:$4 sm:$0xff]   ;;  %v6010_v3 = vld [vmem:[#allocation7 + $0x8] ss:$20 sps:$4 sm:$0xff]  }
 0x162   : > { %6846 = vsyncadd (%p7884_p10), [#allocation18], 4294959104  ;;  %1725 = vmatprep.subr.bf16.mxu0 %v6005_v0  ;;  %v6009_v2 = vld [vmem:[#allocation7] ss:$20 sps:$4 sm:$0xff]   ;;  %1807 = vmatprep.subr.bf16.mxu1 %v6007_v1  ;;  %v6015_v6 = vld [vmem:[#allocation7 + $0x28] ss:$20 sps:$4 sm:$0xff]  }
 0x163   : > { %v6011_v4 = vld [vmem:[#allocation7 + $0x2c] ss:$20 sps:$4 sm:$0xff]   ;;  %1726 = vmatpush1.bf16.msra.mxu0 %v6009_v2  ;;  %1808 = vmatpush1.bf16.msra.mxu1 %v6010_v3  ;;  %v6013_v5 = vld [vmem:[#allocation7 + $0x34] ss:$20 sps:$4 sm:$0xff]   ;;  %v6016_v7 = vld [vmem:[#allocation7 + $0x30] ss:$20 sps:$4 sm:$0xff]  }
 0x164   : > { %1727 = vmatprep.subr.bf16.mxu0 %v6011_v4  ;;  %1809 = vmatprep.subr.bf16.mxu1 %v6013_v5  ;;  %v6017_v8 = vld [vmem:[#allocation7 + $0x54] ss:$20 sps:$4 sm:$0xff]   ;;  %v6019_v9 = vld [vmem:[#allocation7 + $0x5c] ss:$20 sps:$4 sm:$0xff]   ;;  %v6022_v11 = vld [vmem:[#allocation7 + $0x58] ss:$20 sps:$4 sm:$0xff]  }
 0x165   : > { %v6021_v10 = vld [vmem:[#allocation7 + $0x50] ss:$20 sps:$4 sm:$0xff]   ;;  %v6027_v14 = vld [vmem:[#allocation7 + $0x78] ss:$20 sps:$4 sm:$0xff]   ;;  %v6028_v15 = vld [vmem:[#allocation7 + $0x80] ss:$20 sps:$4 sm:$0xff]  }
 0x166   : > { %v6023_v12 = vld [vmem:[#allocation7 + $0x7c] ss:$20 sps:$4 sm:$0xff]   ;;  %v6025_v13 = vld [vmem:[#allocation7 + $0x84] ss:$20 sps:$4 sm:$0xff]   ;;  %v6031_v17 = vld [vmem:[#allocation7 + $0xac] ss:$20 sps:$4 sm:$0xff]  }
 0x167   : > { %1728 = vmatpush1.bf16.msra.mxu0 %v6015_v6  ;;  %1810 = vmatpush1.bf16.msra.mxu1 %v6016_v7  ;;  %v6029_v16 = vld [vmem:[#allocation7 + $0xa4] ss:$20 sps:$4 sm:$0xff]   ;;  %v6033_v18 = vld [vmem:[#allocation7 + $0xa0] ss:$20 sps:$4 sm:$0xff]   ;;  %v6034_v19 = vld [vmem:[#allocation7 + $0xa8] ss:$20 sps:$4 sm:$0xff]  }
 0x168   : > { %1729 = vmatprep.subr.bf16.mxu0 %v6017_v8  ;;  %1811 = vmatprep.subr.bf16.mxu1 %v6019_v9  ;;  %v6035_v20 = vld [vmem:[#allocation7 + $0xcc] ss:$20 sps:$4 sm:$0xff]   ;;  %v6037_v21 = vld [vmem:[#allocation7 + $0xd4] ss:$20 sps:$4 sm:$0xff]   ;;  %v6040_v23 = vld [vmem:[#allocation7 + $0xd0] ss:$20 sps:$4 sm:$0xff]  }
 0x169   : > { %v6039_v22 = vld [vmem:[#allocation7 + $0xc8] ss:$20 sps:$4 sm:$0xff]   ;;  %v6045_v26 = vld [vmem:[#allocation7 + $0xf0] ss:$20 sps:$4 sm:$0xff]   ;;  %v6046_v27 = vld [vmem:[#allocation7 + $0xf8] ss:$20 sps:$4 sm:$0xff]  }
 0x16a   : > { %v6041_v24 = vld [vmem:[#allocation7 + $0xf4] ss:$20 sps:$4 sm:$0xff]   ;;  %v6043_v25 = vld [vmem:[#allocation7 + $0xfc] ss:$20 sps:$4 sm:$0xff]   ;;  %v6049_v29 = vld [vmem:[#allocation7 + $0x124] ss:$20 sps:$4 sm:$0xff]  }
 0x16b   : > { %1730 = vmatpush1.bf16.msra.mxu0 %v6021_v10  ;;  %1812 = vmatpush1.bf16.msra.mxu1 %v6022_v11  ;;  %v6047_v28 = vld [vmem:[#allocation7 + $0x11c] ss:$20 sps:$4 sm:$0xff]   ;;  %v6051_v30 = vld [vmem:[#allocation7 + $0x118] ss:$20 sps:$4 sm:$0xff]   ;;  %v6052_v31 = vld [vmem:[#allocation7 + $0x120] ss:$20 sps:$4 sm:$0xff]  }
 0x16c   : > { %1731 = vmatprep.subr.bf16.mxu0 %v6023_v12  ;;  %1813 = vmatprep.subr.bf16.mxu1 %v6025_v13  ;;  %v6053_v32 = vld [vmem:[#allocation7 + $0x144] ss:$20 sps:$4 sm:$0xff]   ;;  %v6055_v33 = vld [vmem:[#allocation7 + $0x14c] ss:$20 sps:$4 sm:$0xff]   ;;  %v6058_v35 = vld [vmem:[#allocation7 + $0x148] ss:$20 sps:$4 sm:$0xff]  }
 0x16d   : > { %v6057_v34 = vld [vmem:[#allocation7 + $0x140] ss:$20 sps:$4 sm:$0xff]   ;;  %v6063_v38 = vld [vmem:[#allocation7 + $0x168] ss:$20 sps:$4 sm:$0xff]   ;;  %v6064_v39 = vld [vmem:[#allocation7 + $0x170] ss:$20 sps:$4 sm:$0xff]  }
 0x16e   : > { %v6059_v36 = vld [vmem:[#allocation7 + $0x16c] ss:$20 sps:$4 sm:$0xff]   ;;  %v6061_v37 = vld [vmem:[#allocation7 + $0x174] ss:$20 sps:$4 sm:$0xff]   ;;  %v6067_v41 = vld [vmem:[#allocation7 + $0x19c] ss:$20 sps:$4 sm:$0xff]  }
 0x16f   : > { %1732 = vmatpush1.bf16.msra.mxu0 %v6027_v14  ;;  %1814 = vmatpush1.bf16.msra.mxu1 %v6028_v15  ;;  %v6065_v40 = vld [vmem:[#allocation7 + $0x194] ss:$20 sps:$4 sm:$0xff]   ;;  %v6069_v42 = vld [vmem:[#allocation7 + $0x190] ss:$20 sps:$4 sm:$0xff]   ;;  %v6070_v43 = vld [vmem:[#allocation7 + $0x198] ss:$20 sps:$4 sm:$0xff]  }
 0x170   : > { %1733 = vmatprep.subr.bf16.mxu0 %v6029_v16  ;;  %1815 = vmatprep.subr.bf16.mxu1 %v6031_v17  ;;  %v6071_v44 = vld [vmem:[#allocation7 + $0x1bc] ss:$20 sps:$4 sm:$0xff]   ;;  %v6073_v45 = vld [vmem:[#allocation7 + $0x1c4] ss:$20 sps:$4 sm:$0xff]   ;;  %v6076_v49 = vld [vmem:[#allocation7 + $0x1c0] ss:$20 sps:$4 sm:$0xff]  }
 0x171   : > { %v726_v46 = vld [vmem:[%s7338_s1 + $0x8] sm:$0xff]  ;;  %v6081_v52 = vld [vmem:[#allocation7 + $0x1e0] ss:$20 sps:$4 sm:$0xff]   ;;  %v6091_v59 = vld [vmem:[#allocation7 + $0x23c] ss:$20 sps:$4 sm:$0xff]   ;;  %vm1721_vm0 = vcmask 785408  }
 0x172   : > { %v6075_v47 = vld [vmem:[#allocation7 + $0x1b8] ss:$20 sps:$4 sm:$0xff]   ;;  %v7371_v48 = vpack.c.bf16 %v726_v46, %v726_v46  ;;  %v6082_v53 = vld [vmem:[#allocation7 + $0x1e8] ss:$20 sps:$4 sm:$0xff]   ;;  %v6088_v57 = vld [vmem:[#allocation7 + $0x210] ss:$20 sps:$4 sm:$0xff]  }
 0x173   : > { %1734 = vmatpush1.bf16.msra.mxu0 %v6033_v18  ;;  %1816 = vmatpush1.bf16.msra.mxu1 %v6034_v19  ;;  %v6077_v50 = vld [vmem:[#allocation7 + $0x1e4] ss:$20 sps:$4 sm:$0xff]   ;;  %v6079_v51 = vld [vmem:[#allocation7 + $0x1ec] ss:$20 sps:$4 sm:$0xff]   ;;  %v6085_v55 = vld [vmem:[#allocation7 + $0x214] ss:$20 sps:$4 sm:$0xff]  }
 0x174   : > { %1735 = vmatprep.subr.bf16.mxu0 %v6035_v20  ;;  %1817 = vmatprep.subr.bf16.mxu1 %v6037_v21  ;;  %v6083_v54 = vld [vmem:[#allocation7 + $0x20c] ss:$20 sps:$4 sm:$0xff]   ;;  %v6087_v56 = vld [vmem:[#allocation7 + $0x208] ss:$20 sps:$4 sm:$0xff]   ;;  %v6093_v60 = vld [vmem:[#allocation7 + $0x230] ss:$20 sps:$4 sm:$0xff]  }
 0x175   : > { %1757 = vmatprep.mubr.bf16.mxu0 %v7371_v48  ;;  %1839 = vmatprep.mubr.bf16.mxu1 %v7371_v48  ;;  %v6089_v58 = vld [vmem:[#allocation7 + $0x234] ss:$20 sps:$4 sm:$0xff]   ;;  %v6094_v61 = vld [vmem:[#allocation7 + $0x238] ss:$20 sps:$4 sm:$0xff]   ;;  %v6095_v62 = vld [vmem:[#allocation7 + $0x25c] ss:$20 sps:$4 sm:$0xff]  }
 0x176   : > { %v6097_v63 = vld [vmem:[#allocation7 + $0x264] ss:$20 sps:$4 sm:$0xff]   ;;  %v6100_v1 = vld [vmem:[#allocation7 + $0x260] ss:$20 sps:$4 sm:$0xff]   ;;  %v6104_v7 = vld [vmem:[#allocation7 + $0x288] ss:$20 sps:$4 sm:$0xff]  }
 0x177   : > { %1736 = vmatpush1.bf16.msra.mxu0 %v6039_v22  ;;  %1818 = vmatpush1.bf16.msra.mxu1 %v6040_v23  ;;  %v6099_v0 = vld [vmem:[#allocation7 + $0x258] ss:$20 sps:$4 sm:$0xff]   ;;  %v725_v2 = vld [vmem:[%s7338_s1] sm:$0xff]  ;;  %v6112_v9 = vld [vmem:[#allocation7 + $0x2b4] ss:$20 sps:$4 sm:$0xff]   ;;  %vm6888_vm1 = vmmov 0  }
 0x178   : > { %1737 = vmatprep.subr.bf16.mxu0 %v6041_v24  ;;  %1819 = vmatprep.subr.bf16.mxu1 %v6043_v25  ;;  %v6103_v3 = vld [vmem:[#allocation7 + $0x284] ss:$20 sps:$4 sm:$0xff]   ;;  %v6106_v4 = vld [vmem:[#allocation7 + $0x28c] ss:$20 sps:$4 sm:$0xff]   ;;  %v7376_v5 = vpack.c.bf16 %v725_v2, %v725_v2  ;;  %v6107_v10 = vld [vmem:[#allocation7 + $0x2a8] ss:$20 sps:$4 sm:$0xff]  }
 0x179   : > { %v6101_v6 = vld [vmem:[#allocation7 + $0x280] ss:$20 sps:$4 sm:$0xff]   ;;  %v6110_v11 = vld [vmem:[#allocation7 + $0x2b0] ss:$20 sps:$4 sm:$0xff]   ;;  %v6116_v15 = vld [vmem:[#allocation7 + $0x2d8] ss:$20 sps:$4 sm:$0xff]  }
 0x17a   : > { %v6109_v8 = vld [vmem:[#allocation7 + $0x2ac] ss:$20 sps:$4 sm:$0xff]   ;;  %v6115_v12 = vld [vmem:[#allocation7 + $0x2d4] ss:$20 sps:$4 sm:$0xff]   ;;  %v6118_v13 = vld [vmem:[#allocation7 + $0x2dc] ss:$20 sps:$4 sm:$0xff]  }
 0x17b   : > { %1738 = vmatpush1.bf16.msra.mxu0 %v6045_v26  ;;  %1820 = vmatpush1.bf16.msra.mxu1 %v6046_v27  ;;  %v6113_v14 = vld [vmem:[#allocation7 + $0x2d0] ss:$20 sps:$4 sm:$0xff]   ;;  %v6119_v18 = vld [vmem:[#allocation7 + $0x2f8] ss:$20 sps:$4 sm:$0xff]   ;;  %v6122_v19 = vld [vmem:[#allocation7 + $0x300] ss:$20 sps:$4 sm:$0xff]  }
 0x17c   : > { %1739 = vmatprep.subr.bf16.mxu0 %v6047_v28  ;;  %1821 = vmatprep.subr.bf16.mxu1 %v6049_v29  ;;  %v6121_v16 = vld [vmem:[#allocation7 + $0x2fc] ss:$20 sps:$4 sm:$0xff]   ;;  %v6124_v17 = vld [vmem:[#allocation7 + $0x304] ss:$20 sps:$4 sm:$0xff]   ;;  %v6130_v21 = vld [vmem:[#allocation7 + $0x32c] ss:$20 sps:$4 sm:$0xff]  }
 0x17d   : > { %v6127_v20 = vld [vmem:[#allocation7 + $0x324] ss:$20 sps:$4 sm:$0xff]   ;;  %v6125_v22 = vld [vmem:[#allocation7 + $0x320] ss:$20 sps:$4 sm:$0xff]   ;;  %v6128_v23 = vld [vmem:[#allocation7 + $0x328] ss:$20 sps:$4 sm:$0xff]  }
 0x17e   : > { %v6133_v24 = vld [vmem:[#allocation7 + $0x34c] ss:$20 sps:$4 sm:$0xff]   ;;  %v728_v25 = vld [vmem:[%s7338_s1 + $0x18] sm:$0xff]  ;;  %v6134_v29 = vld [vmem:[#allocation7 + $0x350] ss:$20 sps:$4 sm:$0xff]   ;;  %s7885_s29 = sld [smem:[#allocation36_spill]] }
 0x17f   : > { %1740 = vmatpush1.bf16.msra.mxu0 %v6051_v30  ;;  %1822 = vmatpush1.bf16.msra.mxu1 %v6052_v31  ;;  %v6136_v26 = vld [vmem:[#allocation7 + $0x354] ss:$20 sps:$4 sm:$0xff]   ;;  %v7381_v27 = vpack.c.bf16 %v728_v25, %v728_v25  ;;  %v6142_v31 = vld [vmem:[#allocation7 + $0x37c] ss:$20 sps:$4 sm:$0xff]   ;;  %s7886_s28 = sld [smem:[#allocation37_spill]]  ;;  %vm2891_vm4 = vcmask 1043456  }
 0x180   : > { %1741 = vmatprep.subr.bf16.mxu0 %v6053_v32  ;;  %1823 = vmatprep.subr.bf16.mxu1 %v6055_v33  ;;  %v6131_v28 = vld [vmem:[#allocation7 + $0x348] ss:$20 sps:$4 sm:$0xff]   ;;  %v6137_v32 = vld [vmem:[#allocation7 + $0x370] ss:$20 sps:$4 sm:$0xff]   ;;  %v6140_v33 = vld [vmem:[#allocation7 + $0x378] ss:$20 sps:$4 sm:$0xff]  }
 0x181   : > { %v6139_v30 = vld [vmem:[#allocation7 + $0x374] ss:$20 sps:$4 sm:$0xff]   ;;  %v6185_v2 = vld [vmem:[#allocation7 + $0x290] ss:$20 sps:$4 sm:$0xff]   ;;  %vm2875_vm5 = vcmask 64512   ;;  %s7887_s13 = sld [smem:[#allocation38_spill]] }
 0x182   : > { %v6163_v46 = vld [vmem:[#allocation7 + $0x414] ss:$20 sps:$4 sm:$0xff]   ;;  %vm4028_vm12 = vcmask 57344   ;;  %vm4492_vm13 = vcmask 1040384   ;;  %s5424_s3 = sshll.u32 %s7001_s0, 4  ;;  %s723_s17 = scalar_lea.vmem [#allocation20], %s7334_s6 }
 0x183   : > { %1742 = vmatpush1.bf16.msra.mxu0 %v6057_v34  ;;  %1824 = vmatpush1.bf16.msra.mxu1 %v6058_v35  ;;  %v6145_v34 = vld [vmem:[#allocation7 + $0x39c] ss:$20 sps:$4 sm:$0xff]   ;;  %v6148_v35 = vld [vmem:[#allocation7 + $0x3a4] ss:$20 sps:$4 sm:$0xff]   ;;  %s4876_s7 = sshll.u32 %s723_s17, 4  ;;  %s7891_s9 = sld [smem:[#allocation42_spill]]  ;;  %s7770_s7 = int_to_ptr.vmem [resolvable:$true] %s4876_s7 }
 0x184   : > { %1743 = vmatprep.subr.bf16.mxu0 %v6059_v36  ;;  %1825 = vmatprep.subr.bf16.mxu1 %v6061_v37  ;;  %v6143_v36 = vld [vmem:[#allocation7 + $0x398] ss:$20 sps:$4 sm:$0xff]   ;;  %v6146_v37 = vld [vmem:[#allocation7 + $0x3a0] ss:$20 sps:$4 sm:$0xff]   ;;  %v6211_v25 = vld [vmem:[#allocation7 + $0x128] ss:$20 sps:$4 sm:$0xff]  }
 0x185   : > { %s4864_s5 = scalar_lea.sflag [#allocation4], %s7334_s6  ;;  %s6775_s19 = scalar_lea.vmem %s7770_s7, 16 }
 0x186   : > { %p6776_p5 = scmp.ne.s32.totalorder %s7770_s7, %s6775_s19  ;;  %p7892_p9 = scmp.ne.s32.totalorder %s7867_s15, 0 }
 0x187   : > { %1744 = vmatpush1.bf16.msra.mxu0 %v6063_v38  ;;  %1826 = vmatpush1.bf16.msra.mxu1 %v6064_v39  ;;  %v6151_v38 = vld [vmem:[#allocation7 + $0x3c4] ss:$20 sps:$4 sm:$0xff]   ;;  %v6154_v39 = vld [vmem:[#allocation7 + $0x3cc] ss:$20 sps:$4 sm:$0xff]   ;;  %s6889_s0 = smov [#allocation20]  }
 0x188   : > { %1745 = vmatprep.subr.bf16.mxu0 %v6065_v40  ;;  %1827 = vmatprep.subr.bf16.mxu1 %v6067_v41  ;;  %v6149_v40 = vld [vmem:[#allocation7 + $0x3c0] ss:$20 sps:$4 sm:$0xff]   ;;  %v6152_v41 = vld [vmem:[#allocation7 + $0x3c8] ss:$20 sps:$4 sm:$0xff]   ;;  %p6777_p3 = pnand %p6776_p5, %p7892_p9  ;;  %s6779_s22 = sshll.u32 %s6889_s0, 4  ;;  %s6780_s22 = int_to_ptr.vmem [resolvable:$false] %s6779_s22 }
 0x189   : > { %s7768_s4 = scalar_lea.hbm %s7891_s9, %s5424_s3  ;;  %p6782_p11 = scmp.lt.s32.totalorder %s7770_s7, %s6780_s22 }
 0x18a   : > { %p6778_p7 = pneg %p6777_p3 }
 0x18b   : > { %1746 = vmatpush1.bf16.msra.mxu0 %v6069_v42  ;;  %1828 = vmatpush1.bf16.msra.mxu1 %v6070_v43  ;;  %v6157_v42 = vld [vmem:[#allocation7 + $0x3ec] ss:$20 sps:$4 sm:$0xff]   ;;  %v6160_v43 = vld [vmem:[#allocation7 + $0x3f4] ss:$20 sps:$4 sm:$0xff]  }
 0x18c   : > { %1747 = vmatprep.subr.bf16.mxu0 %v6071_v44  ;;  %1829 = vmatprep.subr.bf16.mxu1 %v6073_v45  ;;  %v6155_v44 = vld [vmem:[#allocation7 + $0x3e8] ss:$20 sps:$4 sm:$0xff]   ;;  %v6158_v45 = vld [vmem:[#allocation7 + $0x3f0] ss:$20 sps:$4 sm:$0xff]  }
 0x18f   : > { %1748 = vmatpush1.bf16.msra.mxu0 %v6075_v47  ;;  %1830 = vmatpush1.bf16.msra.mxu1 %v6076_v49  ;;  %v6166_v47 = vld [vmem:[#allocation7 + $0x41c] ss:$20 sps:$4 sm:$0xff]  }
 0x190   : > { %1749 = vmatprep.subr.bf16.mxu0 %v6077_v50  ;;  %1831 = vmatprep.subr.bf16.mxu1 %v6079_v51  ;;  %v6161_v49 = vld [vmem:[#allocation7 + $0x410] ss:$20 sps:$4 sm:$0xff]   ;;  %v6164_v50 = vld [vmem:[#allocation7 + $0x418] ss:$20 sps:$4 sm:$0xff]  }
 0x191   : > { %v6169_v51 = vld [vmem:[#allocation7 + $0x43c] ss:$20 sps:$4 sm:$0xff]  }
 0x193   : > { %1750 = vmatpush1.bf16.msra.mxu0 %v6081_v52  ;;  %1832 = vmatpush1.bf16.msra.mxu1 %v6082_v53  ;;  %v6172_v52 = vld [vmem:[#allocation7 + $0x444] ss:$20 sps:$4 sm:$0xff]  }
 0x194   : > { %1751 = vmatprep.subr.bf16.mxu0 %v6083_v54  ;;  %1833 = vmatprep.subr.bf16.mxu1 %v6085_v55  ;;  %v6167_v53 = vld [vmem:[#allocation7 + $0x438] ss:$20 sps:$4 sm:$0xff]   ;;  %v6170_v54 = vld [vmem:[#allocation7 + $0x440] ss:$20 sps:$4 sm:$0xff]  }
 0x195   : > { %v6175_v55 = vld [vmem:[#allocation7 + $0x464] ss:$20 sps:$4 sm:$0xff]  }
 0x197   : > { %1752 = vmatpush1.bf16.msra.mxu0 %v6087_v56  ;;  %1834 = vmatpush1.bf16.msra.mxu1 %v6088_v57  ;;  %v6178_v56 = vld [vmem:[#allocation7 + $0x46c] ss:$20 sps:$4 sm:$0xff]  }
 0x198   : > { %1753 = vmatprep.subr.bf16.mxu0 %v6089_v58  ;;  %1835 = vmatprep.subr.bf16.mxu1 %v6091_v59  ;;  %v6173_v57 = vld [vmem:[#allocation7 + $0x460] ss:$20 sps:$4 sm:$0xff]   ;;  %v6176_v58 = vld [vmem:[#allocation7 + $0x468] ss:$20 sps:$4 sm:$0xff]  }
 0x199   : > { %v6181_v59 = vld [vmem:[#allocation7 + $0x48c] ss:$20 sps:$4 sm:$0xff]  }
 0x19b   : > { %1754 = vmatpush1.bf16.msra.mxu0 %v6093_v60  ;;  %1836 = vmatpush1.bf16.msra.mxu1 %v6094_v61  ;;  %v6184_v60 = vld [vmem:[#allocation7 + $0x494] ss:$20 sps:$4 sm:$0xff]  }
 0x19c   : > { %1755 = vmatprep.subr.bf16.mxu0 %v6095_v62  ;;  %1837 = vmatprep.subr.bf16.mxu1 %v6097_v63  ;;  %v6179_v61 = vld [vmem:[#allocation7 + $0x488] ss:$20 sps:$4 sm:$0xff]   ;;  %v6182_v62 = vld [vmem:[#allocation7 + $0x490] ss:$20 sps:$4 sm:$0xff]  }
 0x19d   : > { %v727_v63 = vld [vmem:[%s7338_s1 + $0x10] sm:$0xff]  ;;  %s7888_s1 = sld [smem:[#allocation41_spill]] }
 0x19f   : > { %1756 = vmatpush1.bf16.msra.mxu0 %v6099_v0  ;;  %1838 = vmatpush1.bf16.msra.mxu1 %v6100_v1  ;;  %v6189_v0 = vld [vmem:[#allocation7 + $0x150] ss:$20 sps:$4 sm:$0xff]   ;;  %v7388_v1 = vpack.c.bf16 %v727_v63, %v727_v63 }
 0x1a0   : > { %1766 = vmatprep.subr.bf16.mxu0 %v6103_v3  ;;  %1848 = vmatprep.subr.bf16.mxu1 %v6106_v4  ;;  %v6190_v3 = vld [vmem:[#allocation7 + $0x10] ss:$20 sps:$4 sm:$0xff]   ;;  %v6886_v4 = vmov 0  }
 0x1a1   : > { %v6246_v63 = vld [vmem:[#allocation10 + $0xb8] sm:$0xff]  }
 0x1a2   : > { %1758 = vmatmul.mubr.bf16.vlgmr.msra.gmra.mrb[0].mxu0 %v7376_v5  ;;  %1840 = vmatmul.mubr.bf16.vlgmr.msra.gmra.mrb[0].mxu1 %v7376_v5 }
 0x1a3   : > { %1767 = vmatpush1.bf16.msra.mxu0 %v6101_v6  ;;  %1849 = vmatpush1.bf16.msra.mxu1 %v6104_v7  ;;  %v6192_v6 = vld [vmem:[#allocation7 + $0x178] ss:$20 sps:$4 sm:$0xff]  }
 0x1a4   : > { %1768 = vmatprep.subr.bf16.mxu0 %v6109_v8  ;;  %1850 = vmatprep.subr.bf16.mxu1 %v6112_v9  ;;  %v6186_v7 = vld [vmem:[#allocation7 + $0x2b8] ss:$20 sps:$4 sm:$0xff]   ;;  %v6195_v9 = vld [vmem:[#allocation7 + $0x1a0] ss:$20 sps:$4 sm:$0xff]  }
 0x1a5   : > { %5224 = vmatprep.mubr.msk.bf16.mxu0 %vm1721_vm0, %v7381_v27  ;;  %5225 = vmatprep.mubr.msk.bf16.mxu1 %vm1721_vm0, %v7381_v27  ;;  %v6193_v8 = vld [vmem:[#allocation7 + $0x38] ss:$20 sps:$4 sm:$0xff]  }
 0x1a7   : > { %1769 = vmatpush1.bf16.msra.mxu0 %v6107_v10  ;;  %1851 = vmatpush1.bf16.msra.mxu1 %v6110_v11  ;;  %v6187_v10 = vld [vmem:[#allocation7 + $0x2e0] ss:$20 sps:$4 sm:$0xff]  }
 0x1a8   : > { %1770 = vmatprep.subr.bf16.mxu0 %v6115_v12  ;;  %1852 = vmatprep.subr.bf16.mxu1 %v6118_v13  ;;  %v6196_v11 = vld [vmem:[#allocation7 + $0x60] ss:$20 sps:$4 sm:$0xff]   ;;  %v6198_v12 = vld [vmem:[#allocation7 + $0x1c8] ss:$20 sps:$4 sm:$0xff]  }
 0x1a9   : > { %v6188_v13 = vld [vmem:[#allocation7 + $0x308] ss:$20 sps:$4 sm:$0xff]  }
 0x1ab   : > { %1771 = vmatpush1.bf16.msra.mxu0 %v6113_v14  ;;  %1853 = vmatpush1.bf16.msra.mxu1 %v6116_v15  ;;  %v6199_v14 = vld [vmem:[#allocation7 + $0x88] ss:$20 sps:$4 sm:$0xff]   ;;  %v6201_v15 = vld [vmem:[#allocation7 + $0x1f0] ss:$20 sps:$4 sm:$0xff]  }
 0x1ac   : > { %1772 = vmatprep.subr.bf16.mxu0 %v6121_v16  ;;  %1854 = vmatprep.subr.bf16.mxu1 %v6124_v17  ;;  %v6202_v16 = vld [vmem:[#allocation7 + $0xb0] ss:$20 sps:$4 sm:$0xff]   ;;  %v6204_v17 = vld [vmem:[#allocation7 + $0x218] ss:$20 sps:$4 sm:$0xff]  }
 0x1af   : > { %1773 = vmatpush1.bf16.msra.mxu0 %v6119_v18  ;;  %1855 = vmatpush1.bf16.msra.mxu1 %v6122_v19  ;;  %v6194_v18 = vld [vmem:[#allocation7 + $0x358] ss:$20 sps:$4 sm:$0xff]  }
 0x1b0   : > { %1774 = vmatprep.subr.bf16.mxu0 %v6127_v20  ;;  %1856 = vmatprep.subr.bf16.mxu1 %v6130_v21  ;;  %v6205_v19 = vld [vmem:[#allocation7 + $0xd8] ss:$20 sps:$4 sm:$0xff]   ;;  %v6207_v20 = vld [vmem:[#allocation7 + $0x240] ss:$20 sps:$4 sm:$0xff]  }
 0x1b1   : > { %v6197_v21 = vld [vmem:[#allocation7 + $0x380] ss:$20 sps:$4 sm:$0xff]  }
 0x1b3   : > { %1775 = vmatpush1.bf16.msra.mxu0 %v6125_v22  ;;  %1857 = vmatpush1.bf16.msra.mxu1 %v6128_v23  ;;  %v6208_v22 = vld [vmem:[#allocation7 + $0x100] ss:$20 sps:$4 sm:$0xff]   ;;  %v6210_v23 = vld [vmem:[#allocation7 + $0x268] ss:$20 sps:$4 sm:$0xff]  }
 0x1b4   : > { %1776 = vmatprep.subr.bf16.mxu0 %v6133_v24  ;;  %1858 = vmatprep.subr.bf16.mxu1 %v6136_v26  ;;  %v6200_v24 = vld [vmem:[#allocation7 + $0x3a8] ss:$20 sps:$4 sm:$0xff]  }
 0x1b5   : > { %v6215_v26 = vld [vmem:[#allocation10 + $0x40] sm:$0xff]  }
 0x1b7   : > { %1777 = vmatpush1.bf16.msra.mxu0 %v6131_v28  ;;  %1859 = vmatpush1.bf16.msra.mxu1 %v6134_v29  ;;  %v6217_v28 = vld [vmem:[#allocation10] sm:$0xff]   ;;  %v6219_v29 = vld [vmem:[#allocation10 + $0x48] sm:$0xff]  }
 0x1b8   : > { %1778 = vmatprep.subr.bf16.mxu0 %v6139_v30  ;;  %1860 = vmatprep.subr.bf16.mxu1 %v6142_v31  ;;  %v6206_v30 = vld [vmem:[#allocation7 + $0x3f8] ss:$20 sps:$4 sm:$0xff]   ;;  %v6221_v31 = vld [vmem:[#allocation10 + $0x8] sm:$0xff]  }
 0x1bb   : > { %1779 = vmatpush1.bf16.msra.mxu0 %v6137_v32  ;;  %1861 = vmatpush1.bf16.msra.mxu1 %v6140_v33  ;;  %v6223_v32 = vld [vmem:[#allocation10 + $0x50] sm:$0xff]   ;;  %v6209_v33 = vld [vmem:[#allocation7 + $0x420] ss:$20 sps:$4 sm:$0xff]  }
 0x1bc   : > { %1780 = vmatprep.subr.bf16.mxu0 %v6145_v34  ;;  %1862 = vmatprep.subr.bf16.mxu1 %v6148_v35  ;;  %v6225_v34 = vld [vmem:[#allocation10 + $0x10] sm:$0xff]   ;;  %v6227_v35 = vld [vmem:[#allocation10 + $0x58] sm:$0xff]  }
 0x1bf   : > { %1781 = vmatpush1.bf16.msra.mxu0 %v6143_v36  ;;  %1863 = vmatpush1.bf16.msra.mxu1 %v6146_v37  ;;  %v6212_v36 = vld [vmem:[#allocation7 + $0x448] ss:$20 sps:$4 sm:$0xff]   ;;  %v6229_v37 = vld [vmem:[#allocation10 + $0x18] sm:$0xff]  }
 0x1c0   : > { %1782 = vmatprep.subr.bf16.mxu0 %v6151_v38  ;;  %1864 = vmatprep.subr.bf16.mxu1 %v6154_v39  ;;  %v6231_v38 = vld [vmem:[#allocation10 + $0x60] sm:$0xff]  }
 0x1c1   : > { %v6233_v39 = vld [vmem:[#allocation10 + $0x20] sm:$0xff]  }
 0x1c3   : > { %1783 = vmatpush1.bf16.msra.mxu0 %v6149_v40  ;;  %1865 = vmatpush1.bf16.msra.mxu1 %v6152_v41  ;;  %v6235_v40 = vld [vmem:[#allocation10 + $0x68] sm:$0xff]   ;;  %v6214_v41 = vld [vmem:[#allocation7 + $0x498] ss:$20 sps:$4 sm:$0xff]  }
 0x1c4   : > { %1784 = vmatprep.subr.bf16.mxu0 %v6157_v42  ;;  %1866 = vmatprep.subr.bf16.mxu1 %v6160_v43  ;;  %v6237_v42 = vld [vmem:[#allocation10 + $0x28] sm:$0xff]   ;;  %v6216_v43 = vld [vmem:[#allocation10 + $0xc0] sm:$0xff]  }
 0x1c7   : > { %1785 = vmatpush1.bf16.msra.mxu0 %v6155_v44  ;;  %1867 = vmatpush1.bf16.msra.mxu1 %v6158_v45  ;;  %v6218_v44 = vld [vmem:[#allocation10 + $0x80] sm:$0xff]   ;;  %v6220_v45 = vld [vmem:[#allocation10 + $0xc8] sm:$0xff]  }
 0x1c8   : > { %1786 = vmatprep.subr.bf16.mxu0 %v6163_v46  ;;  %1868 = vmatprep.subr.bf16.mxu1 %v6166_v47  ;;  %v6222_v46 = vld [vmem:[#allocation10 + $0x88] sm:$0xff]   ;;  %v6224_v47 = vld [vmem:[#allocation10 + $0xd0] sm:$0xff]  }
 0x1cb   : > { %1787 = vmatpush1.bf16.msra.mxu0 %v6161_v49  ;;  %1869 = vmatpush1.bf16.msra.mxu1 %v6164_v50  ;;  %v6226_v49 = vld [vmem:[#allocation10 + $0x90] sm:$0xff]   ;;  %v6228_v50 = vld [vmem:[#allocation10 + $0xd8] sm:$0xff]  }
 0x1cc   : > { %1788 = vmatprep.subr.bf16.mxu0 %v6169_v51  ;;  %1870 = vmatprep.subr.bf16.mxu1 %v6172_v52  ;;  %v6230_v51 = vld [vmem:[#allocation10 + $0x98] sm:$0xff]   ;;  %v6232_v52 = vld [vmem:[#allocation10 + $0xe0] sm:$0xff]  }
 0x1cf   : > { %1789 = vmatpush1.bf16.msra.mxu0 %v6167_v53  ;;  %1871 = vmatpush1.bf16.msra.mxu1 %v6170_v54  ;;  %v6234_v53 = vld [vmem:[#allocation10 + $0xa0] sm:$0xff]   ;;  %v6236_v54 = vld [vmem:[#allocation10 + $0xe8] sm:$0xff]  }
 0x1d0   : > { %1790 = vmatprep.subr.bf16.mxu0 %v6175_v55  ;;  %1872 = vmatprep.subr.bf16.mxu1 %v6178_v56  ;;  %v6238_v55 = vld [vmem:[#allocation10 + $0xa8] sm:$0xff]   ;;  %v6239_v56 = vld [vmem:[#allocation10 + $0x70] sm:$0xff]  }
 0x1d3   : > { %1791 = vmatpush1.bf16.msra.mxu0 %v6173_v57  ;;  %1873 = vmatpush1.bf16.msra.mxu1 %v6176_v58  ;;  %v6240_v57 = vld [vmem:[#allocation10 + $0xf0] sm:$0xff]  }
 0x1d4   : > { %1792 = vmatprep.subr.bf16.mxu0 %v6181_v59  ;;  %1874 = vmatprep.subr.bf16.mxu1 %v6184_v60  ;;  %v6241_v58 = vld [vmem:[#allocation10 + $0x30] sm:$0xff]   ;;  %v6243_v60 = vld [vmem:[#allocation10 + $0x78] sm:$0xff]  }
 0x1d5   : > { %v6242_v59 = vld [vmem:[#allocation10 + $0xb0] sm:$0xff]  }
 0x1d7   : > { %1793 = vmatpush1.bf16.msra.mxu0 %v6179_v61  ;;  %1875 = vmatpush1.bf16.msra.mxu1 %v6182_v62  ;;  %v6244_v61 = vld [vmem:[#allocation10 + $0xf8] sm:$0xff]  }
 0x1d8   : > { %1929 = vmatprep.subr.bf16.mxu1 %v6886_v4  ;;  %5428 = vmatprep.subr.bf16.mxu0 %v6189_v0  ;;  %v6245_v62 = vld [vmem:[#allocation10 + $0x38] sm:$0xff]   ;;  %v6887_v0 = vmov 0.0  }
 0x1da   : > { %1799 = vmatmul.mubr.bf16.vlgmr.msra.gmra.mrb[0].mxu0 %v7388_v1  ;;  %1881 = vmatmul.mubr.bf16.vlgmr.msra.gmra.mrb[0].mxu1 %v7388_v1 }
 0x1db   : > { %1930 = vmatpush1.bf16.msra.mxu1 %v6185_v2  ;;  %5429 = vmatpush3.bf16.msra.mxu0 %v6190_v3 }
 0x1dc   : > { %1931 = vmatprep.subr.bf16.mxu1 %v6886_v4  ;;  %5430 = vmatprep.subr.bf16.mxu0 %v6192_v6 }
 0x1dd   : > { %1921 = vmatprep.mubr.bf16.mxu0 %v7371_v48  ;;  %5226 = vmatprep.mubr.msk.bf16.mxu1 %vm1721_vm0, %v7381_v27  ;;  %v6191_v48 = vld [vmem:[#allocation7 + $0x330] ss:$20 sps:$4 sm:$0xff]  }
 0x1de   : > { %v6203_v27 = vld [vmem:[#allocation7 + $0x3d0] ss:$20 sps:$4 sm:$0xff]  }
 0x1df   : > { %1932 = vmatpush1.bf16.msra.mxu1 %v6186_v7  ;;  %5431 = vmatpush3.bf16.msra.mxu0 %v6193_v8  ;;  %v7422_v7 = vld [vmem:[#allocation8] sm:$0x1f] }
 0x1e0   : > { %1933 = vmatprep.subr.bf16.mxu1 %v6886_v4  ;;  %5432 = vmatprep.subr.bf16.mxu0 %v6195_v9 }
 0x1e3   : > { %1934 = vmatpush1.bf16.msra.mxu1 %v6187_v10  ;;  %5433 = vmatpush3.bf16.msra.mxu0 %v6196_v11 }
 0x1e4   : > { %1935 = vmatprep.subr.bf16.mxu1 %v6886_v4  ;;  %5434 = vmatprep.subr.bf16.mxu0 %v6198_v12 }
 0x1e7   : > { %1936 = vmatpush1.bf16.msra.mxu1 %v6188_v13  ;;  %5435 = vmatpush3.bf16.msra.mxu0 %v6199_v14 }
 0x1e8   : > { %1937 = vmatprep.subr.bf16.mxu1 %v6886_v4  ;;  %5436 = vmatprep.subr.bf16.mxu0 %v6201_v15 }
 0x1eb   : > { %1938 = vmatpush1.bf16.msra.mxu1 %v6191_v48  ;;  %5437 = vmatpush3.bf16.msra.mxu0 %v6202_v16 }
 0x1ec   : > { %1939 = vmatprep.subr.bf16.mxu1 %v6886_v4  ;;  %5438 = vmatprep.subr.bf16.mxu0 %v6204_v17 }
 0x1ef   : > { %1940 = vmatpush1.bf16.msra.mxu1 %v6194_v18  ;;  %5439 = vmatpush3.bf16.msra.mxu0 %v6205_v19 }
 0x1f0   : > { %1941 = vmatprep.subr.bf16.mxu1 %v6886_v4  ;;  %5440 = vmatprep.subr.bf16.mxu0 %v6207_v20 }
 0x1f3   : > { %1942 = vmatpush1.bf16.msra.mxu1 %v6197_v21  ;;  %5441 = vmatpush3.bf16.msra.mxu0 %v6208_v22 }
 0x1f4   : > { %1943 = vmatprep.subr.bf16.mxu1 %v6886_v4  ;;  %5442 = vmatprep.subr.bf16.mxu0 %v6210_v23 }
 0x1f7   : > { %1944 = vmatpush1.bf16.msra.mxu1 %v6200_v24  ;;  %5443 = vmatpush3.bf16.msra.mxu0 %v6211_v25 }
 0x1f8   : > { %1945 = vmatprep.subr.bf16.mxu1 %v6886_v4  ;;  %5450 = vmatprep.subr.bf16.mxu0 %v6215_v26 }
 0x1fa   : > { %1922 = vmatmul.mubr.bf16.vlgmr.msra.gmra.mrb[4].mxu0 %v7376_v5  ;;  %v6213_v5 = vld [vmem:[#allocation7 + $0x470] ss:$20 sps:$4 sm:$0xff]  }
 0x1fb   : > { %1946 = vmatpush1.bf16.msra.mxu1 %v6203_v27  ;;  %5451 = vmatpush3.bf16.msra.mxu0 %v6217_v28 }
 0x1fc   : > { %1947 = vmatprep.subr.bf16.mxu1 %v6886_v4  ;;  %5452 = vmatprep.subr.bf16.mxu0 %v6219_v29 }
 0x1ff   : > { %1948 = vmatpush1.bf16.msra.mxu1 %v6206_v30  ;;  %5453 = vmatpush3.bf16.msra.mxu0 %v6221_v31  ;;  %v6247_v31 = vld [vmem:[#allocation10 + $0x100] sm:$0xff]  }
 0x200   : > { %1949 = vmatprep.subr.bf16.mxu1 %v6886_v4  ;;  %5454 = vmatprep.subr.bf16.mxu0 %v6223_v32 }
 0x203   : > { %1950 = vmatpush1.bf16.msra.mxu1 %v6209_v33  ;;  %5455 = vmatpush3.bf16.msra.mxu0 %v6225_v34  ;;  %v6248_v34 = vld [vmem:[#allocation10 + $0x108] sm:$0xff]  }
 0x204   : > { %1951 = vmatprep.subr.bf16.mxu1 %v6886_v4  ;;  %5456 = vmatprep.subr.bf16.mxu0 %v6227_v35  ;;  %v6249_v35 = vld [vmem:[#allocation10 + $0x110] sm:$0xff]  }
 0x207   : > { %1952 = vmatpush1.bf16.msra.mxu1 %v6212_v36  ;;  %5457 = vmatpush3.bf16.msra.mxu0 %v6229_v37  ;;  %v6250_v36 = vld [vmem:[#allocation10 + $0x118] sm:$0xff]   ;;  %v6251_v37 = vld [vmem:[#allocation10 + $0x120] sm:$0xff]  }
 0x208   : > { %1953 = vmatprep.subr.bf16.mxu1 %v6886_v4  ;;  %5458 = vmatprep.subr.bf16.mxu0 %v6231_v38  ;;  %v6252_v38 = vld [vmem:[#allocation10 + $0x128] sm:$0xff]  }
 0x20b   : > { %1954 = vmatpush1.bf16.msra.mxu1 %v6213_v5  ;;  %5459 = vmatpush3.bf16.msra.mxu0 %v6233_v39  ;;  %v6253_v5 = vld [vmem:[#allocation10 + $0x130] sm:$0xff]  }
 0x20c   : > { %1955 = vmatprep.subr.bf16.mxu1 %v6886_v4  ;;  %5460 = vmatprep.subr.bf16.mxu0 %v6235_v40 }
 0x20f   : > { %1956 = vmatpush1.bf16.msra.mxu1 %v6214_v41  ;;  %5461 = vmatpush3.bf16.msra.mxu0 %v6237_v42 }
 0x210   : > { %5472 = vmatprep.subr.bf16.mxu1 %v6216_v43  ;;  %5462 = vmatprep.subr.bf16.mxu0 %v6239_v56  ;;  %v6254_v43 = vld [vmem:[#allocation10 + $0x138] sm:$0xff]   ;;  %v6255_v56 = vld [vmem:[#allocation13] sm:$0xff]  }
 0x212   : > { %1962 = vmatmul.mubr.bf16.vlgmr.msra.gmra.mrb[4].mxu1 %v7388_v1  ;;  %v916_v1 = vlaneseq }
 0x213   : > { %5473 = vmatpush3.bf16.msra.mxu1 %v6218_v44  ;;  %5463 = vmatpush3.bf16.msra.mxu0 %v6241_v58  ;;  %v6257_v58 = vld [vmem:[#allocation13 + $0x10] sm:$0xff]  }
 0x214   : > { %5474 = vmatprep.subr.bf16.mxu1 %v6220_v45  ;;  %5464 = vmatprep.subr.bf16.mxu0 %v6243_v60  ;;  %v7414_v2 = vshrl.u32 %v916_v1, 7  ;;  %v6259_v60 = vld [vmem:[#allocation13 + $0x20] sm:$0xff]  }
 0x216   : > { %v7417_v3 = vsub.s32 0, %v7414_v2  ;;  %v7420_v6 = vsub.s32 2, %v7414_v2  ;;  %v7425_v8 = vsub.s32 1, %v7414_v2  ;;  %v930_v9 = vsub.s32 3, %v7414_v2 }
 0x217   : > { %5475 = vmatpush3.bf16.msra.mxu1 %v6222_v46  ;;  %5465 = vmatpush3.bf16.msra.mxu0 %v6245_v62  ;;  %v934_v45 = vsub.s32 4, %v7414_v2  ;;  %v6261_v62 = vld [vmem:[#allocation13 + $0x30] sm:$0xff]   ;;  %v5352_v2 = vld [vmem:[%s7886_s28 + $0x3] sm:$0x7] }
 0x218   : > { %5476 = vmatprep.subr.bf16.mxu1 %v6224_v47  ;;  %5624 = vmatprep.subr.bf16.mxu0 %v6887_v0  ;;  %v919_v10 = vrot.slane %v7422_v7, %v7417_v3  ;;  %v927_v11 = vrot.slane %v7422_v7, %v7420_v6  ;;  %v923_v12 = vrot.slane %v7422_v7, %v7425_v8 }
 0x219   : > { %v931_v13 = vrot.slane %v7422_v7, %v930_v9  ;;  %v935_v46 = vrot.slane %v7422_v7, %v934_v45  ;;  %v6263_v7 = vld [vmem:[#allocation14] ss:$12 sps:$4 sm:$0xff]   ;;  %v6282_v45 = vld [vmem:[#allocation14 + $0x68] ss:$12 sps:$4 sm:$0xff]  }
 0x21b   : > { %5477 = vmatpush3.bf16.msra.mxu1 %v6226_v49 }
 0x21c   : > { %5478 = vmatprep.subr.bf16.mxu1 %v6228_v50 }
 0x21f   : > { %5479 = vmatpush3.bf16.msra.mxu1 %v6230_v51 }
 0x220   : > { %5480 = vmatprep.subr.bf16.mxu1 %v6232_v52 }
 0x223   : > { %5481 = vmatpush3.bf16.msra.mxu1 %v6234_v53 }
 0x224   : > { %5482 = vmatprep.subr.bf16.mxu1 %v6236_v54 }
 0x227   : > { %5483 = vmatpush3.bf16.msra.mxu1 %v6238_v55 }
 0x228   : > { %5484 = vmatprep.subr.bf16.mxu1 %v6240_v57  ;;  %v6256_v57 = vld [vmem:[#allocation13 + $0x8] sm:$0xff]  }
 0x22b   : > { %5485 = vmatpush3.bf16.msra.mxu1 %v6242_v59  ;;  %v6258_v59 = vld [vmem:[#allocation13 + $0x18] sm:$0xff]  }
 0x22c   : > { %5486 = vmatprep.subr.bf16.mxu1 %v6244_v61  ;;  %v6260_v61 = vld [vmem:[#allocation13 + $0x28] sm:$0xff]  }
 0x22f   : > { %5487 = vmatpush3.bf16.msra.mxu1 %v6246_v63  ;;  %v6262_v63 = vld [vmem:[#allocation13 + $0x38] sm:$0xff]  }
 0x230   : > { %5644 = vmatprep.subr.bf16.mxu1 %v6887_v0 }
 0x2ad   : > { %v1800_v14 = vpop.f32.mrb[0].mxu0  ;;  %v1882_v15 = vpop.f32.mrb[0].mxu1 }
 0x2ae   : > { %v5840_v48 = vadd.f32 %v1800_v14, %v919_v10  ;;  %v5842_v16 = vadd.f32 %v1882_v15, %v927_v11  ;;  %v1802_v17 = vpop.f32.mrb[1].mxu0  ;;  %v1884_v18 = vpop.f32.mrb[1].mxu1  ;;  %v6265_v10 = vld [vmem:[#allocation14 + $0x4] ss:$12 sps:$4 sm:$0xff]   ;;  %v6269_v11 = vld [vmem:[#allocation14 + $0x1c] ss:$12 sps:$4 sm:$0xff]  }
 0x2af   : > { %v5841_v19 = vadd.f32 %v1802_v17, %v923_v12  ;;  %v5843_v20 = vadd.f32 %v1884_v18, %v931_v13  ;;  %v1804_v21 = vpop.f32.mrb[2].mxu0  ;;  %v1886_v22 = vpop.f32.mrb[2].mxu1  ;;  %v6267_v12 = vld [vmem:[#allocation14 + $0x18] ss:$12 sps:$4 sm:$0xff]   ;;  %v6273_v13 = vld [vmem:[#allocation14 + $0x34] ss:$12 sps:$4 sm:$0xff]  }
 0x2b0   : > { %v1969_v23 = vmax.f32 %v5840_v48, 0.0  ;;  %v1971_v24 = vmax.f32 %v5842_v16, 0.0  ;;  %v1805_v25 = vpop.f32.mrb[3].mxu0  ;;  %v1887_v26 = vpop.f32.mrb[3].mxu1  ;;  %v6271_v14 = vld [vmem:[#allocation14 + $0x30] ss:$12 sps:$4 sm:$0xff]  }
 0x2b1   : > { %v1970_v27 = vmax.f32 %v5841_v19, 0.0  ;;  %v1972_v28 = vmax.f32 %v5843_v20, 0.0  ;;  %v6277_v15 = vld [vmem:[#allocation14 + $0x4c] ss:$12 sps:$4 sm:$0xff]   ;;  %v6275_v48 = vld [vmem:[#allocation14 + $0x48] ss:$12 sps:$4 sm:$0xff]  }
 0x2b2   : > { %v1974_v32 = vpack.c.bf16 %v1969_v23, %v1969_v23  ;;  %v1976_v33 = vpack.c.bf16 %v1971_v24, %v1971_v24  ;;  %v6281_v16 = vld [vmem:[#allocation14 + $0x64] ss:$12 sps:$4 sm:$0xff]   ;;  %v6279_v17 = vld [vmem:[#allocation14 + $0x60] ss:$12 sps:$4 sm:$0xff]   ;;  %v6285_v18 = vld [vmem:[#allocation14 + $0x7c] ss:$12 sps:$4 sm:$0xff]  }
 0x2b3   : > { %v1975_v29 = vpack.c.bf16 %v1970_v27, %v1970_v27  ;;  %v1977_v30 = vpack.c.bf16 %v1972_v28, %v1972_v28  ;;  %v6283_v19 = vld [vmem:[#allocation14 + $0x78] ss:$12 sps:$4 sm:$0xff]   ;;  %v6289_v20 = vld [vmem:[#allocation14 + $0x94] ss:$12 sps:$4 sm:$0xff]   ;;  %v6287_v21 = vld [vmem:[#allocation14 + $0x90] ss:$12 sps:$4 sm:$0xff]  }
 0x2b4   : > { %v5227_v24 = vld [vmem:[#allocation11] ss:$0 sm:$0xff] }
 0x2b5   : > { %2338 = vmatprep.mubr.bf16.mxu0 %v1975_v29  ;;  %2378 = vmatprep.mubr.bf16.mxu1 %v1977_v30 }
 0x2b6   : > { %2339 = vmatmul.mubr.bf16.vlgmr.msra.gmra.mrb[8].mxu0 %v1974_v32  ;;  %2379 = vmatmul.mubr.bf16.vlgmr.msra.gmra.mrb[8].mxu1 %v1976_v33 }
 0x2b7   : > { %5625 = vmatpush3.bf16.msra.mxu0 %v6247_v31  ;;  %5640 = vmatprep.mubr.msk.bf16.mxu0 %vm6888_vm1, %v6887_v0 }
 0x2b8   : > { %5626 = vmatprep.subr.bf16.mxu0 %v6887_v0  ;;  %5660 = vmatprep.mubr.msk.bf16.mxu1 %vm6888_vm1, %v6887_v0 }
 0x2b9   : > { %5645 = vmatpush3.bf16.msra.mxu1 %v6255_v56 }
 0x2ba   : > { %5646 = vmatprep.subr.bf16.mxu1 %v6887_v0 }
 0x2bb   : > { %5627 = vmatpush3.bf16.msra.mxu0 %v6248_v34 }
 0x2bc   : > { %5628 = vmatprep.subr.bf16.mxu0 %v6887_v0 }
 0x2bd   : > { %5647 = vmatpush3.bf16.msra.mxu1 %v6256_v57 }
 0x2be   : > { %5648 = vmatprep.subr.bf16.mxu1 %v6887_v0 }
 0x2bf   : > { %5629 = vmatpush3.bf16.msra.mxu0 %v6249_v35 }
 0x2c0   : > { %5630 = vmatprep.subr.bf16.mxu0 %v6887_v0 }
 0x2c1   : > { %5649 = vmatpush3.bf16.msra.mxu1 %v6257_v58 }
 0x2c2   : > { %5650 = vmatprep.subr.bf16.mxu1 %v6887_v0 }
 0x2c3   : > { %5631 = vmatpush3.bf16.msra.mxu0 %v6250_v36 }
 0x2c4   : > { %5632 = vmatprep.subr.bf16.mxu0 %v6887_v0 }
 0x2c5   : > { %5651 = vmatpush3.bf16.msra.mxu1 %v6258_v59  ;;  %v2599_v59 = vld [vmem:[%s7886_s28] sm:$0x7] }
 0x2c6   : > { %5652 = vmatprep.subr.bf16.mxu1 %v6887_v0 }
 0x2c7   : > { %5633 = vmatpush3.bf16.msra.mxu0 %v6251_v37 }
 0x2c8   : > { %5634 = vmatprep.subr.bf16.mxu0 %v6887_v0 }
 0x2c9   : > { %5653 = vmatpush3.bf16.msra.mxu1 %v6259_v60  ;;  %v7485_v60 = vand.u32 127, %v916_v1 }
 0x2ca   : > { %5654 = vmatprep.subr.bf16.mxu1 %v6887_v0 }
 0x2cb   : > { %5635 = vmatpush3.bf16.msra.mxu0 %v6252_v38  ;;  %vm2542_vm2 = vcmp.lt.s32.totalorder %v7485_v60, 32  ;;  %vm2559_vm3 = vcmp.ge.s32.totalorder %v7485_v60, 96  ;;  %vm2547_vm6 = vcmp.ge.s32.totalorder %v7485_v60, 32  ;;  %vm2548_vm7 = vcmp.lt.s32.totalorder %v7485_v60, 64 }
 0x2cc   : > { %5636 = vmatprep.subr.bf16.mxu0 %v6887_v0  ;;  %vm2549_vm8 = vmand %vm2547_vm6, %vm2548_vm7  ;;  %vm2553_vm9 = vcmp.ge.s32.totalorder %v7485_v60, 64  ;;  %vm2554_vm10 = vcmp.lt.s32.totalorder %v7485_v60, 96 }
 0x2cd   : > { %v5444_v39 = vpop.f32.mrb[4].mxu0  ;;  %5655 = vmatpush3.bf16.msra.mxu1 %v6260_v61  ;;  %v2608_v61 = vrot.slane %v2599_v59, %v7425_v8  ;;  %vm2555_vm11 = vmand %vm2553_vm9, %vm2554_vm10 }
 0x2ce   : > { %v5445_v40 = vpop.f32.mrb[5].mxu0  ;;  %5656 = vmatprep.subr.bf16.mxu1 %v6887_v0 }
 0x2cf   : > { %v5446_v41 = vadd.f32 %v5445_v40, %v5444_v39  ;;  %v5447_v42 = vpop.f32.mrb[6].mxu0  ;;  %5637 = vmatpush3.bf16.msra.mxu0 %v6253_v5  ;;  %v6266_v40 = vld [vmem:[#allocation14 + $0x8] ss:$12 sps:$4 sm:$0xff]  }
 0x2d0   : > { %v5448_v44 = vpop.f32.mrb[7].mxu0  ;;  %5638 = vmatprep.subr.bf16.mxu0 %v6887_v0  ;;  %v6270_v42 = vld [vmem:[#allocation14 + $0x20] ss:$12 sps:$4 sm:$0xff]  }
 0x2d1   : > { %v1924_v47 = vadd.f32 %v5446_v41, %v935_v46  ;;  %5657 = vmatpush3.bf16.msra.mxu1 %v6261_v62  ;;  %v6278_v44 = vld [vmem:[#allocation14 + $0x50] ss:$12 sps:$4 sm:$0xff]   ;;  %v6286_v46 = vld [vmem:[#allocation14 + $0x80] ss:$12 sps:$4 sm:$0xff]   ;;  %v2604_v62 = vrot.slane %v2599_v59, %v7417_v3 }
 0x2d2   : > { %5658 = vmatprep.subr.bf16.mxu1 %v6887_v0 }
 0x2d3   : > { %5639 = vmatpush3.bf16.msra.mxu0 %v6254_v43  ;;  %v6274_v43 = vld [vmem:[#allocation14 + $0x38] ss:$12 sps:$4 sm:$0xff]  }
 0x2d4   : > { %2744 = vmatprep.subr.bf16.mxu0 %v6265_v10  ;;  %v2612_v10 = vrot.slane %v2599_v59, %v7420_v6 }
 0x2d5   : > { %5659 = vmatpush3.bf16.msra.mxu1 %v6262_v63 }
 0x2d6   : > { %5664 = vmatprep.subr.bf16.mxu1 %v6887_v0 }
 0x2e5   : > { %v1963_v49 = vpop.f32.mrb[4].mxu1 }
 0x2e6   : > { %v1964_v50 = vadd.f32 %v1963_v49, %v1924_v47  ;;  %v1965_v51 = vpop.f32.mrb[5].mxu1  ;;  %v6290_v47 = vld [vmem:[#allocation14 + $0x98] ss:$12 sps:$4 sm:$0xff]  }
 0x2e7   : > { %v1966_v52 = vpop.f32.mrb[6].mxu1  ;;  %v6293_v49 = vld [vmem:[#allocation14 + $0xac] ss:$12 sps:$4 sm:$0xff]   ;;  %v6294_v51 = vld [vmem:[#allocation14 + $0xb0] ss:$12 sps:$4 sm:$0xff]  }
 0x2e8   : > { %v1973_v53 = vmax.f32 %v1964_v50, 0.0  ;;  %v1967_v54 = vpop.f32.mrb[7].mxu1  ;;  %v6291_v50 = vld [vmem:[#allocation14 + $0xa8] ss:$12 sps:$4 sm:$0xff]   ;;  %v5268_v52 = vld [vmem:[%s7885_s29] ss:$0 sm:$0xff] }
 0x2e9   : > { %s7890_s29 = sld [smem:[#allocation40_spill]] }
 0x2ea   : > { %v1978_v55 = vpack.c.bf16 %v1973_v53, %v1973_v53 }
 0x2ec   : > { %5641 = vmatmul.mubr.bf16.vlgmr.msra.gmra.mrb[12].mxu0 %v1978_v55 }
 0x2ed   : > { %2776 = vmatprep.mubr.bf16.mxu0 %v6886_v4  ;;  %2745 = vmatpush1.bf16.msra.mxu0 %v6263_v7 }
 0x2ee   : > { %2746 = vmatprep.subr.bf16.mxu0 %v6269_v11 }
 0x2f1   : > { %2747 = vmatpush1.bf16.msra.mxu0 %v6267_v12 }
 0x2f2   : > { %2748 = vmatprep.subr.bf16.mxu0 %v6273_v13 }
 0x2f5   : > { %2749 = vmatpush1.bf16.msra.mxu0 %v6271_v14 }
 0x2f6   : > { %2750 = vmatprep.subr.bf16.mxu0 %v6277_v15 }
 0x2f9   : > { %2751 = vmatpush1.bf16.msra.mxu0 %v6275_v48 }
 0x2fa   : > { %2752 = vmatprep.subr.bf16.mxu0 %v6281_v16 }
 0x2fd   : > { %2753 = vmatpush1.bf16.msra.mxu0 %v6279_v17 }
 0x2fe   : > { %2754 = vmatprep.subr.bf16.mxu0 %v6285_v18  ;;  %v7495_v18 = vsel %vm2542_vm2, 1.0, %v6887_v0 }
 0x301   : > { %2755 = vmatpush1.bf16.msra.mxu0 %v6283_v19  ;;  %v7498_v19 = vsel %vm2559_vm3, 1.0, %v6887_v0 }
 0x302   : > { %2756 = vmatprep.subr.bf16.mxu0 %v6289_v20 }
 0x305   : > { %2757 = vmatpush1.bf16.msra.mxu0 %v6287_v21 }
 0x306   : > { %2758 = vmatprep.subr.bf16.mxu0 %v6293_v49  ;;  %v7541_v49 = vsel %vm2549_vm8, 1.0, %v6887_v0 }
 0x309   : > { %2759 = vmatpush1.bf16.msra.mxu0 %v6291_v50  ;;  %v7550_v50 = vpack.c.bf16 %v7541_v49, %v7541_v49 }
 0x30a   : > { %5684 = vmatprep.subr.bf16.mxu0 %v6887_v0 }
 0x389   : > { %v5466_v22 = vpop.f32.mrb[8].mxu0  ;;  %v5488_v23 = vpop.f32.mrb[8].mxu1 }
 0x38a   : > { %v5467_v25 = vpop.f32.mrb[9].mxu0  ;;  %v5489_v26 = vpop.f32.mrb[9].mxu1 }
 0x38b   : > { %v5468_v27 = vadd.f32 %v5467_v25, %v5466_v22  ;;  %v5490_v28 = vadd.f32 %v5489_v26, %v5488_v23  ;;  %v5469_v29 = vpop.f32.mrb[10].mxu0  ;;  %v5491_v30 = vpop.f32.mrb[10].mxu1  ;;  %v7506_v22 = vpack.c.bf16 %v7495_v18, %v7495_v18  ;;  %v7511_v23 = vpack.c.bf16 %v7498_v19, %v7498_v19 }
 0x38c   : > { %v5470_v31 = vpop.f32.mrb[11].mxu0  ;;  %v5492_v32 = vpop.f32.mrb[11].mxu1 }
 0x38d   : > { %v2341_v33 = vadd.f32 %v5468_v27, %v5227_v24 }
 0x38f   : > { %v2381_v34 = vadd.f32 %v5490_v28, %v2341_v33  ;;  %v7529_v28 = vld [vmem:[%s634_s30] sm:$0x1]  ;;  %s7889_s30 = sld [smem:[#allocation39_spill]] }
 0x390   : > { %v7533_v29 = vrot.slane %v7529_v28, %v7417_v3 }
 0x3bf   : > { %v2420_v35 = vpop.f32.mrb[12].mxu0 }
 0x3c0   : > { %v2421_v36 = vadd.f32 %v2420_v35, %v2381_v34  ;;  %v5642_v37 = vpop.f32.mrb[13].mxu0 }
 0x3c1   : > { %v2423_v38 = vpop.f32.mrb[14].mxu0 }
 0x3c2   : > { %v2426_v5 = vmax.f32 %v2421_v36, 0.0  ;;  %v5643_v39 = vpop.f32.mrb[15].mxu0 }
 0x3c4   : > { %v2427_v41 = vpack.c.bf16 %v2426_v5, %v2426_v5 }
 0x3c6   : > { %5661 = vmatmul.mubr.bf16.vlgmr.msra.gmra.mrb[12].mxu1 %v2427_v41 }
 0x3c7   : > { %5665 = vmatpush3.bf16.msra.mxu1 %v6266_v40  ;;  %5680 = vmatprep.mubr.msk.bf16.mxu1 %vm6888_vm1, %v6887_v0 }
 0x3c8   : > { %5666 = vmatprep.subr.bf16.mxu1 %v6887_v0 }
 0x3cb   : > { %5667 = vmatpush3.bf16.msra.mxu1 %v6270_v42 }
 0x3cc   : > { %5668 = vmatprep.subr.bf16.mxu1 %v6887_v0 }
 0x3cf   : > { %5669 = vmatpush3.bf16.msra.mxu1 %v6274_v43 }
 0x3d0   : > { %5670 = vmatprep.subr.bf16.mxu1 %v6887_v0 }
 0x3d3   : > { %5671 = vmatpush3.bf16.msra.mxu1 %v6278_v44 }
 0x3d4   : > { %5672 = vmatprep.subr.bf16.mxu1 %v6887_v0 }
 0x3d7   : > { %5673 = vmatpush3.bf16.msra.mxu1 %v6282_v45 }
 0x3d8   : > { %5674 = vmatprep.subr.bf16.mxu1 %v6887_v0 }
 0x3db   : > { %5675 = vmatpush3.bf16.msra.mxu1 %v6286_v46 }
 0x3dc   : > { %5676 = vmatprep.subr.bf16.mxu1 %v6887_v0 }
 0x3df   : > { %5677 = vmatpush3.bf16.msra.mxu1 %v6290_v47 }
 0x3e0   : > { %5678 = vmatprep.subr.bf16.mxu1 %v6887_v0 }
 0x3e3   : > { %5679 = vmatpush3.bf16.msra.mxu1 %v6294_v51 }
 0x3e4   : > { %5720 = vmatprep.subr.bf16.mxu1 %v6887_v0 }
 0x499   : > { %v2533_v53 = vpop.f32.mrb[12].mxu1 }
 0x49a   : > { %v7473_v54 = vadd.f32 %v5268_v52, %v2533_v53  ;;  %v5662_v55 = vpop.f32.mrb[13].mxu1 }
 0x49b   : > { %v2536_v56 = vpop.f32.mrb[14].mxu1 }
 0x49c   : > { %v2566_v57 = vpack.c.bf16 %v7473_v54, %v7473_v54  ;;  %v5663_v58 = vpop.f32.mrb[15].mxu1 }
 0x49e   : > { %2777 = vmatmul.mubr.bf16.vlgmr.msra.gmra.mrb[16].mxu0 %v2566_v57  ;;  %5681 = vmatmul.mubr.bf16.vlgmr.msra.gmra.mrb[16].mxu1 %v2566_v57 }
 0x49f   : > { %5686 = vmatprep.mubr.msk.bf16.mxu0 %vm6888_vm1, %v6887_v0  ;;  %5722 = vmatprep.mubr.msk.bf16.mxu1 %vm6888_vm1, %v6887_v0 }
 0x571   : > { %v2778_v63 = vpop.f32.mrb[16].mxu0  ;;  %v2819_v7 = vpop.f32.mrb[16].mxu1 }
 0x572   : > { %v2780_v11 = vpop.f32.mrb[17].mxu0  ;;  %v5682_v12 = vpop.f32.mrb[17].mxu1  ;;  %v2779_v48 = vadd.f32 %v2778_v63, %v2604_v62  ;;  %v2820_v20 = vadd.f32 %v2819_v7, %v2612_v10 }
 0x573   : > { %v2781_v13 = vadd.f32 %v2780_v11, %v2608_v61  ;;  %v2782_v14 = vpop.f32.mrb[18].mxu0  ;;  %v2822_v15 = vpop.f32.mrb[18].mxu1 }
 0x574   : > { %v2783_v1 = vpop.f32.mrb[19].mxu0  ;;  %v5683_v16 = vpop.f32.mrb[19].mxu1  ;;  %v7502_v21 = vpack.c.bf16 %v2779_v48, %v2779_v48  ;;  %v2826_v24 = vpack.c.bf16 %v2820_v20, %v2820_v20 }
 0x575   : > { %v7492_v17 = vpack.c.bf16 %v2781_v13, %v2781_v13 }
 0x576   : > { %v2828_v25 = vmul.bf16 %v7502_v21, %v7506_v22  ;;  %v3133_v26 = vmul.bf16 %v7502_v21, %v7511_v23  ;;  %v7519_v27 = vsel %vm2891_vm4, %v2826_v24, 0  ;;  %v2937_v51 = vmul.bf16 %v7502_v21, %v7550_v50 }
 0x577   : > { %5685 = vmatpush3.bf16.xpose.msra.mxu0 %v7492_v17  ;;  %5721 = vmatpush3.bf16.xpose.msra.mxu1 %v7492_v17 }
 0x578   : > { %5690 = vmatprep.subr.bf16.mxu0 %v6887_v0  ;;  %5732 = vmatprep.subr.bf16.mxu1 %v6887_v0 }
 0x57e   : > { %5687 = vmatmul.mubr.bf16.vlgmr.msra.gmra.mrb[20].mxu0 %v2828_v25  ;;  %5723 = vmatmul.mubr.bf16.vlgmr.msra.gmra.mrb[20].mxu1 %v3133_v26 }
 0x57f   : > { %5691 = vmatpush3.bf16.msra.mxu0 %v7519_v27  ;;  %5692 = vmatprep.mubr.msk.bf16.mxu0 %vm6888_vm1, %v6887_v0 }
 0x580   : > { %5696 = vmatprep.subr.bf16.mxu0 %v6887_v0  ;;  %5748 = vmatprep.mubr.msk.bf16.mxu1 %vm6888_vm1, %v6887_v0 }
 0x651   : > { %v2869_v30 = vpop.f32.mrb[20].mxu0  ;;  %v3168_v31 = vpop.f32.mrb[20].mxu1 }
 0x652   : > { %v2870_v32 = vadd.f32 %v2869_v30, %v7533_v29  ;;  %v5688_v33 = vpop.f32.mrb[21].mxu0  ;;  %v5724_v34 = vpop.f32.mrb[21].mxu1  ;;  %v3169_v13 = vadd.f32 %v3168_v31, %v7533_v29  ;;  %v7566_v30 = vsel %vm2555_vm11, 1.0, %v6887_v0 }
 0x653   : > { %v2872_v35 = vpop.f32.mrb[22].mxu0  ;;  %v3171_v36 = vpop.f32.mrb[22].mxu1  ;;  %v7575_v31 = vpack.c.bf16 %v7566_v30, %v7566_v30 }
 0x654   : > { %v5689_v37 = vpop.f32.mrb[23].mxu0  ;;  %v5725_v38 = vpop.f32.mrb[23].mxu1  ;;  %v2876_v5 = vsel %vm2875_vm5, %v2870_v32, -inf  ;;  %v3174_v15 = vsel %vm2875_vm5, %v3169_v13, -inf }
 0x655   : > { %2877 = vmax.xlane.f32.xlu0 %v2876_v5  ;;  %v3035_v33 = vmul.bf16 %v7502_v21, %v7575_v31 }
 0x6e2   : > { %v2878_v39 = vpop.xlane.xlu0 %2877 }
 0x6e3   : > { %v2879_v40 = vsub.f32 %v2870_v32, %v2878_v39 }
 0x6e5   : > { %v2880_v41 = vmul.f32 1.442695, %v2879_v40 }
 0x6e7   : > { %6423 = vpow2.f32 %v2880_v41 }
 0x6f1   : > { %v6424_v42 = vpop.eup %6423 }
 0x6f2   : > { %v2882_v43 = vsel %vm2875_vm5, %v6424_v42, 0.0 }
 0x6f3   : > { %2883 = vadd.xlane.f32.xlu0 %v2882_v43 }
 0x780   : > { %v2884_v44 = vpop.xlane.xlu0 %2883 }
 0x781   : > { %6425 = vrcp.f32 %v2884_v44 }
 0x78b   : > { %v6426_v45 = vpop.eup %6425 }
 0x78c   : > { %v2886_v46 = vmul.f32 %v6426_v45, %v6424_v42 }
 0x78e   : > { %v2887_v47 = vpack.c.bf16 %v2886_v46, %v2886_v46 }
 0x790   : > { %5693 = vmatmul.mubr.msk.bf16.vlgmr.msra.gmra.mrb[24].mxu0 %vm2875_vm5, %v2887_v47 }
 0x791   : > { %5697 = vmatpush3.bf16.xpose.msra.mxu0 %v7492_v17  ;;  %5698 = vmatprep.mubr.msk.bf16.mxu0 %vm6888_vm1, %v6887_v0 }
 0x792   : > { %5702 = vmatprep.subr.bf16.mxu0 %v6887_v0 }
 0x798   : > { %5699 = vmatmul.mubr.bf16.vlgmr.msra.gmra.mrb[28].mxu0 %v2937_v51 }
 0x799   : > { %5703 = vmatpush3.bf16.msra.mxu0 %v7519_v27  ;;  %5704 = vmatprep.mubr.msk.bf16.mxu0 %vm6888_vm1, %v6887_v0 }
 0x79a   : > { %5708 = vmatprep.subr.bf16.mxu0 %v6887_v0 }
 0x863   : > { %v2929_v52 = vpop.f32.mrb[24].mxu0 }
 0x864   : > { %v5694_v53 = vpop.f32.mrb[25].mxu0  ;;  %v2935_v34 = vmul.f32 %v7495_v18, %v2929_v52  ;;  %v6295_v52 = vld [vmem:[#allocation16] sm:$0xff]  }
 0x865   : > { %v2932_v55 = vpop.f32.mrb[26].mxu0  ;;  %5733 = vmatpush3.bf16.msra.mxu1 %v6295_v52  ;;  %v6296_v53 = vld [vmem:[#allocation16 + $0x8] sm:$0xff]   ;;  %v6318_v52 = vld [vmem:[#allocation17 + $0x50] ss:$8 sps:$4 sm:$0xff]  }
 0x866   : > { %v5695_v56 = vpop.f32.mrb[27].mxu0  ;;  %5734 = vmatprep.subr.bf16.mxu1 %v6887_v0  ;;  %v6298_v55 = vld [vmem:[#allocation16 + $0x18] sm:$0xff]  }
 0x869   : > { %5735 = vmatpush3.bf16.msra.mxu1 %v6296_v53  ;;  %v6323_v53 = vld [vmem:[#allocation17 + $0x64] ss:$8 sps:$4 sm:$0xff]  }
 0x86a   : > { %5736 = vmatprep.subr.bf16.mxu1 %v6887_v0 }
 0x86b   : > { %v2972_v57 = vpop.f32.mrb[28].mxu0 }
 0x86c   : > { %v2973_v58 = vadd.f32 %v2972_v57, %v7533_v29  ;;  %v5700_v59 = vpop.f32.mrb[29].mxu0 }
 0x86d   : > { %v2975_v61 = vpop.f32.mrb[30].mxu0 }
 0x86e   : > { %v5701_v62 = vpop.f32.mrb[31].mxu0  ;;  %v2978_v63 = vsel %vm2875_vm5, %v2973_v58, -inf }
 0x86f   : > { %2979 = vmax.xlane.f32.xlu1 %v2978_v63 }
 0x8fc   : > { %v2980_v7 = vpop.xlane.xlu1 %2979 }
 0x8fd   : > { %v2981_v10 = vsub.f32 %v2973_v58, %v2980_v7 }
 0x8ff   : > { %v2982_v11 = vmul.f32 1.442695, %v2981_v10  ;;  %v6299_v10 = vld [vmem:[#allocation16 + $0x20] sm:$0xff]  }
 0x901   : > { %6427 = vpow2.f32 %v2982_v11  ;;  %v6300_v11 = vld [vmem:[#allocation16 + $0x28] sm:$0xff]  }
 0x90b   : > { %v6428_v12 = vpop.eup %6427 }
 0x90c   : > { %v2984_v14 = vsel %vm2875_vm5, %v6428_v12, 0.0 }
 0x90d   : > { %2985 = vadd.xlane.f32.xlu1 %v2984_v14 }
 0x911   : > { %3175 = vmax.xlane.f32.xlu1 %v3174_v15 }
 0x99a   : > { %v2986_v48 = vpop.xlane.xlu1 %2985 }
 0x99b   : > { %6429 = vrcp.f32 %v2986_v48 }
 0x99e   : > { %v3176_v1 = vpop.xlane.xlu1 %3175 }
 0x99f   : > { %v3177_v16 = vsub.f32 %v3169_v13, %v3176_v1 }
 0x9a1   : > { %v3178_v20 = vmul.f32 1.442695, %v3177_v16 }
 0x9a3   : > { %6431 = vpow2.f32 %v3178_v20 }
 0x9a5   : > { %v6430_v24 = vpop.eup %6429 }
 0x9a6   : > { %v2988_v25 = vmul.f32 %v6430_v24, %v6428_v12  ;;  %v6301_v12 = vld [vmem:[#allocation16 + $0x30] sm:$0xff]  }
 0x9a8   : > { %v2989_v26 = vpack.c.bf16 %v2988_v25, %v2988_v25 }
 0x9aa   : > { %5705 = vmatmul.mubr.msk.bf16.vlgmr.msra.gmra.mrb[32].mxu0 %vm2875_vm5, %v2989_v26 }
 0x9ab   : > { %5709 = vmatpush3.bf16.xpose.msra.mxu0 %v7492_v17  ;;  %5710 = vmatprep.mubr.msk.bf16.mxu0 %vm6888_vm1, %v6887_v0 }
 0x9ac   : > { %5714 = vmatprep.subr.bf16.mxu0 %v6887_v0 }
 0x9ad   : > { %v6432_v60 = vpop.eup %6431 }
 0x9ae   : > { %v3180_v32 = vsel %vm2875_vm5, %v6432_v60, 0.0 }
 0x9af   : > { %3181 = vadd.xlane.f32.xlu1 %v3180_v32 }
 0x9b2   : > { %5711 = vmatmul.mubr.bf16.vlgmr.msra.gmra.mrb[36].mxu0 %v3035_v33 }
 0x9b3   : > { %5715 = vmatpush3.bf16.msra.mxu0 %v7519_v27  ;;  %5716 = vmatprep.mubr.msk.bf16.mxu0 %vm6888_vm1, %v6887_v0 }
 0x9b4   : > { %5726 = vmatprep.subr.bf16.mxu0 %v6887_v0 }
 0xa3c   : > { %v3182_v57 = vpop.xlane.xlu1 %3181 }
 0xa7d   : > { %v3027_v17 = vpop.f32.mrb[32].mxu0 }
 0xa7e   : > { %v3033_v35 = vmul.f32 %v7541_v49, %v3027_v17  ;;  %v5706_v36 = vpop.f32.mrb[33].mxu0  ;;  %v6303_v17 = vld [vmem:[#allocation17] ss:$8 sps:$4 sm:$0xff]  }
 0xa7f   : > { %v3030_v37 = vpop.f32.mrb[34].mxu0  ;;  %v6306_v36 = vld [vmem:[#allocation17 + $0x10] ss:$8 sps:$4 sm:$0xff]  }
 0xa80   : > { %v3034_v38 = vadd.f32 %v3033_v35, %v2935_v34  ;;  %v5707_v5 = vpop.f32.mrb[35].mxu0  ;;  %v6305_v34 = vld [vmem:[#allocation17 + $0x4] ss:$8 sps:$4 sm:$0xff]   ;;  %v6308_v35 = vld [vmem:[#allocation17 + $0x14] ss:$8 sps:$4 sm:$0xff]  }
 0xa81   : > { %v5309_v37 = vld [vmem:[%s7887_s13] ss:$0 sm:$0xff] }
 0xa85   : > { %v3070_v39 = vpop.f32.mrb[36].mxu0 }
 0xa86   : > { %v3071_v21 = vadd.f32 %v3070_v39, %v7533_v29  ;;  %v5712_v40 = vpop.f32.mrb[37].mxu0  ;;  %v6297_v29 = vld [vmem:[#allocation16 + $0x10] sm:$0xff]  }
 0xa87   : > { %v3073_v41 = vpop.f32.mrb[38].mxu0  ;;  %5737 = vmatpush3.bf16.msra.mxu1 %v6297_v29  ;;  %v6321_v29 = vld [vmem:[#allocation17 + $0x60] ss:$8 sps:$4 sm:$0xff]  }
 0xa88   : > { %v5713_v42 = vpop.f32.mrb[39].mxu0  ;;  %v3076_v43 = vsel %vm2875_vm5, %v3071_v21, -inf  ;;  %5738 = vmatprep.subr.bf16.mxu1 %v6887_v0 }
 0xa89   : > { %3077 = vmax.xlane.f32.xlu0 %v3076_v43  ;;  %v6311_v43 = vld [vmem:[#allocation17 + $0x24] ss:$8 sps:$4 sm:$0xff]  }
 0xa8b   : > { %5739 = vmatpush3.bf16.msra.mxu1 %v6298_v55  ;;  %v6326_v55 = vld [vmem:[#allocation17 + $0x74] ss:$8 sps:$4 sm:$0xff]  }
 0xa8c   : > { %5740 = vmatprep.subr.bf16.mxu1 %v6887_v0 }
 0xa8f   : > { %5741 = vmatpush3.bf16.msra.mxu1 %v6299_v10  ;;  %v6334_v10 = vld [vmem:[#allocation19 + $0x18] sm:$0xff]  }
 0xa90   : > { %5742 = vmatprep.subr.bf16.mxu1 %v6887_v0 }
 0xa93   : > { %5743 = vmatpush3.bf16.msra.mxu1 %v6300_v11  ;;  %v6335_v11 = vld [vmem:[#allocation19 + $0x60] sm:$0xff]  }
 0xa94   : > { %5744 = vmatprep.subr.bf16.mxu1 %v6887_v0 }
 0xa97   : > { %5745 = vmatpush3.bf16.msra.mxu1 %v6301_v12  ;;  %v6336_v12 = vld [vmem:[#allocation19 + $0x20] sm:$0xff]  }
 0xa98   : > { %5746 = vmatprep.subr.bf16.mxu1 %v6887_v0 }
 0xb16   : > { %v3078_v44 = vpop.xlane.xlu0 %3077 }
 0xb17   : > { %v3079_v45 = vsub.f32 %v3071_v21, %v3078_v44  ;;  %v6309_v44 = vld [vmem:[#allocation17 + $0x20] ss:$8 sps:$4 sm:$0xff]  }
 0xb19   : > { %v3080_v46 = vmul.f32 1.442695, %v3079_v45  ;;  %v6314_v45 = vld [vmem:[#allocation17 + $0x34] ss:$8 sps:$4 sm:$0xff]  }
 0xb1b   : > { %6433 = vpow2.f32 %v3080_v46  ;;  %v6312_v46 = vld [vmem:[#allocation17 + $0x30] ss:$8 sps:$4 sm:$0xff]  }
 0xb25   : > { %v6434_v47 = vpop.eup %6433 }
 0xb26   : > { %v3082_v51 = vsel %vm2875_vm5, %v6434_v47, 0.0 }
 0xb27   : > { %3083 = vadd.xlane.f32.xlu0 %v3082_v51  ;;  %v6315_v51 = vld [vmem:[#allocation17 + $0x40] ss:$8 sps:$4 sm:$0xff]  }
 0xbb4   : > { %v3084_v56 = vpop.xlane.xlu0 %3083 }
 0xbb5   : > { %6435 = vrcp.f32 %v3084_v56  ;;  %v6324_v56 = vld [vmem:[#allocation17 + $0x70] ss:$8 sps:$4 sm:$0xff]  }
 0xbb6   : > { %6437 = vrcp.f32 %v3182_v57  ;;  %v6327_v57 = vld [vmem:[#allocation19 + $0x40] sm:$0xff]  }
 0xbbf   : > { %v6436_v58 = vpop.eup %6435 }
 0xbc0   : > { %v3086_v59 = vmul.f32 %v6436_v58, %v6434_v47  ;;  %v6438_v62 = vpop.eup %6437  ;;  %v6317_v47 = vld [vmem:[#allocation17 + $0x44] ss:$8 sps:$4 sm:$0xff]  }
 0xbc1   : > { %v3184_v63 = vmul.f32 %v6438_v62, %v6432_v60  ;;  %v6328_v58 = vld [vmem:[#allocation19] sm:$0xff]   ;;  %v6331_v62 = vld [vmem:[#allocation19 + $0x50] sm:$0xff]  }
 0xbc2   : > { %v3087_v61 = vpack.c.bf16 %v3086_v59, %v3086_v59  ;;  %v6329_v59 = vld [vmem:[#allocation19 + $0x48] sm:$0xff]  }
 0xbc3   : > { %v3185_v7 = vpack.c.bf16 %v3184_v63, %v3184_v63  ;;  %v6332_v63 = vld [vmem:[#allocation19 + $0x10] sm:$0xff]  }
 0xbc4   : > { %5717 = vmatmul.mubr.msk.bf16.vlgmr.msra.gmra.mrb[40].mxu0 %vm2875_vm5, %v3087_v61  ;;  %v6330_v61 = vld [vmem:[#allocation19 + $0x8] sm:$0xff]  }
 0xbc5   : > { %5727 = vmatpush3.bf16.msra.mxu0 %v7519_v27  ;;  %5728 = vmatprep.mubr.msk.bf16.mxu0 %vm6888_vm1, %v6887_v0  ;;  %v6302_v27 = vld [vmem:[#allocation16 + $0x38] sm:$0xff]  }
 0xbc6   : > { %5747 = vmatpush3.bf16.msra.mxu1 %v6302_v27  ;;  %3477 = vmatprep.subr.bf16.mxu0 %v6305_v34  ;;  %v6337_v27 = vld [vmem:[#allocation19 + $0x68] sm:$0xff]  }
 0xbc7   : > { %5546 = vmatprep.subr.bf16.mxu1 %v6327_v57  ;;  %v6349_v57 = vld [vmem:[#allocation14 + $0xdc] ss:$12 sps:$4 sm:$0xff]  }
 0xbcc   : > { %5729 = vmatmul.mubr.msk.bf16.vlgmr.msra.gmra.mrb[44].mxu0 %vm2875_vm5, %v3185_v7  ;;  %v6333_v7 = vld [vmem:[#allocation19 + $0x58] sm:$0xff]  }
 0xbcd   : > { %3509 = vmatprep.mubr.bf16.mxu0 %v6886_v4  ;;  %3478 = vmatpush1.bf16.msra.mxu0 %v6303_v17 }
 0xbce   : > { %3479 = vmatprep.subr.bf16.mxu0 %v6308_v35 }
 0xbd1   : > { %3480 = vmatpush1.bf16.msra.mxu0 %v6306_v36 }
 0xbd2   : > { %3481 = vmatprep.subr.bf16.mxu0 %v6311_v43 }
 0xbd5   : > { %3482 = vmatpush1.bf16.msra.mxu0 %v6309_v44 }
 0xbd6   : > { %3483 = vmatprep.subr.bf16.mxu0 %v6314_v45 }
 0xbd9   : > { %3484 = vmatpush1.bf16.msra.mxu0 %v6312_v46 }
 0xbda   : > { %3485 = vmatprep.subr.bf16.mxu0 %v6317_v47 }
 0xbdd   : > { %3486 = vmatpush1.bf16.msra.mxu0 %v6315_v51 }
 0xc97   : > { %v3125_v13 = vpop.f32.mrb[40].mxu0 }
 0xc98   : > { %v3131_v14 = vmul.f32 %v7566_v30, %v3125_v13  ;;  %v5718_v15 = vpop.f32.mrb[41].mxu0  ;;  %v6338_v13 = vld [vmem:[#allocation19 + $0x28] sm:$0xff]  }
 0xc99   : > { %v3128_v48 = vpop.f32.mrb[42].mxu0 }
 0xc9a   : > { %v3132_v1 = vadd.f32 %v3131_v14, %v3034_v38  ;;  %v5719_v16 = vpop.f32.mrb[43].mxu0 }
 0xc9f   : > { %v3223_v20 = vpop.f32.mrb[44].mxu0 }
 0xca0   : > { %v3229_v24 = vmul.f32 %v7498_v19, %v3223_v20  ;;  %v5730_v25 = vpop.f32.mrb[45].mxu0 }
 0xca1   : > { %v3226_v26 = vpop.f32.mrb[46].mxu0  ;;  %v7616_v25 = vld [vmem:[%s7888_s1] sm:$0xf] }
 0xca2   : > { %v3230_v60 = vadd.f32 %v3229_v24, %v3132_v1  ;;  %v5731_v32 = vpop.f32.mrb[47].mxu0  ;;  %v3366_v17 = vrot.slane %v7616_v25, %v7425_v8 }
 0xca4   : > { %v3231_v33 = vpack.c.bf16 %v3230_v60, %v3230_v60  ;;  %v3361_v60 = vrot.slane %v7616_v25, %v7417_v3 }
 0xca6   : > { %5749 = vmatmul.mubr.bf16.vlgmr.msra.gmra.mrb[24].mxu1 %v3231_v33 }
 0xca7   : > { %5547 = vmatpush3.bf16.msra.mxu1 %v6328_v58  ;;  %v6347_v58 = vld [vmem:[#allocation14 + $0xd8] ss:$12 sps:$4 sm:$0xff]  }
 0xca8   : > { %5548 = vmatprep.subr.bf16.mxu1 %v6329_v59 }
 0xcab   : > { %5549 = vmatpush3.bf16.msra.mxu1 %v6330_v61  ;;  %v5334_v61 = vld [vmem:[%s7890_s29] ss:$0 sm:$0xff] }
 0xcac   : > { %5550 = vmatprep.subr.bf16.mxu1 %v6331_v62 }
 0xcaf   : > { %5551 = vmatpush3.bf16.msra.mxu1 %v6332_v63 }
 0xcb0   : > { %5552 = vmatprep.subr.bf16.mxu1 %v6333_v7 }
 0xcb3   : > { %5553 = vmatpush3.bf16.msra.mxu1 %v6334_v10 }
 0xcb4   : > { %5554 = vmatprep.subr.bf16.mxu1 %v6335_v11 }
 0xcb7   : > { %5555 = vmatpush3.bf16.msra.mxu1 %v6336_v12 }
 0xcb8   : > { %5556 = vmatprep.subr.bf16.mxu1 %v6337_v27 }
 0xcbb   : > { %5557 = vmatpush3.bf16.msra.mxu1 %v6338_v13  ;;  %v6350_v13 = vld [vmem:[#allocation14 + $0xe0] ss:$12 sps:$4 sm:$0xff]  }
 0xd79   : > { %v3337_v38 = vpop.f32.mrb[24].mxu1 }
 0xd7a   : > { %v3338_v5 = vadd.f32 %v5309_v37, %v3337_v38  ;;  %v5750_v39 = vpop.f32.mrb[25].mxu1  ;;  %v6339_v37 = vld [vmem:[#allocation19 + $0x70] sm:$0xff]  }
 0xd7b   : > { %v3340_v21 = vpop.f32.mrb[26].mxu1  ;;  %v6340_v38 = vld [vmem:[#allocation19 + $0x30] sm:$0xff]   ;;  %5558 = vmatprep.subr.bf16.mxu1 %v6339_v37  ;;  %v6342_v39 = vld [vmem:[#allocation19 + $0x38] sm:$0xff]  }
 0xd7c   : > { %v7608_v40 = vadd.f32 %v3338_v5, %v7473_v54  ;;  %v5751_v41 = vpop.f32.mrb[27].mxu1  ;;  %v6320_v54 = vld [vmem:[#allocation17 + $0x54] ss:$8 sps:$4 sm:$0xff]   ;;  %5559 = vmatpush3.bf16.msra.mxu1 %v6340_v38  ;;  %v3385_v21 = vld [vmem:[%s7889_s30] sm:$0x3] }
 0xd7d   : > { %3487 = vmatprep.subr.bf16.mxu0 %v6320_v54  ;;  %v6341_v5 = vld [vmem:[#allocation19 + $0x78] sm:$0xff]   ;;  %v3394_v41 = vrot.slane %v3385_v21, %v7425_v8  ;;  %v6371_v38 = vld [vmem:[#allocation14 + $0x168] ss:$12 sps:$4 sm:$0xff]  }
 0xd7e   : > { %3344 = vadd.xlane.f32.xlu0 %v7608_v40  ;;  %v3346_v42 = vmul.f32 %v7608_v40, %v7608_v40  ;;  %3488 = vmatpush1.bf16.msra.mxu0 %v6318_v52  ;;  %v6373_v37 = vld [vmem:[#allocation14 + $0x16c] ss:$12 sps:$4 sm:$0xff]  }
 0xd7f   : > { %3489 = vmatprep.subr.bf16.mxu0 %v6323_v53  ;;  %5560 = vmatprep.subr.bf16.mxu1 %v6341_v5  ;;  %v6374_v5 = vld [vmem:[#allocation14 + $0x170] ss:$12 sps:$4 sm:$0xff]  }
 0xd80   : > { %3347 = vadd.xlane.f32.xlu1 %v3346_v42  ;;  %5561 = vmatpush3.bf16.msra.mxu1 %v6342_v39 }
 0xd81   : > { %5752 = vmatprep.subr.bf16.mxu1 %v6887_v0 }
 0xd82   : > { %3490 = vmatpush1.bf16.msra.mxu0 %v6321_v29  ;;  %v6343_v29 = vld [vmem:[#allocation14 + $0xc0] ss:$12 sps:$4 sm:$0xff]  }
 0xd83   : > { %3491 = vmatprep.subr.bf16.mxu0 %v6326_v55  ;;  %v6345_v55 = vld [vmem:[#allocation14 + $0xc4] ss:$12 sps:$4 sm:$0xff]  }
 0xd86   : > { %3492 = vmatpush1.bf16.msra.mxu0 %v6324_v56  ;;  %v6346_v56 = vld [vmem:[#allocation14 + $0xc8] ss:$12 sps:$4 sm:$0xff]  }
 0xd87   : > { %3903 = vmatprep.subr.bf16.mxu0 %v6345_v55 }
 0xe0b   : > { %v3345_v14 = vpop.xlane.xlu0 %3344 }
 0xe0c   : > { %v3350_v15 = vmul.f32 0.0078125, %v3345_v14  ;;  %v6353_v14 = vld [vmem:[#allocation14 + $0xf4] ss:$12 sps:$4 sm:$0xff]  }
 0xe0d   : > { %v3348_v48 = vpop.xlane.xlu1 %3347 }
 0xe0e   : > { %v3352_v1 = vmul.f32 %v3350_v15, %v3350_v15  ;;  %v3351_v16 = vmul.f32 0.0078125, %v3348_v48  ;;  %v3354_v26 = vsub.f32 %v7608_v40, %v3350_v15  ;;  %v3390_v40 = vrot.slane %v3385_v21, %v7417_v3  ;;  %v6351_v15 = vld [vmem:[#allocation14 + $0xf0] ss:$12 sps:$4 sm:$0xff]   ;;  %v6354_v48 = vld [vmem:[#allocation14 + $0xf8] ss:$12 sps:$4 sm:$0xff]  }
 0xe10   : > { %v3353_v20 = vsub.f32 %v3351_v16, %v3352_v1  ;;  %v6357_v1 = vld [vmem:[#allocation14 + $0x10c] ss:$12 sps:$4 sm:$0xff]   ;;  %v6355_v16 = vld [vmem:[#allocation14 + $0x108] ss:$12 sps:$4 sm:$0xff]  }
 0xe12   : > { %v3355_v24 = vadd.f32 1e-05, %v3353_v20  ;;  %v6358_v20 = vld [vmem:[#allocation14 + $0x110] ss:$12 sps:$4 sm:$0xff]  }
 0xe14   : > { %6439 = vrsqrt.f32 %v3355_v24  ;;  %v6361_v24 = vld [vmem:[#allocation14 + $0x124] ss:$12 sps:$4 sm:$0xff]  }
 0xe1e   : > { %v6440_v32 = vpop.eup %6439 }
 0xe1f   : > { %v3357_v33 = vmul.f32 %v6440_v32, %v3354_v26  ;;  %v6359_v26 = vld [vmem:[#allocation14 + $0x120] ss:$12 sps:$4 sm:$0xff]   ;;  %v6365_v32 = vld [vmem:[#allocation14 + $0x13c] ss:$12 sps:$4 sm:$0xff]  }
 0xe21   : > { %v3362_v34 = vmul.f32 %v3361_v60, %v3357_v33  ;;  %v6362_v60 = vld [vmem:[#allocation14 + $0x128] ss:$12 sps:$4 sm:$0xff]   ;;  %v6363_v33 = vld [vmem:[#allocation14 + $0x138] ss:$12 sps:$4 sm:$0xff]  }
 0xe23   : > { %v3367_v35 = vadd.f32 %v3366_v17, %v3362_v34  ;;  %v6366_v17 = vld [vmem:[#allocation14 + $0x140] ss:$12 sps:$4 sm:$0xff]  }
 0xe24   : > { %v6369_v34 = vld [vmem:[#allocation14 + $0x154] ss:$12 sps:$4 sm:$0xff]  }
 0xe25   : > { %v3368_v36 = vpack.c.bf16 %v3367_v35, %v3367_v35 }
 0xe27   : > { %3510 = vmatmul.mubr.bf16.vlgmr.msra.gmra.mrb[48].mxu0 %v3368_v36  ;;  %v6370_v36 = vld [vmem:[#allocation14 + $0x158] ss:$12 sps:$4 sm:$0xff]  }
 0xe28   : > { %3935 = vmatprep.mubr.bf16.mxu0 %v6886_v4  ;;  %3904 = vmatpush1.bf16.msra.mxu0 %v6343_v29 }
 0xe29   : > { %3905 = vmatprep.subr.bf16.mxu0 %v6349_v57  ;;  %v3771_v57 = vrot.slane %v5352_v2, %v7420_v6 }
 0xe2c   : > { %3906 = vmatpush1.bf16.msra.mxu0 %v6347_v58 }
 0xe2d   : > { %3907 = vmatprep.subr.bf16.mxu0 %v6353_v14 }
 0xe30   : > { %3908 = vmatpush1.bf16.msra.mxu0 %v6351_v15 }
 0xe31   : > { %3909 = vmatprep.subr.bf16.mxu0 %v6357_v1 }
 0xe34   : > { %3910 = vmatpush1.bf16.msra.mxu0 %v6355_v16 }
 0xe35   : > { %3911 = vmatprep.subr.bf16.mxu0 %v6361_v24 }
 0xe38   : > { %3912 = vmatpush1.bf16.msra.mxu0 %v6359_v26 }
 0xe39   : > { %3913 = vmatprep.subr.bf16.mxu0 %v6365_v32 }
 0xe3c   : > { %3914 = vmatpush1.bf16.msra.mxu0 %v6363_v33 }
 0xe3d   : > { %3915 = vmatprep.subr.bf16.mxu0 %v6369_v34 }
 0xefa   : > { %v3511_v42 = vpop.f32.mrb[48].mxu0 }
 0xefb   : > { %v3512_v43 = vadd.f32 %v3511_v42, %v3390_v40  ;;  %v3513_v44 = vpop.f32.mrb[49].mxu0 }
 0xefc   : > { %v3514_v45 = vadd.f32 %v3513_v44, %v3394_v41  ;;  %v3515_v46 = vpop.f32.mrb[50].mxu0 }
 0xefd   : > { %v3518_v47 = vmax.f32 %v3512_v43, 0.0  ;;  %v3516_v51 = vpop.f32.mrb[51].mxu0  ;;  %v3714_v46 = vrot.slane %v7616_v25, %v7420_v6 }
 0xefe   : > { %v3519_v54 = vmax.f32 %v3514_v45, 0.0  ;;  %v3719_v51 = vrot.slane %v7616_v25, %v930_v9  ;;  %v3767_v9 = vrot.slane %v5352_v2, %v7425_v8  ;;  %v3763_v25 = vrot.slane %v5352_v2, %v7417_v3 }
 0xeff   : > { %v3520_v53 = vpack.c.bf16 %v3518_v47, %v3518_v47 }
 0xf00   : > { %v3521_v52 = vpack.c.bf16 %v3519_v54, %v3519_v54 }
 0xf02   : > { %3689 = vmatprep.mubr.bf16.mxu1 %v3521_v52 }
 0xf03   : > { %3690 = vmatmul.mubr.bf16.vlgmr.msra.gmra.mrb[28].mxu1 %v3520_v53 }
 0xf04   : > { %5768 = vmatprep.mubr.msk.bf16.mxu1 %vm6888_vm1, %v6887_v0  ;;  %5753 = vmatpush3.bf16.msra.mxu1 %v6346_v56 }
 0xf05   : > { %5754 = vmatprep.subr.bf16.mxu1 %v6887_v0 }
 0xf08   : > { %5755 = vmatpush3.bf16.msra.mxu1 %v6350_v13 }
 0xf09   : > { %5756 = vmatprep.subr.bf16.mxu1 %v6887_v0 }
 0xf0c   : > { %5757 = vmatpush3.bf16.msra.mxu1 %v6354_v48 }
 0xf0d   : > { %5758 = vmatprep.subr.bf16.mxu1 %v6887_v0 }
 0xf10   : > { %5759 = vmatpush3.bf16.msra.mxu1 %v6358_v20 }
 0xf11   : > { %5760 = vmatprep.subr.bf16.mxu1 %v6887_v0 }
 0xf14   : > { %5761 = vmatpush3.bf16.msra.mxu1 %v6362_v60 }
 0xf15   : > { %5762 = vmatprep.subr.bf16.mxu1 %v6887_v0 }
 0xf18   : > { %5763 = vmatpush3.bf16.msra.mxu1 %v6366_v17 }
 0xf19   : > { %5764 = vmatprep.subr.bf16.mxu1 %v6887_v0 }
 0xf1c   : > { %5765 = vmatpush3.bf16.msra.mxu1 %v6370_v36 }
 0xf1d   : > { %5766 = vmatprep.subr.bf16.mxu1 %v6887_v0 }
 0xf20   : > { %5767 = vmatpush3.bf16.msra.mxu1 %v6374_v5 }
 0xf21   : > { %5796 = vmatprep.subr.bf16.mxu1 %v6887_v0 }
 0xfd6   : > { %v5562_v59 = vpop.f32.mrb[28].mxu1 }
 0xfd7   : > { %v5563_v62 = vpop.f32.mrb[29].mxu1 }
 0xfd8   : > { %v5564_v63 = vadd.f32 %v5563_v62, %v5562_v59  ;;  %v5565_v7 = vpop.f32.mrb[30].mxu1 }
 0xfd9   : > { %v5566_v10 = vpop.f32.mrb[31].mxu1 }
 0xfda   : > { %v3692_v11 = vadd.f32 %v5564_v63, %v5334_v61 }
 0xfdc   : > { %v7636_v12 = vadd.f32 %v3692_v11, %v3367_v35  ;;  %v6367_v35 = vld [vmem:[#allocation14 + $0x150] ss:$12 sps:$4 sm:$0xff]  }
 0xfdd   : > { %3916 = vmatpush1.bf16.msra.mxu0 %v6367_v35 }
 0xfde   : > { %3698 = vadd.xlane.f32.xlu0 %v7636_v12  ;;  %v3700_v27 = vmul.f32 %v7636_v12, %v7636_v12  ;;  %3917 = vmatprep.subr.bf16.mxu0 %v6373_v37 }
 0xfe0   : > { %3701 = vadd.xlane.f32.xlu1 %v3700_v27 }
 0xfe1   : > { %3918 = vmatpush1.bf16.msra.mxu0 %v6371_v38 }
 0xfe2   : > { %5772 = vmatprep.subr.bf16.mxu0 %v6887_v0 }
0x106b   : > { %v3699_v39 = vpop.xlane.xlu0 %3698 }
0x106c   : > { %v3703_v21 = vmul.f32 0.0078125, %v3699_v39 }
0x106d   : > { %v3702_v40 = vpop.xlane.xlu1 %3701 }
0x106e   : > { %v3705_v41 = vmul.f32 %v3703_v21, %v3703_v21  ;;  %v3704_v42 = vmul.f32 0.0078125, %v3702_v40  ;;  %v3707_v45 = vsub.f32 %v7636_v12, %v3703_v21 }
0x1070   : > { %v3706_v43 = vsub.f32 %v3704_v42, %v3705_v41 }
0x1072   : > { %v3708_v44 = vadd.f32 1e-05, %v3706_v43 }
0x1074   : > { %6441 = vrsqrt.f32 %v3708_v44 }
0x107e   : > { %v6442_v47 = vpop.eup %6441 }
0x107f   : > { %v3710_v54 = vmul.f32 %v6442_v47, %v3707_v45 }
0x1081   : > { %v3715_v52 = vmul.f32 %v3714_v46, %v3710_v54 }
0x1083   : > { %v7655_v53 = vadd.f32 %v3719_v51, %v3715_v52 }
0x1085   : > { %v3723_v29 = vpack.c.bf16 %v7655_v53, %v7655_v53 }
0x1087   : > { %3936 = vmatmul.mubr.bf16.vlgmr.msra.gmra.mrb[52].mxu0 %v3723_v29  ;;  %5769 = vmatmul.mubr.bf16.vlgmr.msra.gmra.mrb[32].mxu1 %v3723_v29 }
0x1088   : > { %5774 = vmatprep.mubr.msk.bf16.mxu0 %vm6888_vm1, %v6887_v0  ;;  %5798 = vmatprep.mubr.msk.bf16.mxu1 %vm6888_vm1, %v6887_v0 }
0x115a   : > { %v3937_v55 = vpop.f32.mrb[52].mxu0  ;;  %v3978_v56 = vpop.f32.mrb[32].mxu1 }
0x115b   : > { %v3939_v58 = vpop.f32.mrb[53].mxu0  ;;  %v5770_v59 = vpop.f32.mrb[33].mxu1  ;;  %v3938_v7 = vadd.f32 %v3937_v55, %v3763_v25  ;;  %v3979_v27 = vadd.f32 %v3978_v56, %v3771_v57 }
0x115c   : > { %v3940_v61 = vadd.f32 %v3939_v58, %v3767_v9  ;;  %v3941_v62 = vpop.f32.mrb[54].mxu0  ;;  %v3981_v63 = vpop.f32.mrb[34].mxu1 }
0x115d   : > { %v3942_v10 = vpop.f32.mrb[55].mxu0  ;;  %v5771_v11 = vpop.f32.mrb[35].mxu1  ;;  %v3986_v13 = vpack.c.bf16 %v3938_v7, %v3938_v7  ;;  %v3985_v14 = vpack.c.bf16 %v3979_v27, %v3979_v27 }
0x115e   : > { %v3984_v12 = vpack.c.bf16 %v3940_v61, %v3940_v61 }
0x115f   : > { %v3987_v6 = vmul.bf16 %v3986_v13, %v7506_v22  ;;  %v4187_v15 = vmul.bf16 %v3986_v13, %v7575_v31  ;;  %v7674_v48 = vsel %vm2891_vm4, %v3985_v14, 0  ;;  %v4285_v22 = vmul.bf16 %v3986_v13, %v7511_v23 }
0x1160   : > { %5773 = vmatpush3.bf16.xpose.msra.mxu0 %v3984_v12  ;;  %5797 = vmatpush3.bf16.xpose.msra.mxu1 %v3984_v12  ;;  %v4089_v46 = vmul.bf16 %v3986_v13, %v7550_v50 }
0x1161   : > { %5778 = vmatprep.subr.bf16.mxu0 %v6887_v0  ;;  %5808 = vmatprep.subr.bf16.mxu1 %v6887_v0 }
0x1167   : > { %5775 = vmatmul.mubr.bf16.vlgmr.msra.gmra.mrb[56].mxu0 %v3987_v6  ;;  %5799 = vmatmul.mubr.bf16.vlgmr.msra.gmra.mrb[36].mxu1 %v4187_v15 }
0x1168   : > { %5779 = vmatpush3.bf16.msra.mxu0 %v7674_v48  ;;  %5809 = vmatpush3.bf16.xpose.msra.mxu1 %v3984_v12 }
0x1169   : > { %5810 = vmatprep.mubr.msk.bf16.mxu1 %vm6888_vm1, %v6887_v0  ;;  %5780 = vmatprep.mubr.msk.bf16.mxu0 %vm6888_vm1, %v6887_v0 }
0x116a   : > { %5784 = vmatprep.subr.bf16.mxu0 %v6887_v0  ;;  %5820 = vmatprep.subr.bf16.mxu1 %v6887_v0 }
0x116f   : > { %5811 = vmatmul.mubr.bf16.vlgmr.msra.gmra.mrb[40].mxu1 %v4285_v22  ;;  %v6375_v22 = vld [vmem:[#allocation16 + $0x40] sm:$0xff]  }
0x1170   : > { %5836 = vmatprep.mubr.msk.bf16.mxu1 %vm6888_vm1, %v6887_v0  ;;  %5821 = vmatpush3.bf16.msra.mxu1 %v6375_v22  ;;  %v6403_v22 = vld [vmem:[#allocation17 + $0xe4] ss:$8 sps:$4 sm:$0xff]  }
0x1171   : > { %5822 = vmatprep.subr.bf16.mxu1 %v6887_v0 }
0x123a   : > { %v4022_v31 = vpop.f32.mrb[56].mxu0  ;;  %v4222_v1 = vpop.f32.mrb[36].mxu1 }
0x123b   : > { %v4023_v16 = vadd.f32 %v4022_v31, %v7529_v28  ;;  %v5776_v20 = vpop.f32.mrb[57].mxu0  ;;  %v5800_v24 = vpop.f32.mrb[37].mxu1  ;;  %v4223_v21 = vadd.f32 %v4222_v1, %v7529_v28  ;;  %v6376_v31 = vld [vmem:[#allocation16 + $0x48] sm:$0xff]  }
0x123c   : > { %v4025_v26 = vpop.f32.mrb[58].mxu0  ;;  %v4225_v60 = vpop.f32.mrb[38].mxu1  ;;  %5823 = vmatpush3.bf16.msra.mxu1 %v6376_v31  ;;  %v6401_v31 = vld [vmem:[#allocation17 + $0xe0] ss:$8 sps:$4 sm:$0xff]  }
0x123d   : > { %v5777_v32 = vpop.f32.mrb[59].mxu0  ;;  %v5801_v33 = vpop.f32.mrb[39].mxu1  ;;  %v4029_v17 = vsel %vm4028_vm12, %v4023_v16, -inf  ;;  %v4228_v41 = vsel %vm4028_vm12, %v4223_v21, -inf  ;;  %5824 = vmatprep.subr.bf16.mxu1 %v6887_v0 }
0x123e   : > { %4030 = vmax.xlane.f32.xlu0 %v4029_v17 }
0x1242   : > { %v4320_v34 = vpop.f32.mrb[40].mxu1 }
0x1243   : > { %v5812_v23 = vpop.f32.mrb[41].mxu1  ;;  %v4321_v57 = vadd.f32 %v4320_v34, %v7529_v28 }
0x1244   : > { %v4323_v35 = vpop.f32.mrb[42].mxu1 }
0x1245   : > { %v5813_v36 = vpop.f32.mrb[43].mxu1  ;;  %v4326_v61 = vsel %vm4028_vm12, %v4321_v57, -inf }
0x1246   : > { %v6377_v36 = vld [vmem:[#allocation16 + $0x50] sm:$0xff]  }
0x1247   : > { %5825 = vmatpush3.bf16.msra.mxu1 %v6377_v36  ;;  %v6417_v36 = vld [vmem:[#allocation19 + $0xe8] sm:$0xff]  }
0x1248   : > { %5826 = vmatprep.subr.bf16.mxu1 %v6887_v0 }
0x12cb   : > { %v4031_v37 = vpop.xlane.xlu0 %4030 }
0x12cc   : > { %v4032_v38 = vsub.f32 %v4023_v16, %v4031_v37  ;;  %v6378_v37 = vld [vmem:[#allocation16 + $0x58] sm:$0xff]  }
0x12cd   : > { %5827 = vmatpush3.bf16.msra.mxu1 %v6378_v37  ;;  %v6418_v37 = vld [vmem:[#allocation19 + $0xa8] sm:$0xff]  }
0x12ce   : > { %v4033_v5 = vmul.f32 1.442695, %v4032_v38  ;;  %5828 = vmatprep.subr.bf16.mxu1 %v6887_v0  ;;  %v6379_v38 = vld [vmem:[#allocation16 + $0x60] sm:$0xff]  }
0x12d0   : > { %6443 = vpow2.f32 %v4033_v5  ;;  %v6381_v5 = vld [vmem:[#allocation16 + $0x70] sm:$0xff]  }
0x12d1   : > { %5829 = vmatpush3.bf16.msra.mxu1 %v6379_v38 }
0x12d2   : > { %5830 = vmatprep.subr.bf16.mxu1 %v6887_v0 }
0x12da   : > { %v6444_v39 = vpop.eup %6443 }
0x12db   : > { %v4035_v40 = vsel %vm4028_vm12, %v6444_v39, 0.0 }
0x12dc   : > { %4036 = vadd.xlane.f32.xlu1 %v4035_v40 }
0x12e0   : > { %4229 = vmax.xlane.f32.xlu1 %v4228_v41 }
0x1369   : > { %v4037_v42 = vpop.xlane.xlu1 %4036 }
0x136a   : > { %6445 = vrcp.f32 %v4037_v42 }
0x136d   : > { %v4230_v47 = vpop.xlane.xlu1 %4229 }
0x136e   : > { %v4231_v51 = vsub.f32 %v4223_v21, %v4230_v47 }
0x1370   : > { %v4232_v29 = vmul.f32 1.442695, %v4231_v51 }
0x1372   : > { %6447 = vpow2.f32 %v4232_v29 }
0x1374   : > { %v6446_v43 = vpop.eup %6445 }
0x1375   : > { %v4039_v44 = vmul.f32 %v6446_v43, %v6444_v39 }
0x1377   : > { %v4040_v45 = vpack.c.bf16 %v4039_v44, %v4039_v44 }
0x1379   : > { %5781 = vmatmul.mubr.msk.bf16.vlgmr.msra.gmra.mrb[60].mxu0 %vm2875_vm5, %v4040_v45 }
0x137a   : > { %5785 = vmatpush3.bf16.xpose.msra.mxu0 %v3984_v12  ;;  %5786 = vmatprep.mubr.msk.bf16.mxu0 %vm6888_vm1, %v6887_v0 }
0x137b   : > { %5790 = vmatprep.subr.bf16.mxu0 %v6887_v0 }
0x137c   : > { %v6448_v62 = vpop.eup %6447 }
0x137d   : > { %v4234_v63 = vsel %vm4028_vm12, %v6448_v62, 0.0 }
0x1381   : > { %5787 = vmatmul.mubr.bf16.vlgmr.msra.gmra.mrb[64].mxu0 %v4089_v46 }
0x1382   : > { %5791 = vmatpush3.bf16.msra.mxu0 %v7674_v48  ;;  %5792 = vmatprep.mubr.msk.bf16.mxu0 %vm6888_vm1, %v6887_v0 }
0x1383   : > { %5802 = vmatprep.subr.bf16.mxu0 %v6887_v0 }
0x144c   : > { %v7700_v54 = vpop.f32.mrb[60].mxu0 }
0x144d   : > { %v5782_v52 = vpop.f32.mrb[61].mxu0  ;;  %v4087_v21 = vmul.f32 %v7495_v18, %v7700_v54 }
0x144e   : > { %v4084_v2 = vpop.f32.mrb[62].mxu0 }
0x144f   : > { %v5783_v9 = vpop.f32.mrb[63].mxu0 }
0x1454   : > { %v4124_v25 = vpop.f32.mrb[64].mxu0 }
0x1455   : > { %v4125_v50 = vadd.f32 %v4124_v25, %v7529_v28  ;;  %v5788_v55 = vpop.f32.mrb[65].mxu0 }
0x1456   : > { %v4127_v56 = vpop.f32.mrb[66].mxu0  ;;  %v6385_v55 = vld [vmem:[#allocation17 + $0x84] ss:$8 sps:$4 sm:$0xff]  }
0x1457   : > { %v5789_v58 = vpop.f32.mrb[67].mxu0  ;;  %v4130_v59 = vsel %vm4028_vm12, %v4125_v50, -inf  ;;  %v6388_v56 = vld [vmem:[#allocation17 + $0x94] ss:$8 sps:$4 sm:$0xff]  }
0x1458   : > { %4131 = vmax.xlane.f32.xlu0 %v4130_v59 }
0x145c   : > { %4327 = vmax.xlane.f32.xlu0 %v4326_v61 }
0x1460   : > { %4235 = vadd.xlane.f32.xlu0 %v4234_v63 }
0x14e5   : > { %v4132_v7 = vpop.xlane.xlu0 %4131 }
0x14e6   : > { %v4133_v10 = vsub.f32 %v4125_v50, %v4132_v7 }
0x14e8   : > { %v4134_v11 = vmul.f32 1.442695, %v4133_v10 }
0x14e9   : > { %v4328_v12 = vpop.xlane.xlu0 %4327 }
0x14ea   : > { %6449 = vpow2.f32 %v4134_v11  ;;  %v4329_v27 = vsub.f32 %v4321_v57, %v4328_v12  ;;  %v6386_v57 = vld [vmem:[#allocation17 + $0x90] ss:$8 sps:$4 sm:$0xff]   ;;  %v6391_v12 = vld [vmem:[#allocation17 + $0xa4] ss:$8 sps:$4 sm:$0xff]  }
0x14ec   : > { %v4330_v13 = vmul.f32 1.442695, %v4329_v27  ;;  %v6389_v27 = vld [vmem:[#allocation17 + $0xa0] ss:$8 sps:$4 sm:$0xff]  }
0x14ed   : > { %v4236_v16 = vpop.xlane.xlu0 %4235 }
0x14ee   : > { %6451 = vpow2.f32 %v4330_v13  ;;  %v6394_v13 = vld [vmem:[#allocation17 + $0xb4] ss:$8 sps:$4 sm:$0xff]  }
0x14f4   : > { %v6450_v28 = vpop.eup %6449 }
0x14f5   : > { %v4136_v14 = vsel %vm4028_vm12, %v6450_v28, 0.0 }
0x14f6   : > { %4137 = vadd.xlane.f32.xlu1 %v4136_v14  ;;  %v6395_v14 = vld [vmem:[#allocation17 + $0xc0] ss:$8 sps:$4 sm:$0xff]  }
0x14f8   : > { %v6452_v6 = vpop.eup %6451 }
0x14f9   : > { %v4332_v15 = vsel %vm4028_vm12, %v6452_v6, 0.0 }
0x14fa   : > { %4333 = vadd.xlane.f32.xlu1 %v4332_v15  ;;  %v6398_v15 = vld [vmem:[#allocation17 + $0xd0] ss:$8 sps:$4 sm:$0xff]  }
0x1583   : > { %v4138_v1 = vpop.xlane.xlu1 %4137 }
0x1584   : > { %6453 = vrcp.f32 %v4138_v1  ;;  %v6406_v1 = vld [vmem:[#allocation17 + $0xf4] ss:$8 sps:$4 sm:$0xff]  }
0x1585   : > { %6455 = vrcp.f32 %v4236_v16  ;;  %v6404_v16 = vld [vmem:[#allocation17 + $0xf0] ss:$8 sps:$4 sm:$0xff]  }
0x1587   : > { %v4334_v20 = vpop.xlane.xlu1 %4333 }
0x1588   : > { %6457 = vrcp.f32 %v4334_v20  ;;  %v6407_v20 = vld [vmem:[#allocation19 + $0xc0] sm:$0xff]  }
0x158e   : > { %v6454_v24 = vpop.eup %6453 }
0x158f   : > { %v4140_v26 = vmul.f32 %v6454_v24, %v6450_v28  ;;  %v6456_v32 = vpop.eup %6455  ;;  %v6392_v28 = vld [vmem:[#allocation17 + $0xb0] ss:$8 sps:$4 sm:$0xff]   ;;  %v6408_v24 = vld [vmem:[#allocation19 + $0x80] sm:$0xff]  }
0x1590   : > { %v4238_v33 = vmul.f32 %v6456_v32, %v6448_v62  ;;  %v6411_v32 = vld [vmem:[#allocation19 + $0xd0] sm:$0xff]  }
0x1591   : > { %v4141_v60 = vpack.c.bf16 %v4140_v26, %v4140_v26  ;;  %v6409_v26 = vld [vmem:[#allocation19 + $0xc8] sm:$0xff]  }
0x1592   : > { %v4239_v17 = vpack.c.bf16 %v4238_v33, %v4238_v33  ;;  %v6458_v34 = vpop.eup %6457  ;;  %v6412_v33 = vld [vmem:[#allocation19 + $0x90] sm:$0xff]  }
0x1593   : > { %5793 = vmatmul.mubr.msk.bf16.vlgmr.msra.gmra.mrb[68].mxu0 %vm2875_vm5, %v4141_v60  ;;  %v4336_v23 = vmul.f32 %v6458_v34, %v6452_v6  ;;  %v6400_v6 = vld [vmem:[#allocation17 + $0xd4] ss:$8 sps:$4 sm:$0xff]   ;;  %v6410_v60 = vld [vmem:[#allocation19 + $0x88] sm:$0xff]  }
0x1594   : > { %5803 = vmatpush3.bf16.msra.mxu0 %v7674_v48  ;;  %5804 = vmatprep.mubr.msk.bf16.mxu0 %vm6888_vm1, %v6887_v0  ;;  %v6414_v34 = vld [vmem:[#allocation19 + $0x98] sm:$0xff]  }
0x1595   : > { %5814 = vmatprep.subr.bf16.mxu0 %v6887_v0  ;;  %v4337_v35 = vpack.c.bf16 %v4336_v23, %v4336_v23  ;;  %v6415_v23 = vld [vmem:[#allocation19 + $0xe0] sm:$0xff]  }
0x159b   : > { %5805 = vmatmul.mubr.msk.bf16.vlgmr.msra.gmra.mrb[72].mxu0 %vm2875_vm5, %v4239_v17  ;;  %v6413_v17 = vld [vmem:[#allocation19 + $0xd8] sm:$0xff]  }
0x159c   : > { %5815 = vmatpush3.bf16.msra.mxu0 %v7674_v48  ;;  %5816 = vmatprep.mubr.msk.bf16.mxu0 %vm6888_vm1, %v6887_v0  ;;  %v6380_v48 = vld [vmem:[#allocation16 + $0x68] sm:$0xff]  }
0x159d   : > { %5831 = vmatpush3.bf16.msra.mxu1 %v6380_v48  ;;  %4624 = vmatprep.subr.bf16.mxu0 %v6385_v55 }
0x159e   : > { %5832 = vmatprep.subr.bf16.mxu1 %v6887_v0 }
0x15a1   : > { %5833 = vmatpush3.bf16.msra.mxu1 %v6381_v5 }
0x15a2   : > { %5834 = vmatprep.subr.bf16.mxu1 %v6887_v0 }
0x15a3   : > { %5817 = vmatmul.mubr.msk.bf16.vlgmr.msra.gmra.mrb[76].mxu0 %vm2875_vm5, %v4337_v35  ;;  %v6416_v35 = vld [vmem:[#allocation19 + $0xa0] sm:$0xff]  }
0x15a4   : > { %4656 = vmatprep.mubr.bf16.mxu0 %v6886_v4  ;;  %v6382_v4 = vld [vmem:[#allocation16 + $0x78] sm:$0xff]  }
0x15a5   : > { %5835 = vmatpush3.bf16.msra.mxu1 %v6382_v4 }
0x15a6   : > { %5602 = vmatprep.subr.bf16.mxu1 %v6407_v20 }
0x1666   : > { %v4179_v39 = vpop.f32.mrb[68].mxu0 }
0x1667   : > { %v4185_v40 = vmul.f32 %v7541_v49, %v4179_v39  ;;  %v5794_v41 = vpop.f32.mrb[69].mxu0  ;;  %v6383_v49 = vld [vmem:[#allocation17 + $0x80] ss:$8 sps:$4 sm:$0xff]  }
0x1668   : > { %v4182_v42 = vpop.f32.mrb[70].mxu0  ;;  %4625 = vmatpush1.bf16.msra.mxu0 %v6383_v49  ;;  %v7746_v41 = vld [vmem:[%s7888_s1 + $0x4] sm:$0xf]  ;;  %s6781_s1 = scalar_lea.vmem %s6780_s22, 32 }
0x1669   : > { %v4186_v43 = vadd.f32 %v4185_v40, %v4087_v21  ;;  %v5795_v44 = vpop.f32.mrb[71].mxu0  ;;  %4626 = vmatprep.subr.bf16.mxu0 %v6388_v56  ;;  %p6783_p8 = scmp.lt.s32.totalorder %s6781_s1, %s6775_s19 }
0x166b   : > { %p6784_p4 = por %p6783_p8, %p6782_p11 }
0x166c   : > { %4627 = vmatpush1.bf16.msra.mxu0 %v6386_v57 }
0x166d   : > { %4628 = vmatprep.subr.bf16.mxu0 %v6391_v12  ;;  %p6785_p12 = pnand %p6784_p4, %p6778_p7 }
0x166e   : > { %v4277_v45 = vpop.f32.mrb[72].mxu0 }
0x166f   : > { %v4283_v46 = vmul.f32 %v7566_v30, %v4277_v45  ;;  %v5806_v47 = vpop.f32.mrb[73].mxu0  ;;  %v5381_v30 = vld [vmem:[%s7887_s13 + $0x1] sm:$0x1]  ;;  %v4510_v45 = vrot.slane %v7746_v41, 1 }
0x1670   : > { %v4280_v51 = vpop.f32.mrb[74].mxu0  ;;  %4629 = vmatpush1.bf16.msra.mxu0 %v6389_v27 }
0x1671   : > { %v4284_v52 = vadd.f32 %v4283_v46, %v4186_v43  ;;  %v5807_v29 = vpop.f32.mrb[75].mxu0  ;;  %4630 = vmatprep.subr.bf16.mxu0 %v6394_v13 }
0x1672   : > { %v6420_v29 = vld [vmem:[#allocation19 + $0xb0] sm:$0xff]  }
0x1674   : > { %4631 = vmatpush1.bf16.msra.mxu0 %v6392_v28 }
0x1676   : > { %v4375_v0 = vpop.f32.mrb[76].mxu0 }
0x1677   : > { %v4381_v2 = vmul.f32 %v7498_v19, %v4375_v0  ;;  %v5818_v9 = vpop.f32.mrb[77].mxu0  ;;  %v6421_v0 = vld [vmem:[#allocation19 + $0xf8] sm:$0xff]  }
0x1678   : > { %v4378_v25 = vpop.f32.mrb[78].mxu0  ;;  %v5390_v9 = vld [vmem:[%s7889_s30 + $0x2] sm:$0x3] }
0x1679   : > { %v4382_v50 = vadd.f32 %v4381_v2, %v4284_v52  ;;  %v5819_v18 = vpop.f32.mrb[79].mxu0  ;;  %v6419_v52 = vld [vmem:[#allocation19 + $0xf0] sm:$0xff]   ;;  %v6422_v2 = vld [vmem:[#allocation19 + $0xb8] sm:$0xff]   ;;  %v4617_v25 = vrot.slane %v5390_v9, %v7417_v3 }
0x167b   : > { %v4383_v54 = vpack.c.bf16 %v4382_v50, %v4382_v50  ;;  %v4621_v50 = vrot.slane %v5390_v9, %v7425_v8 }
0x167d   : > { %5837 = vmatmul.mubr.bf16.vlgmr.msra.gmra.mrb[44].mxu1 %v4383_v54 }
0x167e   : > { %5603 = vmatpush3.bf16.msra.mxu1 %v6408_v24 }
0x167f   : > { %5604 = vmatprep.subr.bf16.mxu1 %v6409_v26  ;;  %v4859_v26 = vrot.slane %v7746_v41, 3 }
0x1682   : > { %5605 = vmatpush3.bf16.msra.mxu1 %v6410_v60 }
0x1683   : > { %5606 = vmatprep.subr.bf16.mxu1 %v6411_v32 }
0x1686   : > { %5607 = vmatpush3.bf16.msra.mxu1 %v6412_v33 }
0x1687   : > { %5608 = vmatprep.subr.bf16.mxu1 %v6413_v17 }
0x168a   : > { %5609 = vmatpush3.bf16.msra.mxu1 %v6414_v34 }
0x168b   : > { %5610 = vmatprep.subr.bf16.mxu1 %v6415_v23 }
0x168e   : > { %5611 = vmatpush3.bf16.msra.mxu1 %v6416_v35 }
0x168f   : > { %5612 = vmatprep.subr.bf16.mxu1 %v6417_v36 }
0x1692   : > { %5613 = vmatpush3.bf16.msra.mxu1 %v6418_v37 }
0x1693   : > { %5614 = vmatprep.subr.bf16.mxu1 %v6419_v52 }
0x1696   : > { %5615 = vmatpush3.bf16.msra.mxu1 %v6420_v29 }
0x1697   : > { %5616 = vmatprep.subr.bf16.mxu1 %v6421_v0 }
0x169a   : > { %5617 = vmatpush3.bf16.msra.mxu1 %v6422_v2 }
0x1750   : > { %v4485_v58 = vpop.f32.mrb[44].mxu1 }
0x1751   : > { %v4486_v19 = vadd.f32 %v5381_v30, %v4485_v58  ;;  %v5838_v59 = vpop.f32.mrb[45].mxu1 }
0x1752   : > { %v4488_v61 = vpop.f32.mrb[46].mxu1 }
0x1753   : > { %v7736_v62 = vadd.f32 %v4486_v19, %v7655_v53  ;;  %v5839_v63 = vpop.f32.mrb[47].mxu1  ;;  %v6397_v53 = vld [vmem:[#allocation17 + $0xc4] ss:$8 sps:$4 sm:$0xff]  }
0x1754   : > { %4632 = vmatprep.subr.bf16.mxu0 %v6397_v53 }
0x1755   : > { %v4493_v7 = vsel %vm4492_vm13, %v7736_v62, 0.0  ;;  %v4496_v10 = vmul.f32 %v7736_v62, %v7736_v62  ;;  %4633 = vmatpush1.bf16.msra.mxu0 %v6395_v14 }
0x1756   : > { %4494 = vadd.xlane.f32.xlu0 %v4493_v7  ;;  %4634 = vmatprep.subr.bf16.mxu0 %v6400_v6 }
0x1757   : > { %v4497_v11 = vsel %vm4492_vm13, %v4496_v10, 0.0 }
0x1758   : > { %4498 = vadd.xlane.f32.xlu1 %v4497_v11 }
0x1759   : > { %4635 = vmatpush1.bf16.msra.mxu0 %v6398_v15 }
0x175a   : > { %4636 = vmatprep.subr.bf16.mxu0 %v6403_v22 }
0x175d   : > { %4637 = vmatpush1.bf16.msra.mxu0 %v6401_v31 }
0x175e   : > { %4638 = vmatprep.subr.bf16.mxu0 %v6406_v1 }
0x1761   : > { %4639 = vmatpush1.bf16.msra.mxu0 %v6404_v16  ;;  %v4856_v16 = vrot.slane %v7746_v41, 2 }
0x17e3   : > { %v4495_v38 = vpop.xlane.xlu0 %4494 }
0x17e4   : > { %v4500_v48 = vmul.f32 0.0078125, %v4495_v38 }
0x17e5   : > { %v4499_v5 = vpop.xlane.xlu1 %4498 }
0x17e6   : > { %v4502_v4 = vmul.f32 %v4500_v48, %v4500_v48  ;;  %v4501_v39 = vmul.f32 0.0078125, %v4499_v5  ;;  %v4504_v42 = vsub.f32 %v7736_v62, %v4500_v48  ;;  %v5407_v62 = vld [vmem:[%s7890_s29 + $0x1] sm:$0x1] }
0x17e8   : > { %v4503_v21 = vsub.f32 %v4501_v39, %v4502_v4 }
0x17ea   : > { %v4505_v40 = vadd.f32 1e-05, %v4503_v21 }
0x17ec   : > { %6459 = vrsqrt.f32 %v4505_v40 }
0x17f6   : > { %v6460_v43 = vpop.eup %6459 }
0x17f7   : > { %v4507_v44 = vmul.f32 %v6460_v43, %v4504_v42 }
0x17f9   : > { %v4508_v46 = vmul.f32 %v7746_v41, %v4507_v44 }
0x17fb   : > { %v4512_v47 = vadd.f32 %v4510_v45, %v4508_v46 }
0x17fd   : > { %v4513_v51 = vpack.c.bf16 %v4512_v47, %v4512_v47 }
0x17ff   : > { %4657 = vmatmul.mubr.bf16.vlgmr.msra.gmra.mrb[80].mxu0 %v4513_v51 }
0x18d2   : > { %v4658_v18 = vpop.f32.mrb[80].mxu0 }
0x18d3   : > { %v4659_v54 = vadd.f32 %v4658_v18, %v4617_v25  ;;  %v4660_v49 = vpop.f32.mrb[81].mxu0 }
0x18d4   : > { %v4661_v55 = vadd.f32 %v4660_v49, %v4621_v50  ;;  %v4662_v56 = vpop.f32.mrb[82].mxu0 }
0x18d5   : > { %v4665_v57 = vmax.f32 %v4659_v54, 0.0  ;;  %v4663_v30 = vpop.f32.mrb[83].mxu0 }
0x18d6   : > { %v4666_v58 = vmax.f32 %v4661_v55, 0.0 }
0x18d7   : > { %v4667_v59 = vpack.c.bf16 %v4665_v57, %v4665_v57 }
0x18d8   : > { %v4668_v19 = vpack.c.bf16 %v4666_v58, %v4666_v58 }
0x18da   : > { %4832 = vmatprep.mubr.bf16.mxu1 %v4668_v19 }
0x18db   : > { %4833 = vmatmul.mubr.bf16.vlgmr.msra.gmra.mrb[48].mxu1 %v4667_v59 }
0x19ae   : > { %v5618_v61 = vpop.f32.mrb[48].mxu1 }
0x19af   : > { %v5619_v3 = vpop.f32.mrb[49].mxu1 }
0x19b0   : > { %v5620_v63 = vadd.f32 %v5619_v3, %v5618_v61  ;;  %v5621_v8 = vpop.f32.mrb[50].mxu1 }
0x19b1   : > { %v5622_v7 = vpop.f32.mrb[51].mxu1 }
0x19b2   : > { %v4835_v10 = vadd.f32 %v5620_v63, %v5407_v62 }
0x19b4   : > { %v4840_v11 = vadd.f32 %v4835_v10, %v4512_v47 }
0x19b6   : > { %v4841_v12 = vsel %vm4492_vm13, %v4840_v11, 0.0  ;;  %v4844_v27 = vmul.f32 %v4840_v11, %v4840_v11 }
0x19b7   : > { %4842 = vadd.xlane.f32.xlu0 %v4841_v12 }
0x19b8   : > { %v4845_v13 = vsel %vm4492_vm13, %v4844_v27, 0.0 }
0x19b9   : > { %4846 = vadd.xlane.f32.xlu1 %v4845_v13 }
0x1a44   : > { %v4843_v28 = vpop.xlane.xlu0 %4842 }
0x1a45   : > { %v4848_v53 = vmul.f32 0.0078125, %v4843_v28 }
0x1a46   : > { %v4847_v14 = vpop.xlane.xlu1 %4846 }
0x1a47   : > { %v4850_v6 = vmul.f32 %v4848_v53, %v4848_v53  ;;  %v4849_v15 = vmul.f32 0.0078125, %v4847_v14  ;;  %v4852_v1 = vsub.f32 %v4840_v11, %v4848_v53 }
0x1a49   : > { %v4851_v22 = vsub.f32 %v4849_v15, %v4850_v6 }
0x1a4b   : > { %v4853_v31 = vadd.f32 1e-05, %v4851_v22 }
0x1a4d   : > { %6461 = vrsqrt.f32 %v4853_v31 }
0x1a57   : > { %v6462_v20 = vpop.eup %6461 }
0x1a58   : > { %v4855_v24 = vmul.f32 %v6462_v20, %v4852_v1 }
0x1a5a   : > { %v4858_v60 = vmul.f32 %v4856_v16, %v4855_v24 }
0x1a5c   : > { %v4861_v32 = vadd.f32 %v4859_v26, %v4858_v60 }
0x1a5e   : > { %4862 = vst [vmem:[%s723_s17] sm:$0x1] %v4861_v32 }
0x1a5f   : > { %6788 = shalt.err (!%p6785_p12)
}
0x1a60   : > { %s6789_s6 = scalar_lea.hbm %s7768_s4, 16  ;;  %s6793_s20 = scalar_lea.hbm %s7891_s9, 32 }
0x1a61   : > { %p6790_p1 = scmp.ne.s32.totalorder %s7768_s4, %s6789_s6  ;;  %p6794_p2 = scmp.lt.u32.totalorder %s7768_s4, %s7891_s9 }
0x1a62   : > { %p6795_p6 = scmp.lt.u32.totalorder %s6793_s20, %s6789_s6  ;;  %p6797_p5 = scmp.lt.u32.totalorder %s6789_s6, %s7768_s4 }
0x1a63   : > { %p6791_p13 = pnand %p6790_p1, %p7892_p9 }
0x1a64   : > { %p6796_p10 = por %p6795_p6, %p6794_p2 }
0x1a65   : > { %p6792_p0 = pneg %p6791_p13 }
0x1a66   : > { %p6798_p3 = por %p6797_p5, %p6796_p10 }
0x1a68   : > { %p6799_p7 = pnand %p6798_p3, %p6792_p0 }
0x1a6a   : > { %6802 = shalt.err (!%p6799_p7)
}
0x1a6b   : > { %5892 = dma.vmem_to_hbm [thread:$0]  (%p7892_p9), %s7770_s7, 16, %s7768_s4, %s4864_s5  }
0x1a6c PF: > { %s4888_s1 = sand.u32 1, %s6853_s24   ;;  %p7893_p11 = scmp.ne.s32.totalorder %s7868_s11, 0 }
0x1a6d   : > { %p7894_p8 = scmp.ge.s32.totalorder %s6865_s27, 2  ;;  %s4889_s19 = scalar_lea.sflag [#allocation4], %s4888_s1 }
0x1a6f   : > { %p5930_p4 = pnand %p7894_p8, %p7893_p11 }
0x1a71   : > { %6848 = dma.done.wait (!%p5930_p4), %s4889_s19, 16  }
0x1a72   : > { %6850 = vsyncadd (!%p5930_p4), %s4889_s19, 4294967280  ;;  %p37_p12 = scmp.ge.s32.totalorder %s7231_s18, 4   ;;  %s7895_s24 = smov %s6857_s25 }
0x1a73   : > { %s7896_s25 = smov %s6861_s26  ;;  %s7897_s26 = smov %s7243_s21 }
0x1a74   : > { %s7898_s27 = smov %s7231_s18  ;;  %39 = sbr.rel (!%p37_p12) target bundleno = 26 (0x1a), region = 191 }
0x1a7b   :  { %4893 = vsyncpa [#allocation3], 1 }
0x1a7c   :  { %4895 = vsyncpa [#allocation3 + $0x1], 1 }
0x1a7d   :  { %4896 = vsyncpa [#allocation6], 1 }
0x1a7e   :  { %4898 = vsyncpa [#allocation6 + $0x1], 1 }
0x1a7f   :  { %4899 = vsyncpa [#allocation9], 1 }
0x1a80   :  { %4900 = vsyncpa [#allocation12], 1 }
0x1a81   :  { %4901 = vsyncpa [#allocation15], 1 }
0x1a82   :  { %4902 = vsyncpa [#allocation18], 1 }
0x1a83   :  { %4903 = vsyncpa [#allocation4], 1 }
0x1a84   :  { %4905 = vsyncpa [#allocation4 + $0x1], 1 }

</bundles_post_ra>
